<compile_context>
chip_gen: v7x
topology: tpu7x:2x2x1
jax: 0.10.0
libtpu: 0.0.40
codegen_flags: <defaults>
</compile_context>

<pallas_src>
import jax
import jax.numpy as jnp
import numpy as np
from jax.experimental import pallas as pl
from jax.experimental.pallas import tpu as pltpu


# ---------------------------------------------------------------------------
# Kernel: three chained lane-dense matmuls (layers1 | layers2 | fc)
# ---------------------------------------------------------------------------
def fused_forward_kernel(x_ref, w1_ref, b1_ref, w2_ref, b2_ref, wf_ref, bf_ref,
                         o_ref):
    # x_ref : (TB, 768)    NHWC-flattened input batch tile      (lane-dense)
    # w1_ref: (768, 1024)  layers1 (conv1+avgpool) dense matrix (lane-dense)
    # w2_ref: (1024, 512)  layers2 (conv2+avgpool) dense matrix (lane-dense)
    # wf_ref: (512, 128)   fc weight, NHWC row order, N padded  (lane-dense)
    # o_ref : (TB, 128)    output tile (first 84 lanes valid)
    b1 = b1_ref[...]            # biases loaded / broadcast exactly once
    b2 = b2_ref[...]
    bf = bf_ref[...]
    h1 = jnp.dot(x_ref[...], w1_ref[...],
                 preferred_element_type=jnp.float32) + b1          # (TB, 1024)
    h2 = jnp.dot(h1, w2_ref[...],
                 preferred_element_type=jnp.float32) + b2          # (TB, 512)
    y = jnp.dot(h2, wf_ref[...],
                preferred_element_type=jnp.float32) + bf           # (TB, 128)
    o_ref[...] = y.astype(o_ref.dtype)


def fused_forward(x_flat, w1, b1, w2, b2, wf, bf, *, block_b):
    bp, k = x_flat.shape
    nout = wf.shape[1]
    grid = (bp // block_b,)
    return pl.pallas_call(
        fused_forward_kernel,
        out_shape=jax.ShapeDtypeStruct((bp, nout), jnp.float32),
        grid_spec=pltpu.PrefetchScalarGridSpec(
            num_scalar_prefetch=0,
            grid=grid,
            in_specs=[
                pl.BlockSpec((block_b, k), lambda i: (i, 0)),   # batch-tiled
                pl.BlockSpec(w1.shape, lambda i: (0, 0)),       # weights stay
                pl.BlockSpec(b1.shape, lambda i: (0, 0)),       # resident
                pl.BlockSpec(w2.shape, lambda i: (0, 0)),       # across the
                pl.BlockSpec(b2.shape, lambda i: (0, 0)),       # whole grid
                pl.BlockSpec(wf.shape, lambda i: (0, 0)),
                pl.BlockSpec(bf.shape, lambda i: (0, 0)),
            ],
            out_specs=pl.BlockSpec((block_b, nout), lambda i: (i, 0)),
        ),
        compiler_params=pltpu.CompilerParams(
            dimension_semantics=("parallel",)),   # both TCs on v7x / megacore
    )(x_flat, w1, b1, w2, b2, wf, bf)


# ---------------------------------------------------------------------------
# One-time parameter preparation (outside the per-call path)
# ---------------------------------------------------------------------------
def _fuse_conv_pool_weight(w_oihw):
    """(Cout,Cin,3,3) conv weight -> (4,4,Cin,Cout) fused conv3x3(pad1)+avgpool2."""
    w = np.transpose(np.asarray(w_oihw, np.float32), (2, 3, 1, 0))  # (3,3,Ci,Co)
    cin, cout = w.shape[2], w.shape[3]
    weff = np.zeros((4, 4, cin, cout), np.float32)
    for s in (0, 1):
        for t in (0, 1):
            weff[s:s + 3, t:t + 3] += w
    return weff * 0.25


def _conv_pool_matrix(weff, hin):
    """Dense (hin*hin*Cin, hout*hout*Cout) matrix of the fused 4x4/stride-2
    conv (pad=1) acting on an NHWC-flattened input; hout = hin // 2."""
    cin, cout = weff.shape[2], weff.shape[3]
    hout = hin // 2
    t = np.zeros((hin, hin, cin, hout, hout, cout), np.float32)
    for ho in range(hout):
        for u in range(4):
            y = 2 * ho + u - 1
            if not 0 <= y < hin:
                continue
            for wo in range(hout):
                for v in range(4):
                    x = 2 * wo + v - 1
                    if not 0 <= x < hin:
                        continue
                    t[y, x, :, ho, wo, :] = weff[u, v]
    return t.reshape(hin * hin * cin, hout * hout * cout)


def prepare_params(params):
    weff1 = _fuse_conv_pool_weight(params["conv1_w"])        # (4,4,3,16)
    weff2 = _fuse_conv_pool_weight(params["conv2_w"])        # (4,4,16,32)
    w1 = _conv_pool_matrix(weff1, 16)                        # (768, 1024)
    w2 = _conv_pool_matrix(weff2, 8)                         # (1024, 512)
    b1 = np.tile(np.asarray(params["conv1_b"], np.float32), 64).reshape(1, 1024)
    b2 = np.tile(np.asarray(params["conv2_b"], np.float32), 16).reshape(1, 512)
    # torch flattens (B,32,4,4) as c*16 + ho*4 + wo; the kernel's h2 lanes are
    # ordered (ho*4 + wo)*32 + c, so permute fc weight rows accordingly and pad
    # N from 84 to 128 lanes (sliced back to 84 in the wrapper).
    wf = np.asarray(params["fc_w"], np.float32)              # (84, 512)
    wf = wf.reshape(84, 32, 4, 4).transpose(2, 3, 1, 0).reshape(512, 84)
    wf = np.pad(wf, ((0, 0), (0, 128 - 84)))
    bf = np.pad(np.asarray(params["fc_b"], np.float32),
                (0, 128 - 84)).reshape(1, 128)
    return {k: jnp.asarray(v) for k, v in
            {"w1": w1, "b1": b1, "w2": w2, "b2": b2, "wf": wf, "bf": bf}.items()}


def init_params(key):
    k1, k2, k3, k4, k5, k6 = jax.random.split(key, 6)
    # torch layouts: conv weight (Cout, Cin, 3, 3); linear weight (N, K)
    return {
        "conv1_w": jax.random.normal(k1, (16, 3, 3, 3), jnp.float32) * 0.1,
        "conv1_b": jax.random.normal(k2, (16,), jnp.float32) * 0.1,
        "conv2_w": jax.random.normal(k3, (32, 16, 3, 3), jnp.float32) * 0.1,
        "conv2_b": jax.random.normal(k4, (32,), jnp.float32) * 0.1,
        "fc_w":    jax.random.normal(k5, (84, 32 * 4 * 4), jnp.float32) * 0.05,
        "fc_b":    jax.random.normal(k6, (84,), jnp.float32) * 0.05,
    }


# ---------------------------------------------------------------------------
# Forward pass (mirrors PyTorch Model.forward)
# ---------------------------------------------------------------------------
@jax.jit
def model_forward(prepared, x_nchw):
    b, cin, h, w = x_nchw.shape
    assert (cin, h, w) == (3, 16, 16), "model is fixed to 3x16x16 inputs"
    x_flat = jnp.transpose(x_nchw, (0, 2, 3, 1)).reshape(b, h * w * cin)  # (B,768)
    tb = min(b, 128)                          # batch tile (MXU row block)
    bp = ((b + tb - 1) // tb) * tb
    if bp != b:                               # pad batch to a tile multiple
        x_flat = jnp.pad(x_flat, ((0, bp - b), (0, 0)))
    y = fused_forward(x_flat, prepared["w1"], prepared["b1"],
                      prepared["w2"], prepared["b2"],
                      prepared["wf"], prepared["bf"], block_b=tb)  # (Bp, 128)
    return y[:b, :84]


# ---------------------------------------------------------------------------
# Pure-XLA reference (for correctness checking only)
# ---------------------------------------------------------------------------
def reference_forward(params, x_nchw):
    hp = jax.lax.Precision.HIGHEST
    y = jax.lax.conv_general_dilated(
        x_nchw, params["conv1_w"], (1, 1), ((1, 1), (1, 1)),
        dimension_numbers=("NCHW", "OIHW", "NCHW"), precision=hp)
    y = y + params["conv1_b"][None, :, None, None]
    y = jax.lax.reduce_window(y, 0.0, jax.lax.add,
                              (1, 1, 2, 2), (1, 1, 2, 2), "VALID") * 0.25
    y = jax.lax.conv_general_dilated(
        y, params["conv2_w"], (1, 1), ((1, 1), (1, 1)),
        dimension_numbers=("NCHW", "OIHW", "NCHW"), precision=hp)
    y = y + params["conv2_b"][None, :, None, None]
    y = jax.lax.reduce_window(y, 0.0, jax.lax.add,
                              (1, 1, 2, 2), (1, 1, 2, 2), "VALID") * 0.25
    y = y.reshape(y.shape[0], -1)
    return jnp.dot(y, params["fc_w"].T, precision=hp) + params["fc_b"]


if __name__ == "__main__":
    key = jax.random.PRNGKey(0)
    pkey, xkey = jax.random.split(key)
    params = init_params(pkey)
    prepared = prepare_params(params)
    # input consistent with fc = Linear(32*4*4, 84): (B, 3, 16, 16)
    x = jax.random.normal(xkey, (2, 3, 16, 16), jnp.float32)

    out = model_forward(prepared, x)
    jax.block_until_ready(out)
    assert out.shape == (2, 84) and out.dtype == jnp.float32

    ref = reference_forward(params, x)
    max_err = float(jnp.max(jnp.abs(out - ref)))
    assert jnp.allclose(out, ref, atol=1e-2, rtol=1e-2), max_err
    print("KERNEL_OK")
</pallas_src>

<mosaic_0001>
module attributes {stable_mosaic.version = 11 : i64} {
  func.func @fused_forward_kernel(%arg0: i32, %arg1: memref<2x768xf32, #tpu.memory_space<vmem>>, %arg2: memref<768x1024xf32, #tpu.memory_space<vmem>>, %arg3: memref<1x1024xf32, #tpu.memory_space<vmem>>, %arg4: memref<1024x512xf32, #tpu.memory_space<vmem>>, %arg5: memref<1x512xf32, #tpu.memory_space<vmem>>, %arg6: memref<512x128xf32, #tpu.memory_space<vmem>>, %arg7: memref<1x128xf32, #tpu.memory_space<vmem>>, %arg8: memref<2x128xf32, #tpu.memory_space<vmem>>) attributes {dimension_semantics = [#tpu.dimension_semantics<parallel>], iteration_bounds = array<i64: 1>, scalar_prefetch = 0 : i64, scratch_operands = 0 : i64, tpu.core_type = #tpu.core_type<tc>, window_params = [{transform_indices = @transform_0, window_bounds = array<i64: 2, 768>}, {pipeline_mode = #tpu.pipeline_mode<synchronous>, transform_indices = @transform_1, window_bounds = array<i64: 768, 1024>}, {pipeline_mode = #tpu.pipeline_mode<synchronous>, transform_indices = @transform_2, window_bounds = array<i64: 1, 1024>}, {pipeline_mode = #tpu.pipeline_mode<synchronous>, transform_indices = @transform_3, window_bounds = array<i64: 1024, 512>}, {pipeline_mode = #tpu.pipeline_mode<synchronous>, transform_indices = @transform_4, window_bounds = array<i64: 1, 512>}, {pipeline_mode = #tpu.pipeline_mode<synchronous>, transform_indices = @transform_5, window_bounds = array<i64: 512, 128>}, {pipeline_mode = #tpu.pipeline_mode<synchronous>, transform_indices = @transform_6, window_bounds = array<i64: 1, 128>}, {transform_indices = @transform_7, window_bounds = array<i64: 2, 128>}]} {
    %c0 = arith.constant 0 : index
    %c0_0 = arith.constant 0 : index
    %0 = vector.load %arg3[%c0, %c0_0] : memref<1x1024xf32, #tpu.memory_space<vmem>>, vector<1x1024xf32>
    %c0_1 = arith.constant 0 : index
    %c0_2 = arith.constant 0 : index
    %1 = vector.load %arg5[%c0_1, %c0_2] : memref<1x512xf32, #tpu.memory_space<vmem>>, vector<1x512xf32>
    %c0_3 = arith.constant 0 : index
    %c0_4 = arith.constant 0 : index
    %2 = vector.load %arg7[%c0_3, %c0_4] : memref<1x128xf32, #tpu.memory_space<vmem>>, vector<1x128xf32>
    %c0_5 = arith.constant 0 : index
    %c0_6 = arith.constant 0 : index
    %3 = vector.load %arg1[%c0_5, %c0_6] : memref<2x768xf32, #tpu.memory_space<vmem>>, vector<2x768xf32>
    %c0_7 = arith.constant 0 : index
    %c0_8 = arith.constant 0 : index
    %4 = vector.load %arg2[%c0_7, %c0_8] : memref<768x1024xf32, #tpu.memory_space<vmem>>, vector<768x1024xf32>
    %cst = arith.constant dense<0.000000e+00> : vector<2x1024xf32>
    %5 = tpu.matmul %3, %4, %cst {dimension_numbers = #tpu.dot_dimension_numbers<[1], [0], [0], [1], [0, 0, 1, 1], [], []>} : vector<2x768xf32>, vector<768x1024xf32>, vector<2x1024xf32> -> vector<2x1024xf32>
    %6 = vector.broadcast %0 : vector<1x1024xf32> to vector<2x1024xf32>
    %7 = arith.addf %5, %6 : vector<2x1024xf32>
    %c0_9 = arith.constant 0 : index
    %c0_10 = arith.constant 0 : index
    %8 = vector.load %arg4[%c0_9, %c0_10] : memref<1024x512xf32, #tpu.memory_space<vmem>>, vector<1024x512xf32>
    %cst_11 = arith.constant dense<0.000000e+00> : vector<2x512xf32>
    %9 = tpu.matmul %7, %8, %cst_11 {dimension_numbers = #tpu.dot_dimension_numbers<[1], [0], [0], [1], [0, 0, 1, 1], [], []>} : vector<2x1024xf32>, vector<1024x512xf32>, vector<2x512xf32> -> vector<2x512xf32>
    %10 = vector.broadcast %1 : vector<1x512xf32> to vector<2x512xf32>
    %11 = arith.addf %9, %10 : vector<2x512xf32>
    %c0_12 = arith.constant 0 : index
    %c0_13 = arith.constant 0 : index
    %12 = vector.load %arg6[%c0_12, %c0_13] : memref<512x128xf32, #tpu.memory_space<vmem>>, vector<512x128xf32>
    %cst_14 = arith.constant dense<0.000000e+00> : vector<2x128xf32>
    %13 = tpu.matmul %11, %12, %cst_14 {dimension_numbers = #tpu.dot_dimension_numbers<[1], [0], [0], [1], [0, 0, 1, 1], [], []>} : vector<2x512xf32>, vector<512x128xf32>, vector<2x128xf32> -> vector<2x128xf32>
    %14 = vector.broadcast %2 : vector<1x128xf32> to vector<2x128xf32>
    %15 = arith.addf %13, %14 : vector<2x128xf32>
    %c0_15 = arith.constant 0 : index
    %c0_16 = arith.constant 0 : index
    %16 = vector.load %arg8[%c0_15, %c0_16] : memref<2x128xf32, #tpu.memory_space<vmem>>, vector<2x128xf32>
    tpu.vector_store %arg8[%c0_15, %c0_16], %15 {strides = array<i32>} : memref<2x128xf32, #tpu.memory_space<vmem>>, vector<2x128xf32>,
    return
  }
  func.func @transform_0(%arg0: i32) -> (i32, i32) {
    %c0_i32 = arith.constant 0 : i32
    %c0_i32_0 = arith.constant 0 : i32
    return %arg0, %c0_i32 : i32, i32
  }
  func.func @transform_1(%arg0: i32) -> (i32, i32) {
    %c0_i32 = arith.constant 0 : i32
    %c0_i32_0 = arith.constant 0 : i32
    %c0_i32_1 = arith.constant 0 : i32
    return %c0_i32, %c0_i32_0 : i32, i32
  }
  func.func @transform_2(%arg0: i32) -> (i32, i32) {
    %c0_i32 = arith.constant 0 : i32
    %c0_i32_0 = arith.constant 0 : i32
    %c0_i32_1 = arith.constant 0 : i32
    return %c0_i32, %c0_i32_0 : i32, i32
  }
  func.func @transform_3(%arg0: i32) -> (i32, i32) {
    %c0_i32 = arith.constant 0 : i32
    %c0_i32_0 = arith.constant 0 : i32
    %c0_i32_1 = arith.constant 0 : i32
    return %c0_i32, %c0_i32_0 : i32, i32
  }
  func.func @transform_4(%arg0: i32) -> (i32, i32) {
    %c0_i32 = arith.constant 0 : i32
    %c0_i32_0 = arith.constant 0 : i32
    %c0_i32_1 = arith.constant 0 : i32
    return %c0_i32, %c0_i32_0 : i32, i32
  }
  func.func @transform_5(%arg0: i32) -> (i32, i32) {
    %c0_i32 = arith.constant 0 : i32
    %c0_i32_0 = arith.constant 0 : i32
    %c0_i32_1 = arith.constant 0 : i32
    return %c0_i32, %c0_i32_0 : i32, i32
  }
  func.func @transform_6(%arg0: i32) -> (i32, i32) {
    %c0_i32 = arith.constant 0 : i32
    %c0_i32_0 = arith.constant 0 : i32
    %c0_i32_1 = arith.constant 0 : i32
    return %c0_i32, %c0_i32_0 : i32, i32
  }
  func.func @transform_7(%arg0: i32) -> (i32, i32) {
    %c0_i32 = arith.constant 0 : i32
    %c0_i32_0 = arith.constant 0 : i32
    return %arg0, %c0_i32 : i32, i32
  }
}

</mosaic_0001>

<bundles_post_ra>
// kernel: model_forward.1
= control target key start
LH: loop header
LB: loop body
LE: loop exit
PB: predicated region body
PF: predicated region fallthrough
CT: control target
= control target key end

     0   :  { %12 = vsyncpa [#allocation3], 0  ;;  %s5016_s0 = inlined_call_operand.vmem [shape: f32[2,768], index: 0, kind: input, shape index: {}]   ;;  %s5017_s1 = inlined_call_operand.hbm [shape: f32[768,1024], index: 1, kind: input, shape index: {}]   ;;  %s5018_s2 = inlined_call_operand.hbm [shape: f32[1,1024], index: 2, kind: input, shape index: {}]   ;;  %s5019_s3 = inlined_call_operand.hbm [shape: f32[1024,512], index: 3, kind: input, shape index: {}]   ;;  %s5020_s4 = inlined_call_operand.hbm [shape: f32[1,512], index: 4, kind: input, shape index: {}]   ;;  %s5021_s5 = inlined_call_operand.hbm [shape: f32[512,128], index: 5, kind: input, shape index: {}]   ;;  %s5022_s6 = inlined_call_operand.hbm [shape: f32[1,128], index: 6, kind: input, shape index: {}]   ;;  %s5023_s7 = inlined_call_operand.hbm [shape: f32[2,128], index: 7, kind: output, shape index: {}]  }
   0x1   :  { %13 = vsyncpa [#allocation6], 0 }
   0x2   :  { %14 = vsyncpa [#allocation9], 0 }
   0x3   :  { %15 = vsyncpa [#allocation12], 0 }
   0x4   :  { %16 = vsyncpa [#allocation4], 0  ;;  %s4769_s24 = smov [#allocation5]   ;;  %s4770_s26 = smov [#allocation8]  }
   0x5   :  { %s37_s25 = sshll.u32 %s4769_s24, 4  ;;  %s59_s27 = sshll.u32 %s4770_s26, 4  ;;  %s38_s25 = int_to_ptr.vmem [resolvable:$true] %s37_s25  ;;  %s60_s27 = int_to_ptr.vmem [resolvable:$true] %s59_s27 }
   0x6   :  { %s4605_s30 = scalar_lea.hbm %s5018_s2, 128 }
   0x7   :  { %p4606_p0 = scmp.ne.s32.totalorder %s5018_s2, %s4605_s30  ;;  %p4609_p1 = scmp.lt.u32.totalorder %s4605_s30, %s5018_s2 }
   0x9   :  { %p4611_p2 = pnand %p4609_p1, %p4606_p0 }
   0xb   :  { %4614 = shalt.err (!%p4611_p2)
}
   0xc   :  { %s4615_s12 = scalar_lea.vmem %s38_s25, 128  ;;  %p4620_p4 = scmp.lt.s32.totalorder %s38_s25, %s38_s25 }
   0xd   :  { %p4616_p3 = scmp.ne.s32.totalorder %s38_s25, %s4615_s12  ;;  %p4621_p5 = scmp.lt.s32.totalorder %s4615_s12, %s4615_s12 }
   0xf   :  { %p4622_p6 = por %p4621_p5, %p4620_p4 }
  0x11   :  { %p4623_p7 = pnand %p4622_p6, %p4616_p3 }
  0x13   :  { %4626 = shalt.err (!%p4623_p7)
}
  0x14   :  { %40 = dma.hbm_to_vmem [thread:$0]  %s5018_s2, 128, %s38_s25, [#allocation6]  }
  0x15   :  { %s4627_s17 = scalar_lea.hbm %s5020_s4, 64 }
  0x16   :  { %p4628_p8 = scmp.ne.s32.totalorder %s5020_s4, %s4627_s17  ;;  %p4631_p9 = scmp.lt.u32.totalorder %s4627_s17, %s5020_s4 }
  0x18   :  { %p4633_p10 = pnand %p4631_p9, %p4628_p8 }
  0x1a   :  { %4636 = shalt.err (!%p4633_p10)
}
  0x1b   :  { %s4637_s22 = scalar_lea.vmem %s60_s27, 64  ;;  %p4642_p12 = scmp.lt.s32.totalorder %s60_s27, %s60_s27 }
  0x1c   :  { %p4638_p11 = scmp.ne.s32.totalorder %s60_s27, %s4637_s22  ;;  %p4643_p13 = scmp.lt.s32.totalorder %s4637_s22, %s4637_s22 }
  0x1e   :  { %p4644_p0 = por %p4643_p13, %p4642_p12 }
  0x20   :  { %p4645_p1 = pnand %p4644_p0, %p4638_p11 }
  0x22   :  { %4648 = shalt.err (!%p4645_p1)
}
  0x23   :  { %62 = dma.hbm_to_vmem [thread:$0]  %s5020_s4, 64, %s60_s27, [#allocation9]  }
  0x24   :  { %s4771_s24 = smov [#allocation2]   ;;  %s4649_s29 = scalar_lea.hbm %s5017_s1, 98304 }
  0x25   :  { %s24_s25 = sshll.u32 %s4771_s24, 4  ;;  %p4650_p2 = scmp.ne.s32.totalorder %s5017_s1, %s4649_s29  ;;  %s25_s25 = int_to_ptr.vmem [resolvable:$true] %s24_s25 }
  0x26   :  { %p4653_p3 = scmp.lt.u32.totalorder %s4649_s29, %s5017_s1 }
  0x28   :  { %p4655_p4 = pnand %p4653_p3, %p4650_p2 }
  0x2a   :  { %4658 = shalt.err (!%p4655_p4)
}
  0x2b   :  { %s4659_s11 = scalar_lea.vmem %s25_s25, 98304  ;;  %p4664_p6 = scmp.lt.s32.totalorder %s25_s25, %s25_s25 }
  0x2c   :  { %p4660_p5 = scmp.ne.s32.totalorder %s25_s25, %s4659_s11  ;;  %p4665_p7 = scmp.lt.s32.totalorder %s4659_s11, %s4659_s11 }
  0x2e   :  { %p4666_p8 = por %p4665_p7, %p4664_p6 }
  0x30   :  { %p4667_p9 = pnand %p4666_p8, %p4660_p5 }
  0x32   :  { %4670 = shalt.err (!%p4667_p9)
}
  0x33   :  { %s4772_s4 = smov 1024   ;;  %s4773_s27 = smov 64  }
  0x34   :  { %30 = dma.hbm_to_vmem [thread:$0]  %s5017_s1, 98304, %s25_s25, [#allocation3], %s4772_s4, %s4772_s4, %s4773_s27  }
  0x35   :  { %s4774_s14 = smov [#allocation7]   ;;  %s4671_s18 = scalar_lea.hbm %s5019_s3, 65536 }
  0x36   :  { %s46_s15 = sshll.u32 %s4774_s14, 4  ;;  %p4672_p10 = scmp.ne.s32.totalorder %s5019_s3, %s4671_s18  ;;  %s47_s15 = int_to_ptr.vmem [resolvable:$true] %s46_s15 }
  0x37   :  { %p4675_p11 = scmp.lt.u32.totalorder %s4671_s18, %s5019_s3 }
  0x39   :  { %p4677_p12 = pnand %p4675_p11, %p4672_p10 }
  0x3b   :  { %4680 = shalt.err (!%p4677_p12)
}
  0x3c   :  { %s4681_s2 = scalar_lea.vmem %s47_s15, 65536  ;;  %p4686_p0 = scmp.lt.s32.totalorder %s47_s15, %s47_s15 }
  0x3d   :  { %p4682_p13 = scmp.ne.s32.totalorder %s47_s15, %s4681_s2  ;;  %p4687_p1 = scmp.lt.s32.totalorder %s4681_s2, %s4681_s2 }
  0x3f   :  { %p4688_p2 = por %p4687_p1, %p4686_p0 }
  0x41   :  { %p4689_p3 = pnand %p4688_p2, %p4682_p13 }
  0x43   :  { %4692 = shalt.err (!%p4689_p3)
}
  0x44   :  { %s4775_s1 = smov 512   ;;  %s4776_s23 = smov 32  }
  0x45   :  { %52 = dma.hbm_to_vmem [thread:$0]  %s5019_s3, 65536, %s47_s15, [#allocation6], %s4775_s1, %s4775_s1, %s4776_s23  }
  0x46   :  { %s4777_s26 = smov [#allocation10]   ;;  %s4693_s8 = scalar_lea.hbm %s5021_s5, 8192 }
  0x47   :  { %s68_s28 = sshll.u32 %s4777_s26, 4  ;;  %p4694_p4 = scmp.ne.s32.totalorder %s5021_s5, %s4693_s8  ;;  %s69_s28 = int_to_ptr.vmem [resolvable:$true] %s68_s28 }
  0x48   :  { %p4697_p5 = scmp.lt.u32.totalorder %s4693_s8, %s5021_s5 }
  0x4a   :  { %p4699_p6 = pnand %p4697_p5, %p4694_p4 }
  0x4c   :  { %4702 = shalt.err (!%p4699_p6)
}
  0x4d   :  { %s4703_s27 = scalar_lea.vmem %s69_s28, 8192  ;;  %p4708_p8 = scmp.lt.s32.totalorder %s69_s28, %s69_s28 }
  0x4e   :  { %p4704_p7 = scmp.ne.s32.totalorder %s69_s28, %s4703_s27  ;;  %p4709_p9 = scmp.lt.s32.totalorder %s4703_s27, %s4703_s27 }
  0x50   :  { %p4710_p10 = por %p4709_p9, %p4708_p8 }
  0x52   :  { %p4711_p11 = pnand %p4710_p10, %p4704_p7 }
  0x54   :  { %4714 = shalt.err (!%p4711_p11)
}
  0x55   :  { %s4778_s3 = smov 128   ;;  %s4779_s12 = smov 8  }
  0x56   :  { %74 = dma.hbm_to_vmem [thread:$0]  %s5021_s5, 8192, %s69_s28, [#allocation9], %s4778_s3, %s4778_s3, %s4779_s12  }
  0x57   :  { %s4780_s15 = smov [#allocation11]   ;;  %s4715_s19 = scalar_lea.hbm %s5022_s6, 16 }
  0x58   :  { %s81_s16 = sshll.u32 %s4780_s15, 4  ;;  %p4716_p12 = scmp.ne.s32.totalorder %s5022_s6, %s4715_s19  ;;  %s82_s16 = int_to_ptr.vmem [resolvable:$true] %s81_s16 }
  0x59   :  { %p4719_p13 = scmp.lt.u32.totalorder %s4715_s19, %s5022_s6 }
  0x5b   :  { %p4721_p0 = pnand %p4719_p13, %p4716_p12 }
  0x5d   :  { %4724 = shalt.err (!%p4721_p0)
}
  0x5e   :  { %s4725_s1 = scalar_lea.vmem %s82_s16, 16  ;;  %s4729_s5 = scalar_lea.vmem %s82_s16, 32 }
  0x5f   :  { %p4726_p1 = scmp.ne.s32.totalorder %s82_s16, %s4725_s1  ;;  %p4730_p2 = scmp.lt.s32.totalorder %s82_s16, %s82_s16 }
  0x60   :  { %p4731_p3 = scmp.lt.s32.totalorder %s4729_s5, %s4725_s1 }
  0x62   :  { %p4732_p4 = por %p4731_p3, %p4730_p2 }
  0x64   :  { %p4733_p5 = pnand %p4732_p4, %p4726_p1 }
  0x66   :  { %4736 = shalt.err (!%p4733_p5)
}
  0x67   :  { %84 = dma.hbm_to_vmem [thread:$0]  %s5022_s6, 16, %s82_s16, [#allocation12]  }
  0x68   :  { %4759 = dma.done.wait [#allocation3], 98304  }
  0x69   :  { %4760 = vsyncadd [#allocation3], 4294868992 }
  0x6a   :  { %4761 = dma.done.wait [#allocation6], 65664  }
  0x6b   :  { %4762 = vsyncadd [#allocation6], 4294901632 }
  0x6c   :  { %4763 = dma.done.wait [#allocation9], 8256  }
  0x6d   :  { %4764 = vsyncadd [#allocation9], 4294959040 }
  0x6e   :  { %4765 = dma.done.wait [#allocation12], 16  }
  0x6f   :  { %4766 = vsyncadd [#allocation12], 4294967280  ;;  %v109_v0 = vld [vmem:[#allocation2 + $0x8] sm:$0xff]  ;;  %v111_v2 = vld [vmem:[#allocation2 + $0x18] sm:$0xff] }
  0x70   :  { %v117_v1 = vld [vmem:[#allocation2 + $0x48] sm:$0xff]  ;;  %v119_v4 = vld [vmem:[#allocation2 + $0x58] sm:$0xff]  ;;  %v108_v5 = vld [vmem:[#allocation2] sm:$0xff] }
  0x71   :  { %v3204_v3 = vpack.c.bf16 %v117_v1, %v109_v0  ;;  %v116_v6 = vld [vmem:[#allocation2 + $0x40] sm:$0xff]  ;;  %v3396_v7 = vpack.c.bf16 %v119_v4, %v111_v2  ;;  %v110_v9 = vld [vmem:[#allocation2 + $0x10] sm:$0xff]  ;;  %v125_v11 = vld [vmem:[#allocation2 + $0x88] sm:$0xff] }
  0x72   :  { %v3206_v8 = vpack.c.bf16 %v116_v6, %v108_v5  ;;  %v118_v10 = vld [vmem:[#allocation2 + $0x50] sm:$0xff]  ;;  %v133_v13 = vld [vmem:[#allocation2 + $0xc8] sm:$0xff]  ;;  %v127_v14 = vld [vmem:[#allocation2 + $0x98] sm:$0xff] }
  0x73   :  { %3205 = vmatprep.subr.bf16.mxu0 %v3204_v3  ;;  %v3398_v12 = vpack.c.bf16 %v118_v10, %v110_v9  ;;  %v135_v15 = vld [vmem:[#allocation2 + $0xd8] sm:$0xff]  ;;  %3397 = vmatprep.subr.bf16.mxu1 %v3396_v7  ;;  %v3208_v16 = vpack.c.bf16 %v133_v13, %v125_v11  ;;  %v124_v18 = vld [vmem:[#allocation2 + $0x80] sm:$0xff]  ;;  %v126_v20 = vld [vmem:[#allocation2 + $0x90] sm:$0xff] }
  0x74   :  { %3207 = vmatpush1.bf16.msra.mxu0 %v3206_v8  ;;  %v3400_v17 = vpack.c.bf16 %v135_v15, %v127_v14  ;;  %v132_v19 = vld [vmem:[#allocation2 + $0xc0] sm:$0xff]  ;;  %v134_v22 = vld [vmem:[#allocation2 + $0xd0] sm:$0xff]  ;;  %v141_v23 = vld [vmem:[#allocation2 + $0x108] sm:$0xff] }
  0x75   :  { %3399 = vmatpush1.bf16.msra.mxu1 %v3398_v12  ;;  %v3210_v21 = vpack.c.bf16 %v132_v19, %v124_v18  ;;  %v149_v24 = vld [vmem:[#allocation2 + $0x148] sm:$0xff]  ;;  %3209 = vmatprep.subr.bf16.mxu0 %v3208_v16  ;;  %v3402_v25 = vpack.c.bf16 %v134_v22, %v126_v20  ;;  %v143_v27 = vld [vmem:[#allocation2 + $0x118] sm:$0xff]  ;;  %v140_v29 = vld [vmem:[#allocation2 + $0x100] sm:$0xff] }
  0x76   :  { %3401 = vmatprep.subr.bf16.mxu1 %v3400_v17  ;;  %v3212_v26 = vpack.c.bf16 %v149_v24, %v141_v23  ;;  %v151_v28 = vld [vmem:[#allocation2 + $0x158] sm:$0xff]  ;;  %v148_v31 = vld [vmem:[#allocation2 + $0x140] sm:$0xff]  ;;  %v142_v32 = vld [vmem:[#allocation2 + $0x110] sm:$0xff] }
  0x77   :  { %v3404_v30 = vpack.c.bf16 %v151_v28, %v143_v27  ;;  %v150_v33 = vld [vmem:[#allocation2 + $0x150] sm:$0xff]  ;;  %v3214_v34 = vpack.c.bf16 %v148_v31, %v140_v29  ;;  %v157_v35 = vld [vmem:[#allocation2 + $0x188] sm:$0xff]  ;;  %v159_v37 = vld [vmem:[#allocation2 + $0x198] sm:$0xff] }
  0x78   :  { %3211 = vmatpush1.bf16.msra.mxu0 %v3210_v21  ;;  %v165_v36 = vld [vmem:[#allocation2 + $0x1c8] sm:$0xff]  ;;  %v3406_v38 = vpack.c.bf16 %v150_v33, %v142_v32  ;;  %v167_v40 = vld [vmem:[#allocation2 + $0x1d8] sm:$0xff]  ;;  %v156_v41 = vld [vmem:[#allocation2 + $0x180] sm:$0xff] }
  0x79   :  { %3403 = vmatpush1.bf16.msra.mxu1 %v3402_v25  ;;  %3213 = vmatprep.subr.bf16.mxu0 %v3212_v26  ;;  %v3216_v39 = vpack.c.bf16 %v165_v36, %v157_v35  ;;  %v164_v42 = vld [vmem:[#allocation2 + $0x1c0] sm:$0xff]  ;;  %v3408_v43 = vpack.c.bf16 %v167_v40, %v159_v37  ;;  %v158_v44 = vld [vmem:[#allocation2 + $0x190] sm:$0xff]  ;;  %v173_v46 = vld [vmem:[#allocation2 + $0x208] sm:$0xff] }
  0x7a   :  { %3405 = vmatprep.subr.bf16.mxu1 %v3404_v30  ;;  %v166_v45 = vld [vmem:[#allocation2 + $0x1d0] sm:$0xff]  ;;  %v181_v47 = vld [vmem:[#allocation2 + $0x248] sm:$0xff]  ;;  %v175_v48 = vld [vmem:[#allocation2 + $0x218] sm:$0xff]  ;;  %v3218_v50 = vpack.c.bf16 %v164_v42, %v156_v41 }
  0x7b   :  { %v183_v49 = vld [vmem:[#allocation2 + $0x258] sm:$0xff]  ;;  %v3410_v51 = vpack.c.bf16 %v166_v45, %v158_v44  ;;  %v3220_v52 = vpack.c.bf16 %v181_v47, %v173_v46  ;;  %v172_v53 = vld [vmem:[#allocation2 + $0x200] sm:$0xff]  ;;  %v174_v55 = vld [vmem:[#allocation2 + $0x210] sm:$0xff]  ;;  %v877_v46 = vlaneseq  ;;  %v4781_v47 = vmov 1983009808  }
  0x7c   :  { %3215 = vmatpush1.bf16.msra.mxu0 %v3214_v34  ;;  %v180_v54 = vld [vmem:[#allocation2 + $0x240] sm:$0xff]  ;;  %v3412_v56 = vpack.c.bf16 %v183_v49, %v175_v48  ;;  %v182_v57 = vld [vmem:[#allocation2 + $0x250] sm:$0xff]  ;;  %v189_v58 = vld [vmem:[#allocation2 + $0x288] sm:$0xff]  ;;  %v921_v48 = vunpack.c.l.s4 %v4781_v47 }
  0x7d   :  { %3407 = vmatpush1.bf16.msra.mxu1 %v3406_v38  ;;  %3217 = vmatprep.subr.bf16.mxu0 %v3216_v39  ;;  %v197_v59 = vld [vmem:[#allocation2 + $0x2c8] sm:$0xff]  ;;  %v191_v60 = vld [vmem:[#allocation2 + $0x298] sm:$0xff]  ;;  %v3222_v62 = vpack.c.bf16 %v180_v54, %v172_v53  ;;  %v3414_v63 = vpack.c.bf16 %v182_v57, %v174_v55  ;;  %v188_v1 = vld [vmem:[#allocation2 + $0x280] sm:$0xff] }
  0x7e   :  { %3409 = vmatprep.subr.bf16.mxu1 %v3408_v43  ;;  %v199_v61 = vld [vmem:[#allocation2 + $0x2d8] sm:$0xff]  ;;  %v3224_v0 = vpack.c.bf16 %v197_v59, %v189_v58  ;;  %v196_v2 = vld [vmem:[#allocation2 + $0x2c0] sm:$0xff]  ;;  %v190_v3 = vld [vmem:[#allocation2 + $0x290] sm:$0xff] }
  0x7f   :  { %v3416_v4 = vpack.c.bf16 %v199_v61, %v191_v60  ;;  %v198_v5 = vld [vmem:[#allocation2 + $0x2d0] sm:$0xff]  ;;  %v205_v6 = vld [vmem:[#allocation2 + $0x308] sm:$0xff]  ;;  %v207_v8 = vld [vmem:[#allocation2 + $0x318] sm:$0xff]  ;;  %v3226_v10 = vpack.c.bf16 %v196_v2, %v188_v1  ;;  %v4895_v61 = vshrl.u32 %v877_v46, 7 }
  0x80   :  { %3219 = vmatpush1.bf16.msra.mxu0 %v3218_v50  ;;  %v213_v7 = vld [vmem:[#allocation2 + $0x348] sm:$0xff]  ;;  %v215_v9 = vld [vmem:[#allocation2 + $0x358] sm:$0xff]  ;;  %v3418_v11 = vpack.c.bf16 %v198_v5, %v190_v3  ;;  %v204_v13 = vld [vmem:[#allocation2 + $0x300] sm:$0xff] }
  0x81   :  { %3411 = vmatpush1.bf16.msra.mxu1 %v3410_v51  ;;  %3221 = vmatprep.subr.bf16.mxu0 %v3220_v52  ;;  %v3228_v12 = vpack.c.bf16 %v213_v7, %v205_v6  ;;  %v212_v14 = vld [vmem:[#allocation2 + $0x340] sm:$0xff]  ;;  %v206_v15 = vld [vmem:[#allocation2 + $0x310] sm:$0xff]  ;;  %v3420_v16 = vpack.c.bf16 %v215_v9, %v207_v8  ;;  %v221_v18 = vld [vmem:[#allocation2 + $0x388] sm:$0xff] }
  0x82   :  { %3413 = vmatprep.subr.bf16.mxu1 %v3412_v56  ;;  %v214_v17 = vld [vmem:[#allocation2 + $0x350] sm:$0xff]  ;;  %v229_v19 = vld [vmem:[#allocation2 + $0x3c8] sm:$0xff]  ;;  %v223_v20 = vld [vmem:[#allocation2 + $0x398] sm:$0xff]  ;;  %v3230_v22 = vpack.c.bf16 %v212_v14, %v204_v13 }
  0x83   :  { %v231_v21 = vld [vmem:[#allocation2 + $0x3d8] sm:$0xff]  ;;  %v3422_v23 = vpack.c.bf16 %v214_v17, %v206_v15  ;;  %v3232_v24 = vpack.c.bf16 %v229_v19, %v221_v18  ;;  %v220_v25 = vld [vmem:[#allocation2 + $0x380] sm:$0xff]  ;;  %v222_v27 = vld [vmem:[#allocation2 + $0x390] sm:$0xff] }
  0x84   :  { %3223 = vmatpush1.bf16.msra.mxu0 %v3222_v62  ;;  %v228_v26 = vld [vmem:[#allocation2 + $0x3c0] sm:$0xff]  ;;  %v3424_v28 = vpack.c.bf16 %v231_v21, %v223_v20  ;;  %v230_v29 = vld [vmem:[#allocation2 + $0x3d0] sm:$0xff]  ;;  %v237_v30 = vld [vmem:[#allocation2 + $0x408] sm:$0xff]  ;;  %v922_v62 = vunpack.c.0.s8 %v921_v48 }
  0x85   :  { %3415 = vmatpush1.bf16.msra.mxu1 %v3414_v63  ;;  %3225 = vmatprep.subr.bf16.mxu0 %v3224_v0  ;;  %v245_v31 = vld [vmem:[#allocation2 + $0x448] sm:$0xff]  ;;  %v239_v32 = vld [vmem:[#allocation2 + $0x418] sm:$0xff]  ;;  %v3234_v34 = vpack.c.bf16 %v228_v26, %v220_v25  ;;  %v3426_v35 = vpack.c.bf16 %v230_v29, %v222_v27  ;;  %v236_v37 = vld [vmem:[#allocation2 + $0x400] sm:$0xff] }
  0x86   :  { %3417 = vmatprep.subr.bf16.mxu1 %v3416_v4  ;;  %v247_v33 = vld [vmem:[#allocation2 + $0x458] sm:$0xff]  ;;  %v3236_v36 = vpack.c.bf16 %v245_v31, %v237_v30  ;;  %v244_v38 = vld [vmem:[#allocation2 + $0x440] sm:$0xff]  ;;  %v238_v39 = vld [vmem:[#allocation2 + $0x410] sm:$0xff] }
  0x87   :  { %v3428_v40 = vpack.c.bf16 %v247_v33, %v239_v32  ;;  %v246_v41 = vld [vmem:[#allocation2 + $0x450] sm:$0xff]  ;;  %v253_v42 = vld [vmem:[#allocation2 + $0x488] sm:$0xff]  ;;  %v255_v44 = vld [vmem:[#allocation2 + $0x498] sm:$0xff]  ;;  %v3238_v49 = vpack.c.bf16 %v244_v38, %v236_v37 }
  0x88   :  { %3227 = vmatpush1.bf16.msra.mxu0 %v3226_v10  ;;  %v261_v43 = vld [vmem:[#allocation2 + $0x4c8] sm:$0xff]  ;;  %v263_v45 = vld [vmem:[#allocation2 + $0x4d8] sm:$0xff]  ;;  %v3430_v50 = vpack.c.bf16 %v246_v41, %v238_v39  ;;  %v252_v52 = vld [vmem:[#allocation2 + $0x480] sm:$0xff] }
  0x89   :  { %3419 = vmatpush1.bf16.msra.mxu1 %v3418_v11  ;;  %3229 = vmatprep.subr.bf16.mxu0 %v3228_v12  ;;  %v3240_v51 = vpack.c.bf16 %v261_v43, %v253_v42  ;;  %v260_v53 = vld [vmem:[#allocation2 + $0x4c0] sm:$0xff]  ;;  %v254_v54 = vld [vmem:[#allocation2 + $0x490] sm:$0xff]  ;;  %v3432_v55 = vpack.c.bf16 %v263_v45, %v255_v44  ;;  %v269_v57 = vld [vmem:[#allocation2 + $0x508] sm:$0xff]  ;;  %v4898_v11 = vsub.s32 %v922_v62, %v4895_v61 }
  0x8a   :  { %3421 = vmatprep.subr.bf16.mxu1 %v3420_v16  ;;  %v262_v56 = vld [vmem:[#allocation2 + $0x4d0] sm:$0xff]  ;;  %v277_v58 = vld [vmem:[#allocation2 + $0x548] sm:$0xff]  ;;  %v271_v59 = vld [vmem:[#allocation2 + $0x518] sm:$0xff]  ;;  %v3242_v63 = vpack.c.bf16 %v260_v53, %v252_v52 }
  0x8b   :  { %v279_v60 = vld [vmem:[#allocation2 + $0x558] sm:$0xff]  ;;  %v3434_v0 = vpack.c.bf16 %v262_v56, %v254_v54  ;;  %v3244_v1 = vpack.c.bf16 %v277_v58, %v269_v57  ;;  %v268_v2 = vld [vmem:[#allocation2 + $0x500] sm:$0xff]  ;;  %v270_v4 = vld [vmem:[#allocation2 + $0x510] sm:$0xff] }
  0x8c   :  { %3231 = vmatpush1.bf16.msra.mxu0 %v3230_v22  ;;  %v276_v3 = vld [vmem:[#allocation2 + $0x540] sm:$0xff]  ;;  %v3436_v5 = vpack.c.bf16 %v279_v60, %v271_v59  ;;  %v278_v6 = vld [vmem:[#allocation2 + $0x550] sm:$0xff]  ;;  %v285_v7 = vld [vmem:[#allocation2 + $0x588] sm:$0xff] }
  0x8d   :  { %3423 = vmatpush1.bf16.msra.mxu1 %v3422_v23  ;;  %3233 = vmatprep.subr.bf16.mxu0 %v3232_v24  ;;  %v293_v8 = vld [vmem:[#allocation2 + $0x5c8] sm:$0xff]  ;;  %v287_v9 = vld [vmem:[#allocation2 + $0x598] sm:$0xff]  ;;  %v3246_v12 = vpack.c.bf16 %v276_v3, %v268_v2  ;;  %v284_v13 = vld [vmem:[#allocation2 + $0x580] sm:$0xff]  ;;  %v3438_v14 = vpack.c.bf16 %v278_v6, %v270_v4 }
  0x8e   :  { %3425 = vmatprep.subr.bf16.mxu1 %v3424_v28  ;;  %v295_v10 = vld [vmem:[#allocation2 + $0x5d8] sm:$0xff]  ;;  %v3248_v15 = vpack.c.bf16 %v293_v8, %v285_v7  ;;  %v292_v16 = vld [vmem:[#allocation2 + $0x5c0] sm:$0xff]  ;;  %v286_v17 = vld [vmem:[#allocation2 + $0x590] sm:$0xff] }
  0x8f   :  { %v294_v18 = vld [vmem:[#allocation2 + $0x5d0] sm:$0xff]  ;;  %v3440_v19 = vpack.c.bf16 %v295_v10, %v287_v9  ;;  %v301_v20 = vld [vmem:[#allocation2 + $0x608] sm:$0xff]  ;;  %v4903_v22 = vld [vmem:[%s5016_s0] sm:$0xff]  ;;  %v3250_v26 = vpack.c.bf16 %v292_v16, %v284_v13 }
  0x90   :  { %3235 = vmatpush1.bf16.msra.mxu0 %v3234_v34  ;;  %v309_v21 = vld [vmem:[#allocation2 + $0x648] sm:$0xff]  ;;  %v303_v23 = vld [vmem:[#allocation2 + $0x618] sm:$0xff]  ;;  %v4907_v25 = vrot.slane %v4903_v22, %v4898_v11  ;;  %v3442_v27 = vpack.c.bf16 %v294_v18, %v286_v17  ;;  %v300_v29 = vld [vmem:[#allocation2 + $0x600] sm:$0xff]  ;;  %v919_v10 = vcombine.high %v4903_v22, %v4903_v22 }
  0x91   :  { %3427 = vmatpush1.bf16.msra.mxu1 %v3426_v35  ;;  %3237 = vmatprep.subr.bf16.mxu0 %v3236_v36  ;;  %v311_v24 = vld [vmem:[#allocation2 + $0x658] sm:$0xff]  ;;  %v3252_v28 = vpack.c.bf16 %v309_v21, %v301_v20  ;;  %v308_v30 = vld [vmem:[#allocation2 + $0x640] sm:$0xff]  ;;  %v302_v31 = vld [vmem:[#allocation2 + $0x610] sm:$0xff] }
  0x92   :  { %3429 = vmatprep.subr.bf16.mxu1 %v3428_v40  ;;  %v4911_v32 = vcombine.high %v4907_v25, %v4907_v25  ;;  %v3444_v33 = vpack.c.bf16 %v311_v24, %v303_v23  ;;  %v310_v34 = vld [vmem:[#allocation2 + $0x650] sm:$0xff]  ;;  %v317_v35 = vld [vmem:[#allocation2 + $0x688] sm:$0xff]  ;;  %v319_v37 = vld [vmem:[#allocation2 + $0x698] sm:$0xff]  ;;  %v3254_v39 = vpack.c.bf16 %v308_v30, %v300_v29 }
  0x93   :  { %v325_v36 = vld [vmem:[#allocation2 + $0x6c8] sm:$0xff]  ;;  %v327_v38 = vld [vmem:[#allocation2 + $0x6d8] sm:$0xff]  ;;  %v3446_v40 = vpack.c.bf16 %v310_v34, %v302_v31  ;;  %v316_v42 = vld [vmem:[#allocation2 + $0x680] sm:$0xff] }
  0x94   :  { %3239 = vmatpush1.bf16.msra.mxu0 %v3238_v49  ;;  %1014 = vmatprep.mubr.f32.mxu0 %v4911_v32  ;;  %v3256_v41 = vpack.c.bf16 %v325_v36, %v317_v35  ;;  %v324_v43 = vld [vmem:[#allocation2 + $0x6c0] sm:$0xff]  ;;  %v318_v44 = vld [vmem:[#allocation2 + $0x690] sm:$0xff]  ;;  %v3448_v45 = vpack.c.bf16 %v327_v38, %v319_v37  ;;  %v333_v47 = vld [vmem:[#allocation2 + $0x708] sm:$0xff] }
  0x95   :  { %3431 = vmatpush1.bf16.msra.mxu1 %v3430_v50  ;;  %3241 = vmatprep.subr.bf16.mxu0 %v3240_v51  ;;  %v326_v46 = vld [vmem:[#allocation2 + $0x6d0] sm:$0xff]  ;;  %v341_v48 = vld [vmem:[#allocation2 + $0x748] sm:$0xff]  ;;  %v335_v49 = vld [vmem:[#allocation2 + $0x718] sm:$0xff]  ;;  %v3258_v51 = vpack.c.bf16 %v324_v43, %v316_v42 }
  0x96   :  { %3433 = vmatprep.subr.bf16.mxu1 %v3432_v55  ;;  %1227 = vmatprep.mubr.f32.mxu1 %v4911_v32  ;;  %v343_v50 = vld [vmem:[#allocation2 + $0x758] sm:$0xff]  ;;  %v3450_v52 = vpack.c.bf16 %v326_v46, %v318_v44  ;;  %v3260_v53 = vpack.c.bf16 %v341_v48, %v333_v47  ;;  %v332_v54 = vld [vmem:[#allocation2 + $0x700] sm:$0xff]  ;;  %v334_v56 = vld [vmem:[#allocation2 + $0x710] sm:$0xff] }
  0x97   :  { %v340_v55 = vld [vmem:[#allocation2 + $0x740] sm:$0xff]  ;;  %v3452_v57 = vpack.c.bf16 %v343_v50, %v335_v49  ;;  %v342_v58 = vld [vmem:[#allocation2 + $0x750] sm:$0xff]  ;;  %v349_v59 = vld [vmem:[#allocation2 + $0x788] sm:$0xff] }
  0x98   :  { %3243 = vmatpush1.bf16.msra.mxu0 %v3242_v63  ;;  %v357_v60 = vld [vmem:[#allocation2 + $0x7c8] sm:$0xff]  ;;  %v351_v62 = vld [vmem:[#allocation2 + $0x798] sm:$0xff]  ;;  %v348_v3 = vld [vmem:[#allocation2 + $0x780] sm:$0xff] }
  0x99   :  { %3435 = vmatpush1.bf16.msra.mxu1 %v3434_v0  ;;  %3245 = vmatprep.subr.bf16.mxu0 %v3244_v1  ;;  %v359_v63 = vld [vmem:[#allocation2 + $0x7d8] sm:$0xff]  ;;  %v3262_v0 = vpack.c.bf16 %v340_v55, %v332_v54  ;;  %v3454_v1 = vpack.c.bf16 %v342_v58, %v334_v56  ;;  %v3264_v2 = vpack.c.bf16 %v357_v60, %v349_v59  ;;  %v356_v4 = vld [vmem:[#allocation2 + $0x7c0] sm:$0xff]  ;;  %v358_v7 = vld [vmem:[#allocation2 + $0x7d0] sm:$0xff] }
  0x9a   :  { %3437 = vmatprep.subr.bf16.mxu1 %v3436_v5  ;;  %v350_v5 = vld [vmem:[#allocation2 + $0x790] sm:$0xff]  ;;  %v3456_v6 = vpack.c.bf16 %v359_v63, %v351_v62  ;;  %v365_v8 = vld [vmem:[#allocation2 + $0x808] sm:$0xff]  ;;  %v375_v13 = vld [vmem:[#allocation2 + $0x858] sm:$0xff] }
  0x9b   :  { %v373_v9 = vld [vmem:[#allocation2 + $0x848] sm:$0xff]  ;;  %v364_v17 = vld [vmem:[#allocation2 + $0x800] sm:$0xff]  ;;  %v374_v21 = vld [vmem:[#allocation2 + $0x850] sm:$0xff] }
  0x9c   :  { %3247 = vmatpush1.bf16.msra.mxu0 %v3246_v12  ;;  %v367_v12 = vld [vmem:[#allocation2 + $0x818] sm:$0xff]  ;;  %v3268_v16 = vpack.c.bf16 %v373_v9, %v365_v8  ;;  %v372_v18 = vld [vmem:[#allocation2 + $0x840] sm:$0xff]  ;;  %v381_v23 = vld [vmem:[#allocation2 + $0x888] sm:$0xff] }
  0x9d   :  { %3439 = vmatpush1.bf16.msra.mxu1 %v3438_v14  ;;  %3249 = vmatprep.subr.bf16.mxu0 %v3248_v15  ;;  %v3266_v14 = vpack.c.bf16 %v356_v4, %v348_v3  ;;  %v3458_v15 = vpack.c.bf16 %v358_v7, %v350_v5  ;;  %v3460_v20 = vpack.c.bf16 %v375_v13, %v367_v12  ;;  %v389_v24 = vld [vmem:[#allocation2 + $0x8c8] sm:$0xff]  ;;  %v383_v22 = vld [vmem:[#allocation2 + $0x898] sm:$0xff]  ;;  %v380_v31 = vld [vmem:[#allocation2 + $0x880] sm:$0xff] }
  0x9e   :  { %3441 = vmatprep.subr.bf16.mxu1 %v3440_v19  ;;  %v366_v19 = vld [vmem:[#allocation2 + $0x810] sm:$0xff]  ;;  %v3272_v30 = vpack.c.bf16 %v389_v24, %v381_v23  ;;  %v397_v37 = vld [vmem:[#allocation2 + $0x908] sm:$0xff]  ;;  %v396_v44 = vld [vmem:[#allocation2 + $0x900] sm:$0xff] }
  0x9f   :  { %v3462_v29 = vpack.c.bf16 %v374_v21, %v366_v19  ;;  %v382_v34 = vld [vmem:[#allocation2 + $0x890] sm:$0xff]  ;;  %v405_v38 = vld [vmem:[#allocation2 + $0x948] sm:$0xff]  ;;  %v412_v56 = vld [vmem:[#allocation2 + $0x980] sm:$0xff] }
  0xa0   :  { %3251 = vmatpush1.bf16.msra.mxu0 %v3250_v26  ;;  %v4918_v26 = vrot.slane %v919_v10, %v4898_v11  ;;  %v390_v36 = vld [vmem:[#allocation2 + $0x8d0] sm:$0xff]  ;;  %v3276_v43 = vpack.c.bf16 %v405_v38, %v397_v37  ;;  %v413_v49 = vld [vmem:[#allocation2 + $0x988] sm:$0xff]  ;;  %v428_v5 = vld [vmem:[#allocation2 + $0xa00] sm:$0xff] }
  0xa1   :  { %3443 = vmatpush1.bf16.msra.mxu1 %v3442_v27  ;;  %3253 = vmatprep.subr.bf16.mxu0 %v3252_v28  ;;  %v391_v27 = vld [vmem:[#allocation2 + $0x8d8] sm:$0xff]  ;;  %v3270_v28 = vpack.c.bf16 %v372_v18, %v364_v17  ;;  %v3466_v42 = vpack.c.bf16 %v390_v36, %v382_v34  ;;  %v398_v46 = vld [vmem:[#allocation2 + $0x910] sm:$0xff]  ;;  %v421_v50 = vld [vmem:[#allocation2 + $0x9c8] sm:$0xff] }
  0xa2   :  { %3445 = vmatprep.subr.bf16.mxu1 %v3444_v33  ;;  %v388_v33 = vld [vmem:[#allocation2 + $0x8c0] sm:$0xff]  ;;  %v3464_v35 = vpack.c.bf16 %v391_v27, %v383_v22  ;;  %v4922_v11 = vcombine.high %v4918_v26, %v4918_v26  ;;  %v406_v48 = vld [vmem:[#allocation2 + $0x950] sm:$0xff]  ;;  %v3280_v55 = vpack.c.bf16 %v421_v50, %v413_v49  ;;  %v429_v62 = vld [vmem:[#allocation2 + $0xa08] sm:$0xff] }
  0xa3   :  { %v3470_v54 = vpack.c.bf16 %v406_v48, %v398_v46  ;;  %v414_v58 = vld [vmem:[#allocation2 + $0x990] sm:$0xff]  ;;  %v437_v63 = vld [vmem:[#allocation2 + $0xa48] sm:$0xff]  ;;  %v447_v13 = vld [vmem:[#allocation2 + $0xa98] sm:$0xff] }
  0xa4   :  { %3255 = vmatpush1.bf16.msra.mxu0 %v3254_v39  ;;  %v399_v39 = vld [vmem:[#allocation2 + $0x918] sm:$0xff]  ;;  %v422_v60 = vld [vmem:[#allocation2 + $0x9d0] sm:$0xff]  ;;  %v3284_v4 = vpack.c.bf16 %v437_v63, %v429_v62  ;;  %v445_v10 = vld [vmem:[#allocation2 + $0xa88] sm:$0xff] }
  0xa5   :  { %3447 = vmatpush1.bf16.msra.mxu1 %v3446_v40  ;;  %3257 = vmatprep.subr.bf16.mxu0 %v3256_v41  ;;  %v407_v40 = vld [vmem:[#allocation2 + $0x958] sm:$0xff]  ;;  %v3274_v41 = vpack.c.bf16 %v388_v33, %v380_v31  ;;  %v3474_v3 = vpack.c.bf16 %v422_v60, %v414_v58  ;;  %v430_v7 = vld [vmem:[#allocation2 + $0xa10] sm:$0xff]  ;;  %v453_v12 = vld [vmem:[#allocation2 + $0xac8] sm:$0xff] }
  0xa6   :  { %3449 = vmatprep.subr.bf16.mxu1 %v3448_v45  ;;  %v404_v45 = vld [vmem:[#allocation2 + $0x940] sm:$0xff]  ;;  %v3468_v47 = vpack.c.bf16 %v407_v40, %v399_v39  ;;  %v438_v9 = vld [vmem:[#allocation2 + $0xa50] sm:$0xff]  ;;  %v3288_v17 = vpack.c.bf16 %v453_v12, %v445_v10  ;;  %v461_v24 = vld [vmem:[#allocation2 + $0xb08] sm:$0xff] }
  0xa7   :  { %v444_v18 = vld [vmem:[#allocation2 + $0xa80] sm:$0xff]  ;;  %v454_v23 = vld [vmem:[#allocation2 + $0xad0] sm:$0xff]  ;;  %v469_v22 = vld [vmem:[#allocation2 + $0xb48] sm:$0xff] }
  0xa8   :  { %3259 = vmatpush1.bf16.msra.mxu0 %v3258_v51  ;;  %v415_v51 = vld [vmem:[#allocation2 + $0x998] sm:$0xff]  ;;  %v452_v19 = vld [vmem:[#allocation2 + $0xac0] sm:$0xff]  ;;  %v3292_v31 = vpack.c.bf16 %v469_v22, %v461_v24  ;;  %v470_v37 = vld [vmem:[#allocation2 + $0xb50] sm:$0xff] }
  0xa9   :  { %3451 = vmatpush1.bf16.msra.mxu1 %v3450_v52  ;;  %3261 = vmatprep.subr.bf16.mxu0 %v3260_v53  ;;  %v423_v52 = vld [vmem:[#allocation2 + $0x9d8] sm:$0xff]  ;;  %v3278_v53 = vpack.c.bf16 %v404_v45, %v396_v44  ;;  %v460_v33 = vld [vmem:[#allocation2 + $0xb00] sm:$0xff]  ;;  %v477_v38 = vld [vmem:[#allocation2 + $0xb88] sm:$0xff] }
  0xaa   :  { %3453 = vmatprep.subr.bf16.mxu1 %v3452_v57  ;;  %v420_v57 = vld [vmem:[#allocation2 + $0x9c0] sm:$0xff]  ;;  %v3472_v59 = vpack.c.bf16 %v423_v52, %v415_v51  ;;  %v463_v27 = vld [vmem:[#allocation2 + $0xb18] sm:$0xff]  ;;  %v485_v39 = vld [vmem:[#allocation2 + $0xbc8] sm:$0xff] }
  0xab   :  { %v468_v34 = vld [vmem:[#allocation2 + $0xb40] sm:$0xff]  ;;  %v479_v40 = vld [vmem:[#allocation2 + $0xb98] sm:$0xff]  ;;  %v3296_v44 = vpack.c.bf16 %v485_v39, %v477_v38  ;;  %v486_v49 = vld [vmem:[#allocation2 + $0xbd0] sm:$0xff] }
  0xac   :  { %3263 = vmatpush1.bf16.msra.mxu0 %v3262_v0  ;;  %v431_v0 = vld [vmem:[#allocation2 + $0xa18] sm:$0xff]  ;;  %v476_v45 = vld [vmem:[#allocation2 + $0xb80] sm:$0xff]  ;;  %v493_v50 = vld [vmem:[#allocation2 + $0xc08] sm:$0xff] }
  0xad   :  { %3455 = vmatpush1.bf16.msra.mxu1 %v3454_v1  ;;  %3265 = vmatprep.subr.bf16.mxu0 %v3264_v2  ;;  %v439_v1 = vld [vmem:[#allocation2 + $0xa58] sm:$0xff]  ;;  %v3282_v2 = vpack.c.bf16 %v420_v57, %v412_v56  ;;  %v484_v46 = vld [vmem:[#allocation2 + $0xbc0] sm:$0xff]  ;;  %v501_v51 = vld [vmem:[#allocation2 + $0xc48] sm:$0xff] }
  0xae   :  { %3457 = vmatprep.subr.bf16.mxu1 %v3456_v6  ;;  %v436_v6 = vld [vmem:[#allocation2 + $0xa40] sm:$0xff]  ;;  %v3476_v8 = vpack.c.bf16 %v439_v1, %v431_v0  ;;  %v495_v52 = vld [vmem:[#allocation2 + $0xc18] sm:$0xff]  ;;  %v3300_v56 = vpack.c.bf16 %v501_v51, %v493_v50  ;;  %v502_v62 = vld [vmem:[#allocation2 + $0xc50] sm:$0xff] }
  0xaf   :  { %v492_v57 = vld [vmem:[#allocation2 + $0xc00] sm:$0xff]  ;;  %v509_v63 = vld [vmem:[#allocation2 + $0xc88] sm:$0xff]  ;;  %v511_v1 = vld [vmem:[#allocation2 + $0xc98] sm:$0xff] }
  0xb0   :  { %3267 = vmatpush1.bf16.msra.mxu0 %v3266_v14  ;;  %v455_v14 = vld [vmem:[#allocation2 + $0xad8] sm:$0xff]  ;;  %v500_v58 = vld [vmem:[#allocation2 + $0xc40] sm:$0xff]  ;;  %v517_v0 = vld [vmem:[#allocation2 + $0xcc8] sm:$0xff] }
  0xb1   :  { %3459 = vmatpush1.bf16.msra.mxu1 %v3458_v15  ;;  %3269 = vmatprep.subr.bf16.mxu0 %v3268_v16  ;;  %v3286_v15 = vpack.c.bf16 %v436_v6, %v428_v5  ;;  %v3478_v16 = vpack.c.bf16 %v438_v9, %v430_v7  ;;  %v3480_v21 = vpack.c.bf16 %v455_v14, %v447_v13  ;;  %v508_v6 = vld [vmem:[#allocation2 + $0xc80] sm:$0xff]  ;;  %v518_v10 = vld [vmem:[#allocation2 + $0xcd0] sm:$0xff]  ;;  %v525_v12 = vld [vmem:[#allocation2 + $0xd08] sm:$0xff] }
  0xb2   :  { %3461 = vmatprep.subr.bf16.mxu1 %v3460_v20  ;;  %v446_v20 = vld [vmem:[#allocation2 + $0xa90] sm:$0xff]  ;;  %v3304_v5 = vpack.c.bf16 %v517_v0, %v509_v63  ;;  %v516_v7 = vld [vmem:[#allocation2 + $0xcc0] sm:$0xff]  ;;  %v533_v13 = vld [vmem:[#allocation2 + $0xd48] sm:$0xff] }
  0xb3   :  { %1015 = vmatmul.mubr.f32.vlgmr.msra.gmra.mrb[0].mxu0 %v4907_v25  ;;  %v527_v14 = vld [vmem:[#allocation2 + $0xd18] sm:$0xff]  ;;  %v534_v24 = vld [vmem:[#allocation2 + $0xd50] sm:$0xff]  ;;  %v541_v22 = vld [vmem:[#allocation2 + $0xd88] sm:$0xff] }
  0xb4   :  { %3271 = vmatpush1.bf16.msra.mxu0 %v3270_v28  ;;  %1228 = vmatmul.mubr.f32.vlgmr.msra.gmra.mrb[0].mxu1 %v4907_v25  ;;  %v471_v28 = vld [vmem:[#allocation2 + $0xb58] sm:$0xff]  ;;  %v550_v38 = vld [vmem:[#allocation2 + $0xdd0] sm:$0xff]  ;;  %v557_v39 = vld [vmem:[#allocation2 + $0xe08] sm:$0xff] }
  0xb5   :  { %3463 = vmatpush1.bf16.msra.mxu1 %v3462_v29  ;;  %3273 = vmatprep.subr.bf16.mxu0 %v3272_v30  ;;  %v3290_v29 = vpack.c.bf16 %v452_v19, %v444_v18  ;;  %v3482_v30 = vpack.c.bf16 %v454_v23, %v446_v20  ;;  %v3484_v36 = vpack.c.bf16 %v471_v28, %v463_v27  ;;  %v524_v19 = vld [vmem:[#allocation2 + $0xd00] sm:$0xff]  ;;  %v549_v27 = vld [vmem:[#allocation2 + $0xdc8] sm:$0xff]  ;;  %v543_v28 = vld [vmem:[#allocation2 + $0xd98] sm:$0xff] }
  0xb6   :  { %3465 = vmatprep.subr.bf16.mxu1 %v3464_v35  ;;  %1085 = vmatprep.mubr.f32.mxu0 %v4922_v11  ;;  %v462_v35 = vld [vmem:[#allocation2 + $0xb10] sm:$0xff]  ;;  %v3308_v18 = vpack.c.bf16 %v533_v13, %v525_v12  ;;  %v532_v20 = vld [vmem:[#allocation2 + $0xd40] sm:$0xff]  ;;  %v573_v51 = vld [vmem:[#allocation2 + $0xe88] sm:$0xff] }
  0xb7   :  { %1298 = vmatprep.mubr.f32.mxu1 %v4922_v11  ;;  %v566_v50 = vld [vmem:[#allocation2 + $0xe50] sm:$0xff]  ;;  %v589_v0 = vld [vmem:[#allocation2 + $0xf08] sm:$0xff] }
  0xb8   :  { %3275 = vmatpush1.bf16.msra.mxu0 %v3274_v41  ;;  %v487_v41 = vld [vmem:[#allocation2 + $0xbd8] sm:$0xff]  ;;  %v582_v63 = vld [vmem:[#allocation2 + $0xed0] sm:$0xff]  ;;  %v605_v13 = vld [vmem:[#allocation2 + $0xf88] sm:$0xff] }
  0xb9   :  { %3467 = vmatpush1.bf16.msra.mxu1 %v3466_v42  ;;  %3277 = vmatprep.subr.bf16.mxu0 %v3276_v43  ;;  %v3294_v42 = vpack.c.bf16 %v468_v34, %v460_v33  ;;  %v3486_v43 = vpack.c.bf16 %v470_v37, %v462_v35  ;;  %v3488_v48 = vpack.c.bf16 %v487_v41, %v479_v40  ;;  %v540_v34 = vld [vmem:[#allocation2 + $0xd80] sm:$0xff]  ;;  %v565_v40 = vld [vmem:[#allocation2 + $0xe48] sm:$0xff]  ;;  %v559_v41 = vld [vmem:[#allocation2 + $0xe18] sm:$0xff] }
  0xba   :  { %3469 = vmatprep.subr.bf16.mxu1 %v3468_v47  ;;  %v478_v47 = vld [vmem:[#allocation2 + $0xb90] sm:$0xff]  ;;  %v3312_v33 = vpack.c.bf16 %v549_v27, %v541_v22  ;;  %v548_v35 = vld [vmem:[#allocation2 + $0xdc0] sm:$0xff]  ;;  %v621_v27 = vld [vmem:[#allocation2 + $0x1008] sm:$0xff] }
  0xbb   :  { %v598_v12 = vld [vmem:[#allocation2 + $0xf50] sm:$0xff] }
  0xbc   :  { %3279 = vmatpush1.bf16.msra.mxu0 %v3278_v53  ;;  %v503_v53 = vld [vmem:[#allocation2 + $0xc58] sm:$0xff]  ;;  %v614_v22 = vld [vmem:[#allocation2 + $0xfd0] sm:$0xff] }
  0xbd   :  { %3471 = vmatpush1.bf16.msra.mxu1 %v3470_v54  ;;  %3281 = vmatprep.subr.bf16.mxu0 %v3280_v55  ;;  %v3298_v54 = vpack.c.bf16 %v484_v46, %v476_v45  ;;  %v3490_v55 = vpack.c.bf16 %v486_v49, %v478_v47  ;;  %v3492_v60 = vpack.c.bf16 %v503_v53, %v495_v52  ;;  %v556_v46 = vld [vmem:[#allocation2 + $0xe00] sm:$0xff]  ;;  %v581_v52 = vld [vmem:[#allocation2 + $0xec8] sm:$0xff]  ;;  %v575_v53 = vld [vmem:[#allocation2 + $0xe98] sm:$0xff] }
  0xbe   :  { %3473 = vmatprep.subr.bf16.mxu1 %v3472_v59  ;;  %v494_v59 = vld [vmem:[#allocation2 + $0xc10] sm:$0xff]  ;;  %v3316_v45 = vpack.c.bf16 %v565_v40, %v557_v39  ;;  %v564_v47 = vld [vmem:[#allocation2 + $0xe40] sm:$0xff]  ;;  %v637_v40 = vld [vmem:[#allocation2 + $0x1088] sm:$0xff] }
  0xbf   :  { %v630_v39 = vld [vmem:[#allocation2 + $0x1050] sm:$0xff] }
  0xc0   :  { %3283 = vmatpush1.bf16.msra.mxu0 %v3282_v2  ;;  %v519_v2 = vld [vmem:[#allocation2 + $0xcd8] sm:$0xff] }
  0xc1   :  { %3475 = vmatpush1.bf16.msra.mxu1 %v3474_v3  ;;  %3285 = vmatprep.subr.bf16.mxu0 %v3284_v4  ;;  %v3302_v3 = vpack.c.bf16 %v500_v58, %v492_v57  ;;  %v3494_v4 = vpack.c.bf16 %v502_v62, %v494_v59  ;;  %v3496_v9 = vpack.c.bf16 %v519_v2, %v511_v1  ;;  %v572_v58 = vld [vmem:[#allocation2 + $0xe80] sm:$0xff]  ;;  %v597_v1 = vld [vmem:[#allocation2 + $0xf48] sm:$0xff]  ;;  %v591_v2 = vld [vmem:[#allocation2 + $0xf18] sm:$0xff] }
  0xc2   :  { %3477 = vmatprep.subr.bf16.mxu1 %v3476_v8  ;;  %v510_v8 = vld [vmem:[#allocation2 + $0xc90] sm:$0xff]  ;;  %v3320_v57 = vpack.c.bf16 %v581_v52, %v573_v51  ;;  %v580_v59 = vld [vmem:[#allocation2 + $0xec0] sm:$0xff] }
  0xc3   :  { %v646_v52 = vld [vmem:[#allocation2 + $0x10d0] sm:$0xff] }
  0xc4   :  { %3287 = vmatpush1.bf16.msra.mxu0 %v3286_v15  ;;  %v535_v15 = vld [vmem:[#allocation2 + $0xd58] sm:$0xff] }
  0xc5   :  { %3479 = vmatpush1.bf16.msra.mxu1 %v3478_v16  ;;  %3289 = vmatprep.subr.bf16.mxu0 %v3288_v17  ;;  %v3306_v16 = vpack.c.bf16 %v516_v7, %v508_v6  ;;  %v3498_v17 = vpack.c.bf16 %v518_v10, %v510_v8  ;;  %v3500_v23 = vpack.c.bf16 %v535_v15, %v527_v14  ;;  %v588_v7 = vld [vmem:[#allocation2 + $0xf00] sm:$0xff]  ;;  %v613_v14 = vld [vmem:[#allocation2 + $0xfc8] sm:$0xff]  ;;  %v607_v15 = vld [vmem:[#allocation2 + $0xf98] sm:$0xff] }
  0xc6   :  { %3481 = vmatprep.subr.bf16.mxu1 %v3480_v21  ;;  %v526_v21 = vld [vmem:[#allocation2 + $0xd10] sm:$0xff]  ;;  %v3324_v6 = vpack.c.bf16 %v597_v1, %v589_v0  ;;  %v596_v8 = vld [vmem:[#allocation2 + $0xf40] sm:$0xff] }
  0xc7   :  { %v654_v0 = vld [vmem:[#allocation2 + $0x1110] sm:$0xff] }
  0xc8   :  { %3291 = vmatpush1.bf16.msra.mxu0 %v3290_v29  ;;  %v551_v29 = vld [vmem:[#allocation2 + $0xdd8] sm:$0xff] }
  0xc9   :  { %3483 = vmatpush1.bf16.msra.mxu1 %v3482_v30  ;;  %3293 = vmatprep.subr.bf16.mxu0 %v3292_v31  ;;  %v3310_v30 = vpack.c.bf16 %v532_v20, %v524_v19  ;;  %v3502_v31 = vpack.c.bf16 %v534_v24, %v526_v21  ;;  %v3504_v37 = vpack.c.bf16 %v551_v29, %v543_v28  ;;  %v604_v20 = vld [vmem:[#allocation2 + $0xf80] sm:$0xff]  ;;  %v629_v28 = vld [vmem:[#allocation2 + $0x1048] sm:$0xff]  ;;  %v623_v29 = vld [vmem:[#allocation2 + $0x1018] sm:$0xff] }
  0xca   :  { %3485 = vmatprep.subr.bf16.mxu1 %v3484_v36  ;;  %v542_v36 = vld [vmem:[#allocation2 + $0xd90] sm:$0xff]  ;;  %v3328_v19 = vpack.c.bf16 %v613_v14, %v605_v13  ;;  %v612_v21 = vld [vmem:[#allocation2 + $0xfc0] sm:$0xff] }
  0xcb   :  { %v670_v13 = vld [vmem:[#allocation2 + $0x1190] sm:$0xff] }
  0xcc   :  { %3295 = vmatpush1.bf16.msra.mxu0 %v3294_v42  ;;  %v567_v42 = vld [vmem:[#allocation2 + $0xe58] sm:$0xff] }
  0xcd   :  { %3487 = vmatpush1.bf16.msra.mxu1 %v3486_v43  ;;  %3297 = vmatprep.subr.bf16.mxu0 %v3296_v44  ;;  %v3314_v43 = vpack.c.bf16 %v548_v35, %v540_v34  ;;  %v3506_v44 = vpack.c.bf16 %v550_v38, %v542_v36  ;;  %v3508_v49 = vpack.c.bf16 %v567_v42, %v559_v41  ;;  %v620_v35 = vld [vmem:[#allocation2 + $0x1000] sm:$0xff]  ;;  %v645_v41 = vld [vmem:[#allocation2 + $0x10c8] sm:$0xff]  ;;  %v639_v42 = vld [vmem:[#allocation2 + $0x1098] sm:$0xff] }
  0xce   :  { %3489 = vmatprep.subr.bf16.mxu1 %v3488_v48  ;;  %v558_v48 = vld [vmem:[#allocation2 + $0xe10] sm:$0xff]  ;;  %v3332_v34 = vpack.c.bf16 %v629_v28, %v621_v27  ;;  %v628_v36 = vld [vmem:[#allocation2 + $0x1040] sm:$0xff] }
  0xcf   :  { %v686_v27 = vld [vmem:[#allocation2 + $0x1210] sm:$0xff] }
  0xd0   :  { %3299 = vmatpush1.bf16.msra.mxu0 %v3298_v54  ;;  %v583_v54 = vld [vmem:[#allocation2 + $0xed8] sm:$0xff] }
  0xd1   :  { %3491 = vmatpush1.bf16.msra.mxu1 %v3490_v55  ;;  %3301 = vmatprep.subr.bf16.mxu0 %v3300_v56  ;;  %v3318_v55 = vpack.c.bf16 %v564_v47, %v556_v46  ;;  %v3510_v56 = vpack.c.bf16 %v566_v50, %v558_v48  ;;  %v3512_v62 = vpack.c.bf16 %v583_v54, %v575_v53  ;;  %v636_v48 = vld [vmem:[#allocation2 + $0x1080] sm:$0xff]  ;;  %v638_v50 = vld [vmem:[#allocation2 + $0x1090] sm:$0xff]  ;;  %v653_v53 = vld [vmem:[#allocation2 + $0x1108] sm:$0xff] }
  0xd2   :  { %3493 = vmatprep.subr.bf16.mxu1 %v3492_v60  ;;  %v574_v60 = vld [vmem:[#allocation2 + $0xe90] sm:$0xff]  ;;  %v3336_v47 = vpack.c.bf16 %v645_v41, %v637_v40  ;;  %v661_v54 = vld [vmem:[#allocation2 + $0x1148] sm:$0xff] }
  0xd3   :  { %v702_v40 = vld [vmem:[#allocation2 + $0x1290] sm:$0xff] }
  0xd4   :  { %3303 = vmatpush1.bf16.msra.mxu0 %v3302_v3  ;;  %v599_v3 = vld [vmem:[#allocation2 + $0xf58] sm:$0xff] }
  0xd5   :  { %3495 = vmatpush1.bf16.msra.mxu1 %v3494_v4  ;;  %3305 = vmatprep.subr.bf16.mxu0 %v3304_v5  ;;  %v3322_v4 = vpack.c.bf16 %v580_v59, %v572_v58  ;;  %v3514_v5 = vpack.c.bf16 %v582_v63, %v574_v60  ;;  %v3516_v10 = vpack.c.bf16 %v599_v3, %v591_v2  ;;  %v660_v63 = vld [vmem:[#allocation2 + $0x1140] sm:$0xff]  ;;  %v662_v2 = vld [vmem:[#allocation2 + $0x1150] sm:$0xff]  ;;  %v669_v3 = vld [vmem:[#allocation2 + $0x1188] sm:$0xff] }
  0xd6   :  { %3497 = vmatprep.subr.bf16.mxu1 %v3496_v9  ;;  %v590_v9 = vld [vmem:[#allocation2 + $0xf10] sm:$0xff]  ;;  %v3530_v59 = vpack.c.bf16 %v646_v52, %v638_v50  ;;  %v3340_v60 = vpack.c.bf16 %v661_v54, %v653_v53  ;;  %v724_v52 = vld [vmem:[#allocation2 + $0x1340] sm:$0xff] }
  0xd7   :  { %v718_v53 = vld [vmem:[#allocation2 + $0x1310] sm:$0xff] }
  0xd8   :  { %3307 = vmatpush1.bf16.msra.mxu0 %v3306_v16  ;;  %v615_v16 = vld [vmem:[#allocation2 + $0xfd8] sm:$0xff] }
  0xd9   :  { %3499 = vmatpush1.bf16.msra.mxu1 %v3498_v17  ;;  %3309 = vmatprep.subr.bf16.mxu0 %v3308_v18  ;;  %v3326_v17 = vpack.c.bf16 %v596_v8, %v588_v7  ;;  %v3518_v18 = vpack.c.bf16 %v598_v12, %v590_v9  ;;  %v3520_v24 = vpack.c.bf16 %v615_v16, %v607_v15  ;;  %v676_v12 = vld [vmem:[#allocation2 + $0x11c0] sm:$0xff]  ;;  %v678_v15 = vld [vmem:[#allocation2 + $0x11d0] sm:$0xff]  ;;  %v685_v16 = vld [vmem:[#allocation2 + $0x1208] sm:$0xff] }
  0xda   :  { %3501 = vmatprep.subr.bf16.mxu1 %v3500_v23  ;;  %v606_v23 = vld [vmem:[#allocation2 + $0xf90] sm:$0xff]  ;;  %v3534_v8 = vpack.c.bf16 %v662_v2, %v654_v0  ;;  %v740_v2 = vld [vmem:[#allocation2 + $0x13c0] sm:$0xff] }
  0xdc   :  { %3311 = vmatpush1.bf16.msra.mxu0 %v3310_v30  ;;  %v631_v30 = vld [vmem:[#allocation2 + $0x1058] sm:$0xff] }
  0xdd   :  { %3503 = vmatpush1.bf16.msra.mxu1 %v3502_v31  ;;  %3313 = vmatprep.subr.bf16.mxu0 %v3312_v33  ;;  %v3330_v31 = vpack.c.bf16 %v612_v21, %v604_v20  ;;  %v3522_v33 = vpack.c.bf16 %v614_v22, %v606_v23  ;;  %v3524_v38 = vpack.c.bf16 %v631_v30, %v623_v29  ;;  %v692_v22 = vld [vmem:[#allocation2 + $0x1240] sm:$0xff]  ;;  %v694_v29 = vld [vmem:[#allocation2 + $0x1250] sm:$0xff]  ;;  %v701_v30 = vld [vmem:[#allocation2 + $0x1288] sm:$0xff] }
  0xde   :  { %3505 = vmatprep.subr.bf16.mxu1 %v3504_v37  ;;  %v622_v37 = vld [vmem:[#allocation2 + $0x1010] sm:$0xff]  ;;  %v3538_v21 = vpack.c.bf16 %v678_v15, %v670_v13  ;;  %v756_v15 = vld [vmem:[#allocation2 + $0x1440] sm:$0xff] }
  0xdf   :  { %v3526_v46 = vpack.c.bf16 %v630_v39, %v622_v37  ;;  %v708_v39 = vld [vmem:[#allocation2 + $0x12c0] sm:$0xff] }
  0xe0   :  { %3315 = vmatpush1.bf16.msra.mxu0 %v3314_v43  ;;  %v647_v43 = vld [vmem:[#allocation2 + $0x10d8] sm:$0xff] }
  0xe1   :  { %3507 = vmatpush1.bf16.msra.mxu1 %v3506_v44  ;;  %3317 = vmatprep.subr.bf16.mxu0 %v3316_v45  ;;  %v3334_v44 = vpack.c.bf16 %v628_v36, %v620_v35  ;;  %v4931_v45 = vld.sshfl [vmem:[%s5016_s0 + $0x8] sm:$0x33 pattern:$0x76325410]  ;;  %v3528_v51 = vpack.c.bf16 %v647_v43, %v639_v42  ;;  %v3542_v36 = vpack.c.bf16 %v694_v29, %v686_v27  ;;  %v710_v42 = vld [vmem:[#allocation2 + $0x12d0] sm:$0xff]  ;;  %v772_v29 = vld [vmem:[#allocation2 + $0x14c0] sm:$0xff] }
  0xe2   :  { %3509 = vmatprep.subr.bf16.mxu1 %v3508_v49  ;;  %v644_v49 = vld [vmem:[#allocation2 + $0x10c0] sm:$0xff]  ;;  %v717_v43 = vld [vmem:[#allocation2 + $0x1308] sm:$0xff] }
  0xe3   :  { %v3338_v58 = vpack.c.bf16 %v644_v49, %v636_v48  ;;  %v3546_v49 = vpack.c.bf16 %v710_v42, %v702_v40  ;;  %v788_v42 = vld [vmem:[#allocation2 + $0x1540] sm:$0xff] }
  0xe4   :  { %3319 = vmatpush1.bf16.msra.mxu0 %v3318_v55  ;;  %v4935_v55 = vcombine.high %v4931_v45, %v4931_v45 }
  0xe5   :  { %3511 = vmatpush1.bf16.msra.mxu1 %v3510_v56  ;;  %3321 = vmatprep.subr.bf16.mxu0 %v3320_v57  ;;  %v655_v56 = vld [vmem:[#allocation2 + $0x1118] sm:$0xff] }
  0xe6   :  { %3513 = vmatprep.subr.bf16.mxu1 %v3512_v62  ;;  %v663_v57 = vld [vmem:[#allocation2 + $0x1158] sm:$0xff]  ;;  %v652_v62 = vld [vmem:[#allocation2 + $0x1100] sm:$0xff] }
  0xe7   :  { %v3532_v1 = vpack.c.bf16 %v663_v57, %v655_v56  ;;  %v3342_v7 = vpack.c.bf16 %v660_v63, %v652_v62  ;;  %v726_v56 = vld [vmem:[#allocation2 + $0x1350] sm:$0xff]  ;;  %v733_v57 = vld [vmem:[#allocation2 + $0x1388] sm:$0xff] }
  0xe8   :  { %3323 = vmatpush1.bf16.msra.mxu0 %v3322_v4  ;;  %v677_v4 = vld [vmem:[#allocation2 + $0x11c8] sm:$0xff]  ;;  %v3550_v63 = vpack.c.bf16 %v726_v56, %v718_v53  ;;  %v804_v56 = vld [vmem:[#allocation2 + $0x15c0] sm:$0xff] }
  0xe9   :  { %3515 = vmatpush1.bf16.msra.mxu1 %v3514_v5  ;;  %3325 = vmatprep.subr.bf16.mxu0 %v3324_v6  ;;  %v671_v5 = vld [vmem:[#allocation2 + $0x1198] sm:$0xff]  ;;  %v3344_v9 = vpack.c.bf16 %v677_v4, %v669_v3  ;;  %v734_v3 = vld [vmem:[#allocation2 + $0x1390] sm:$0xff] }
  0xea   :  { %3517 = vmatprep.subr.bf16.mxu1 %v3516_v10  ;;  %v679_v6 = vld [vmem:[#allocation2 + $0x11d8] sm:$0xff]  ;;  %v668_v10 = vld [vmem:[#allocation2 + $0x1180] sm:$0xff] }
  0xeb   :  { %v3536_v14 = vpack.c.bf16 %v679_v6, %v671_v5  ;;  %v3346_v20 = vpack.c.bf16 %v676_v12, %v668_v10  ;;  %v742_v5 = vld [vmem:[#allocation2 + $0x13d0] sm:$0xff]  ;;  %v749_v6 = vld [vmem:[#allocation2 + $0x1408] sm:$0xff] }
  0xec   :  { %3327 = vmatpush1.bf16.msra.mxu0 %v3326_v17  ;;  %v693_v17 = vld [vmem:[#allocation2 + $0x1248] sm:$0xff]  ;;  %v3554_v12 = vpack.c.bf16 %v742_v5, %v734_v3  ;;  %v820_v5 = vld [vmem:[#allocation2 + $0x1640] sm:$0xff] }
  0xed   :  { %3519 = vmatpush1.bf16.msra.mxu1 %v3518_v18  ;;  %3329 = vmatprep.subr.bf16.mxu0 %v3328_v19  ;;  %v687_v18 = vld [vmem:[#allocation2 + $0x1218] sm:$0xff]  ;;  %v3348_v23 = vpack.c.bf16 %v693_v17, %v685_v16  ;;  %v750_v16 = vld [vmem:[#allocation2 + $0x1410] sm:$0xff] }
  0xee   :  { %3521 = vmatprep.subr.bf16.mxu1 %v3520_v24  ;;  %v695_v19 = vld [vmem:[#allocation2 + $0x1258] sm:$0xff]  ;;  %v684_v24 = vld [vmem:[#allocation2 + $0x1200] sm:$0xff] }
  0xef   :  { %v3540_v28 = vpack.c.bf16 %v695_v19, %v687_v18  ;;  %v3350_v35 = vpack.c.bf16 %v692_v22, %v684_v24  ;;  %v758_v18 = vld [vmem:[#allocation2 + $0x1450] sm:$0xff]  ;;  %v765_v19 = vld [vmem:[#allocation2 + $0x1488] sm:$0xff] }
  0xf0   :  { %3331 = vmatpush1.bf16.msra.mxu0 %v3330_v31  ;;  %v709_v31 = vld [vmem:[#allocation2 + $0x12c8] sm:$0xff]  ;;  %v3558_v22 = vpack.c.bf16 %v758_v18, %v750_v16  ;;  %v836_v18 = vld [vmem:[#allocation2 + $0x16c0] sm:$0xff] }
  0xf1   :  { %3523 = vmatpush1.bf16.msra.mxu1 %v3522_v33  ;;  %3333 = vmatprep.subr.bf16.mxu0 %v3332_v34  ;;  %v703_v33 = vld [vmem:[#allocation2 + $0x1298] sm:$0xff]  ;;  %v3352_v37 = vpack.c.bf16 %v709_v31, %v701_v30  ;;  %v766_v30 = vld [vmem:[#allocation2 + $0x1490] sm:$0xff] }
  0xf2   :  { %3525 = vmatprep.subr.bf16.mxu1 %v3524_v38  ;;  %v711_v34 = vld [vmem:[#allocation2 + $0x12d8] sm:$0xff]  ;;  %v700_v38 = vld [vmem:[#allocation2 + $0x1280] sm:$0xff] }
  0xf3   :  { %1086 = vmatmul.mubr.f32.vlgmr.msra.gmra.mrb[0].mxu0 %v4918_v26  ;;  %v3544_v41 = vpack.c.bf16 %v711_v34, %v703_v33  ;;  %v3354_v48 = vpack.c.bf16 %v708_v39, %v700_v38  ;;  %v774_v33 = vld [vmem:[#allocation2 + $0x14d0] sm:$0xff]  ;;  %v781_v34 = vld [vmem:[#allocation2 + $0x1508] sm:$0xff] }
  0xf4   :  { %3335 = vmatpush1.bf16.msra.mxu0 %v3334_v44  ;;  %1299 = vmatmul.mubr.f32.vlgmr.msra.gmra.mrb[0].mxu1 %v4918_v26  ;;  %v725_v44 = vld [vmem:[#allocation2 + $0x1348] sm:$0xff]  ;;  %v3562_v39 = vpack.c.bf16 %v774_v33, %v766_v30  ;;  %v852_v33 = vld [vmem:[#allocation2 + $0x1740] sm:$0xff] }
  0xf5   :  { %3527 = vmatpush1.bf16.msra.mxu1 %v3526_v46  ;;  %3337 = vmatprep.subr.bf16.mxu0 %v3336_v47  ;;  %v719_v46 = vld [vmem:[#allocation2 + $0x1318] sm:$0xff]  ;;  %v3356_v50 = vpack.c.bf16 %v725_v44, %v717_v43  ;;  %v782_v43 = vld [vmem:[#allocation2 + $0x1510] sm:$0xff] }
  0xf6   :  { %3529 = vmatprep.subr.bf16.mxu1 %v3528_v51  ;;  %1156 = vmatprep.mubr.f32.mxu0 %v4935_v55  ;;  %v727_v47 = vld [vmem:[#allocation2 + $0x1358] sm:$0xff]  ;;  %v716_v51 = vld [vmem:[#allocation2 + $0x1300] sm:$0xff] }
  0xf7   :  { %1369 = vmatprep.mubr.f32.mxu1 %v4935_v55  ;;  %v3548_v54 = vpack.c.bf16 %v727_v47, %v719_v46  ;;  %v3358_v62 = vpack.c.bf16 %v724_v52, %v716_v51  ;;  %v790_v46 = vld [vmem:[#allocation2 + $0x1550] sm:$0xff]  ;;  %v797_v47 = vld [vmem:[#allocation2 + $0x1588] sm:$0xff] }
  0xf8   :  { %3339 = vmatpush1.bf16.msra.mxu0 %v3338_v58  ;;  %v741_v58 = vld [vmem:[#allocation2 + $0x13c8] sm:$0xff]  ;;  %v3566_v52 = vpack.c.bf16 %v790_v46, %v782_v43  ;;  %v868_v46 = vld [vmem:[#allocation2 + $0x17c0] sm:$0xff] }
  0xf9   :  { %3531 = vmatpush1.bf16.msra.mxu1 %v3530_v59  ;;  %3341 = vmatprep.subr.bf16.mxu0 %v3340_v60  ;;  %v735_v59 = vld [vmem:[#allocation2 + $0x1398] sm:$0xff]  ;;  %v3360_v0 = vpack.c.bf16 %v741_v58, %v733_v57  ;;  %v798_v57 = vld [vmem:[#allocation2 + $0x1590] sm:$0xff] }
  0xfa   :  { %3533 = vmatprep.subr.bf16.mxu1 %v3532_v1  ;;  %v743_v60 = vld [vmem:[#allocation2 + $0x13d8] sm:$0xff]  ;;  %v732_v1 = vld [vmem:[#allocation2 + $0x1380] sm:$0xff] }
  0xfb   :  { %v3552_v4 = vpack.c.bf16 %v743_v60, %v735_v59  ;;  %v3362_v10 = vpack.c.bf16 %v740_v2, %v732_v1  ;;  %v806_v59 = vld [vmem:[#allocation2 + $0x15d0] sm:$0xff]  ;;  %v813_v60 = vld [vmem:[#allocation2 + $0x1608] sm:$0xff] }
  0xfc   :  { %3343 = vmatpush1.bf16.msra.mxu0 %v3342_v7  ;;  %v757_v7 = vld [vmem:[#allocation2 + $0x1448] sm:$0xff]  ;;  %v3570_v2 = vpack.c.bf16 %v806_v59, %v798_v57  ;;  %v120_v59 = vld [vmem:[#allocation2 + $0x60] sm:$0xff] }
  0xfd   :  { %3535 = vmatpush1.bf16.msra.mxu1 %v3534_v8  ;;  %3345 = vmatprep.subr.bf16.mxu0 %v3344_v9  ;;  %v751_v8 = vld [vmem:[#allocation2 + $0x1418] sm:$0xff]  ;;  %v3364_v13 = vpack.c.bf16 %v757_v7, %v749_v6  ;;  %v814_v6 = vld [vmem:[#allocation2 + $0x1610] sm:$0xff] }
  0xfe   :  { %3537 = vmatprep.subr.bf16.mxu1 %v3536_v14  ;;  %v759_v9 = vld [vmem:[#allocation2 + $0x1458] sm:$0xff]  ;;  %v748_v14 = vld [vmem:[#allocation2 + $0x1400] sm:$0xff] }
  0xff   :  { %v3556_v17 = vpack.c.bf16 %v759_v9, %v751_v8  ;;  %v3366_v24 = vpack.c.bf16 %v756_v15, %v748_v14  ;;  %v822_v8 = vld [vmem:[#allocation2 + $0x1650] sm:$0xff]  ;;  %v829_v9 = vld [vmem:[#allocation2 + $0x1688] sm:$0xff] }
 0x100   :  { %3347 = vmatpush1.bf16.msra.mxu0 %v3346_v20  ;;  %v773_v20 = vld [vmem:[#allocation2 + $0x14c8] sm:$0xff]  ;;  %v3574_v15 = vpack.c.bf16 %v822_v8, %v814_v6  ;;  %v136_v8 = vld [vmem:[#allocation2 + $0xe0] sm:$0xff] }
 0x101   :  { %3539 = vmatpush1.bf16.msra.mxu1 %v3538_v21  ;;  %3349 = vmatprep.subr.bf16.mxu0 %v3348_v23  ;;  %v767_v21 = vld [vmem:[#allocation2 + $0x1498] sm:$0xff]  ;;  %v3368_v27 = vpack.c.bf16 %v773_v20, %v765_v19  ;;  %v830_v19 = vld [vmem:[#allocation2 + $0x1690] sm:$0xff] }
 0x102   :  { %3541 = vmatprep.subr.bf16.mxu1 %v3540_v28  ;;  %v775_v23 = vld [vmem:[#allocation2 + $0x14d8] sm:$0xff]  ;;  %v764_v28 = vld [vmem:[#allocation2 + $0x1480] sm:$0xff] }
 0x103   :  { %v3560_v31 = vpack.c.bf16 %v775_v23, %v767_v21  ;;  %v3370_v38 = vpack.c.bf16 %v772_v29, %v764_v28  ;;  %v838_v21 = vld [vmem:[#allocation2 + $0x16d0] sm:$0xff]  ;;  %v845_v23 = vld [vmem:[#allocation2 + $0x1708] sm:$0xff] }
 0x104   :  { %3351 = vmatpush1.bf16.msra.mxu0 %v3350_v35  ;;  %v789_v35 = vld [vmem:[#allocation2 + $0x1548] sm:$0xff]  ;;  %v3578_v29 = vpack.c.bf16 %v838_v21, %v830_v19  ;;  %v152_v21 = vld [vmem:[#allocation2 + $0x160] sm:$0xff] }
 0x105   :  { %3543 = vmatpush1.bf16.msra.mxu1 %v3542_v36  ;;  %3353 = vmatprep.subr.bf16.mxu0 %v3352_v37  ;;  %v783_v36 = vld [vmem:[#allocation2 + $0x1518] sm:$0xff]  ;;  %v3372_v40 = vpack.c.bf16 %v789_v35, %v781_v34  ;;  %v846_v34 = vld [vmem:[#allocation2 + $0x1710] sm:$0xff] }
 0x106   :  { %3545 = vmatprep.subr.bf16.mxu1 %v3544_v41  ;;  %v791_v37 = vld [vmem:[#allocation2 + $0x1558] sm:$0xff]  ;;  %v780_v41 = vld [vmem:[#allocation2 + $0x1500] sm:$0xff] }
 0x107   :  { %v3564_v44 = vpack.c.bf16 %v791_v37, %v783_v36  ;;  %v3374_v51 = vpack.c.bf16 %v788_v42, %v780_v41  ;;  %v854_v36 = vld [vmem:[#allocation2 + $0x1750] sm:$0xff]  ;;  %v861_v37 = vld [vmem:[#allocation2 + $0x1788] sm:$0xff] }
 0x108   :  { %3355 = vmatpush1.bf16.msra.mxu0 %v3354_v48  ;;  %v805_v48 = vld [vmem:[#allocation2 + $0x15c8] sm:$0xff]  ;;  %v3582_v42 = vpack.c.bf16 %v854_v36, %v846_v34  ;;  %v160_v34 = vld [vmem:[#allocation2 + $0x1a0] sm:$0xff]  ;;  %v162_v36 = vld [vmem:[#allocation2 + $0x1b0] sm:$0xff] }
 0x109   :  { %3547 = vmatpush1.bf16.msra.mxu1 %v3546_v49  ;;  %3357 = vmatprep.subr.bf16.mxu0 %v3356_v50  ;;  %v799_v49 = vld [vmem:[#allocation2 + $0x1598] sm:$0xff]  ;;  %v3376_v53 = vpack.c.bf16 %v805_v48, %v797_v47  ;;  %v862_v47 = vld [vmem:[#allocation2 + $0x1790] sm:$0xff] }
 0x10a   :  { %3549 = vmatprep.subr.bf16.mxu1 %v3548_v54  ;;  %v807_v50 = vld [vmem:[#allocation2 + $0x15d8] sm:$0xff]  ;;  %v796_v54 = vld [vmem:[#allocation2 + $0x1580] sm:$0xff] }
 0x10b   :  { %v3568_v58 = vpack.c.bf16 %v807_v50, %v799_v49  ;;  %v3378_v1 = vpack.c.bf16 %v804_v56, %v796_v54  ;;  %v870_v49 = vld [vmem:[#allocation2 + $0x17d0] sm:$0xff]  ;;  %v113_v50 = vld [vmem:[#allocation2 + $0x28] sm:$0xff] }
 0x10c   :  { %3359 = vmatpush1.bf16.msra.mxu0 %v3358_v62  ;;  %v821_v62 = vld [vmem:[#allocation2 + $0x1648] sm:$0xff]  ;;  %v3586_v56 = vpack.c.bf16 %v870_v49, %v862_v47  ;;  %v184_v47 = vld [vmem:[#allocation2 + $0x260] sm:$0xff] }
 0x10d   :  { %3551 = vmatpush1.bf16.msra.mxu1 %v3550_v63  ;;  %3361 = vmatprep.subr.bf16.mxu0 %v3360_v0  ;;  %v815_v63 = vld [vmem:[#allocation2 + $0x1618] sm:$0xff]  ;;  %v3380_v3 = vpack.c.bf16 %v821_v62, %v813_v60  ;;  %v114_v60 = vld [vmem:[#allocation2 + $0x30] sm:$0xff] }
 0x10e   :  { %3553 = vmatprep.subr.bf16.mxu1 %v3552_v4  ;;  %v823_v0 = vld [vmem:[#allocation2 + $0x1658] sm:$0xff]  ;;  %v812_v4 = vld [vmem:[#allocation2 + $0x1600] sm:$0xff] }
 0x10f   :  { %v3572_v7 = vpack.c.bf16 %v823_v0, %v815_v63  ;;  %v3382_v14 = vpack.c.bf16 %v820_v5, %v812_v4  ;;  %v122_v63 = vld [vmem:[#allocation2 + $0x70] sm:$0xff]  ;;  %v129_v0 = vld [vmem:[#allocation2 + $0xa8] sm:$0xff] }
 0x110   :  { %3363 = vmatpush1.bf16.msra.mxu0 %v3362_v10  ;;  %v837_v10 = vld [vmem:[#allocation2 + $0x16c8] sm:$0xff]  ;;  %v3782_v5 = vpack.c.bf16 %v122_v63, %v114_v60  ;;  %v200_v60 = vld [vmem:[#allocation2 + $0x2e0] sm:$0xff] }
 0x111   :  { %3555 = vmatpush1.bf16.msra.mxu1 %v3554_v12  ;;  %3365 = vmatprep.subr.bf16.mxu0 %v3364_v13  ;;  %v831_v12 = vld [vmem:[#allocation2 + $0x1698] sm:$0xff]  ;;  %v3384_v16 = vpack.c.bf16 %v837_v10, %v829_v9  ;;  %v130_v9 = vld [vmem:[#allocation2 + $0xb0] sm:$0xff] }
 0x112   :  { %3557 = vmatprep.subr.bf16.mxu1 %v3556_v17  ;;  %v839_v13 = vld [vmem:[#allocation2 + $0x16d8] sm:$0xff]  ;;  %v828_v17 = vld [vmem:[#allocation2 + $0x1680] sm:$0xff] }
 0x113   :  { %v3576_v20 = vpack.c.bf16 %v839_v13, %v831_v12  ;;  %v3386_v28 = vpack.c.bf16 %v836_v18, %v828_v17  ;;  %v138_v12 = vld [vmem:[#allocation2 + $0xf0] sm:$0xff]  ;;  %v145_v13 = vld [vmem:[#allocation2 + $0x128] sm:$0xff] }
 0x114   :  { %3367 = vmatpush1.bf16.msra.mxu0 %v3366_v24  ;;  %v853_v24 = vld [vmem:[#allocation2 + $0x1748] sm:$0xff]  ;;  %v3786_v18 = vpack.c.bf16 %v138_v12, %v130_v9  ;;  %v216_v9 = vld [vmem:[#allocation2 + $0x360] sm:$0xff] }
 0x115   :  { %3559 = vmatpush1.bf16.msra.mxu1 %v3558_v22  ;;  %3369 = vmatprep.subr.bf16.mxu0 %v3368_v27  ;;  %v847_v22 = vld [vmem:[#allocation2 + $0x1718] sm:$0xff]  ;;  %v3388_v30 = vpack.c.bf16 %v853_v24, %v845_v23  ;;  %v146_v23 = vld [vmem:[#allocation2 + $0x130] sm:$0xff] }
 0x116   :  { %3561 = vmatprep.subr.bf16.mxu1 %v3560_v31  ;;  %v855_v27 = vld [vmem:[#allocation2 + $0x1758] sm:$0xff]  ;;  %v844_v31 = vld [vmem:[#allocation2 + $0x1700] sm:$0xff] }
 0x117   :  { %v3580_v35 = vpack.c.bf16 %v855_v27, %v847_v22  ;;  %v3390_v41 = vpack.c.bf16 %v852_v33, %v844_v31  ;;  %v154_v22 = vld [vmem:[#allocation2 + $0x170] sm:$0xff]  ;;  %v161_v27 = vld [vmem:[#allocation2 + $0x1a8] sm:$0xff] }
 0x118   :  { %3371 = vmatpush1.bf16.msra.mxu0 %v3370_v38  ;;  %v869_v38 = vld [vmem:[#allocation2 + $0x17c8] sm:$0xff]  ;;  %v3790_v31 = vpack.c.bf16 %v154_v22, %v146_v23  ;;  %v232_v23 = vld [vmem:[#allocation2 + $0x3e0] sm:$0xff] }
 0x119   :  { %3563 = vmatpush1.bf16.msra.mxu1 %v3562_v39  ;;  %3373 = vmatprep.subr.bf16.mxu0 %v3372_v40  ;;  %v863_v39 = vld [vmem:[#allocation2 + $0x1798] sm:$0xff]  ;;  %v3392_v43 = vpack.c.bf16 %v869_v38, %v861_v37  ;;  %v170_v38 = vld [vmem:[#allocation2 + $0x1f0] sm:$0xff] }
 0x11a   :  { %3565 = vmatprep.subr.bf16.mxu1 %v3564_v44  ;;  %v871_v40 = vld [vmem:[#allocation2 + $0x17d8] sm:$0xff]  ;;  %v860_v44 = vld [vmem:[#allocation2 + $0x1780] sm:$0xff] }
 0x11b   :  { %v3584_v48 = vpack.c.bf16 %v871_v40, %v863_v39  ;;  %v3394_v54 = vpack.c.bf16 %v868_v46, %v860_v44  ;;  %v177_v39 = vld [vmem:[#allocation2 + $0x228] sm:$0xff]  ;;  %v176_v46 = vld [vmem:[#allocation2 + $0x220] sm:$0xff] }
 0x11c   :  { %3375 = vmatpush1.bf16.msra.mxu0 %v3374_v51  ;;  %v121_v51 = vld [vmem:[#allocation2 + $0x68] sm:$0xff] }
 0x11d   :  { %3567 = vmatpush1.bf16.msra.mxu1 %v3566_v52  ;;  %3377 = vmatprep.subr.bf16.mxu0 %v3376_v53  ;;  %v115_v52 = vld [vmem:[#allocation2 + $0x38] sm:$0xff]  ;;  %v3588_v57 = vpack.c.bf16 %v121_v51, %v113_v50  ;;  %v185_v40 = vld [vmem:[#allocation2 + $0x268] sm:$0xff]  ;;  %v186_v50 = vld [vmem:[#allocation2 + $0x270] sm:$0xff] }
 0x11e   :  { %3569 = vmatprep.subr.bf16.mxu1 %v3568_v58  ;;  %v123_v53 = vld [vmem:[#allocation2 + $0x78] sm:$0xff]  ;;  %v112_v58 = vld [vmem:[#allocation2 + $0x20] sm:$0xff]  ;;  %v3604_v44 = vpack.c.bf16 %v185_v40, %v177_v39  ;;  %v193_v51 = vld [vmem:[#allocation2 + $0x2a8] sm:$0xff] }
 0x11f   :  { %v3780_v62 = vpack.c.bf16 %v123_v53, %v115_v52  ;;  %v3590_v4 = vpack.c.bf16 %v120_v59, %v112_v58  ;;  %v201_v52 = vld [vmem:[#allocation2 + $0x2e8] sm:$0xff]  ;;  %v195_v53 = vld [vmem:[#allocation2 + $0x2b8] sm:$0xff]  ;;  %v192_v59 = vld [vmem:[#allocation2 + $0x2a0] sm:$0xff] }
 0x120   :  { %3379 = vmatpush1.bf16.msra.mxu0 %v3378_v1  ;;  %v137_v1 = vld [vmem:[#allocation2 + $0xe8] sm:$0xff]  ;;  %v3608_v58 = vpack.c.bf16 %v201_v52, %v193_v51  ;;  %v250_v39 = vld [vmem:[#allocation2 + $0x470] sm:$0xff] }
 0x121   :  { %3571 = vmatpush1.bf16.msra.mxu1 %v3570_v2  ;;  %3381 = vmatprep.subr.bf16.mxu0 %v3380_v3  ;;  %v131_v2 = vld [vmem:[#allocation2 + $0xb8] sm:$0xff]  ;;  %v3592_v6 = vpack.c.bf16 %v137_v1, %v129_v0  ;;  %v202_v0 = vld [vmem:[#allocation2 + $0x2f0] sm:$0xff]  ;;  %v209_v1 = vld [vmem:[#allocation2 + $0x328] sm:$0xff] }
 0x122   :  { %3573 = vmatprep.subr.bf16.mxu1 %v3572_v7  ;;  %v139_v3 = vld [vmem:[#allocation2 + $0xf8] sm:$0xff]  ;;  %v128_v7 = vld [vmem:[#allocation2 + $0xa0] sm:$0xff]  ;;  %v257_v40 = vld [vmem:[#allocation2 + $0x4a8] sm:$0xff] }
 0x123   :  { %v3784_v10 = vpack.c.bf16 %v139_v3, %v131_v2  ;;  %v3594_v17 = vpack.c.bf16 %v136_v8, %v128_v7  ;;  %v217_v2 = vld [vmem:[#allocation2 + $0x368] sm:$0xff]  ;;  %v211_v3 = vld [vmem:[#allocation2 + $0x338] sm:$0xff]  ;;  %v208_v8 = vld [vmem:[#allocation2 + $0x320] sm:$0xff] }
 0x124   :  { %3383 = vmatpush1.bf16.msra.mxu0 %v3382_v14  ;;  %v153_v14 = vld [vmem:[#allocation2 + $0x168] sm:$0xff]  ;;  %v3612_v7 = vpack.c.bf16 %v217_v2, %v209_v1  ;;  %v266_v51 = vld [vmem:[#allocation2 + $0x4f0] sm:$0xff] }
 0x125   :  { %3575 = vmatpush1.bf16.msra.mxu1 %v3574_v15  ;;  %3385 = vmatprep.subr.bf16.mxu0 %v3384_v16  ;;  %v147_v15 = vld [vmem:[#allocation2 + $0x138] sm:$0xff]  ;;  %v3596_v19 = vpack.c.bf16 %v153_v14, %v145_v13  ;;  %v218_v13 = vld [vmem:[#allocation2 + $0x370] sm:$0xff]  ;;  %v225_v14 = vld [vmem:[#allocation2 + $0x3a8] sm:$0xff] }
 0x126   :  { %3577 = vmatprep.subr.bf16.mxu1 %v3576_v20  ;;  %v155_v16 = vld [vmem:[#allocation2 + $0x178] sm:$0xff]  ;;  %v144_v20 = vld [vmem:[#allocation2 + $0x120] sm:$0xff]  ;;  %v273_v52 = vld [vmem:[#allocation2 + $0x528] sm:$0xff] }
 0x127   :  { %v3788_v24 = vpack.c.bf16 %v155_v16, %v147_v15  ;;  %v233_v15 = vld [vmem:[#allocation2 + $0x3e8] sm:$0xff]  ;;  %v227_v16 = vld [vmem:[#allocation2 + $0x3b8] sm:$0xff]  ;;  %v282_v1 = vld [vmem:[#allocation2 + $0x570] sm:$0xff] }
 0x128   :  { %3387 = vmatpush1.bf16.msra.mxu0 %v3386_v28  ;;  %v169_v28 = vld [vmem:[#allocation2 + $0x1e8] sm:$0xff] }
 0x129   :  { %3579 = vmatpush1.bf16.msra.mxu1 %v3578_v29  ;;  %3389 = vmatprep.subr.bf16.mxu0 %v3388_v30  ;;  %v163_v29 = vld [vmem:[#allocation2 + $0x1b8] sm:$0xff]  ;;  %v3600_v33 = vpack.c.bf16 %v169_v28, %v161_v27  ;;  %v234_v27 = vld [vmem:[#allocation2 + $0x3f0] sm:$0xff]  ;;  %v241_v28 = vld [vmem:[#allocation2 + $0x428] sm:$0xff] }
 0x12a   :  { %3581 = vmatprep.subr.bf16.mxu1 %v3580_v35  ;;  %v171_v30 = vld [vmem:[#allocation2 + $0x1f8] sm:$0xff]  ;;  %v168_v35 = vld [vmem:[#allocation2 + $0x1e0] sm:$0xff]  ;;  %v289_v2 = vld [vmem:[#allocation2 + $0x5a8] sm:$0xff] }
 0x12b   :  { %v3792_v37 = vpack.c.bf16 %v171_v30, %v163_v29  ;;  %v249_v29 = vld [vmem:[#allocation2 + $0x468] sm:$0xff]  ;;  %v243_v30 = vld [vmem:[#allocation2 + $0x438] sm:$0xff] }
 0x12c   :  { %3391 = vmatpush1.bf16.msra.mxu0 %v3390_v41  ;;  %v179_v41 = vld [vmem:[#allocation2 + $0x238] sm:$0xff] }
 0x12d   :  { %3583 = vmatpush1.bf16.msra.mxu1 %v3582_v42  ;;  %3393 = vmatprep.subr.bf16.mxu0 %v3392_v43  ;;  %v187_v42 = vld [vmem:[#allocation2 + $0x278] sm:$0xff]  ;;  %v3602_v43 = vpack.c.bf16 %v168_v35, %v160_v34  ;;  %v3620_v34 = vpack.c.bf16 %v249_v29, %v241_v28  ;;  %v240_v35 = vld [vmem:[#allocation2 + $0x420] sm:$0xff]  ;;  %v314_v28 = vld [vmem:[#allocation2 + $0x670] sm:$0xff] }
 0x12e   :  { %3585 = vmatprep.subr.bf16.mxu1 %v3584_v48  ;;  %v178_v48 = vld [vmem:[#allocation2 + $0x230] sm:$0xff]  ;;  %v3796_v49 = vpack.c.bf16 %v187_v42, %v179_v41  ;;  %v265_v41 = vld [vmem:[#allocation2 + $0x4e8] sm:$0xff]  ;;  %v259_v42 = vld [vmem:[#allocation2 + $0x4b8] sm:$0xff] }
 0x12f   :  { %v321_v29 = vld [vmem:[#allocation2 + $0x6a8] sm:$0xff] }
 0x130   :  { %3395 = vmatpush1.bf16.msra.mxu0 %v3394_v54  ;;  %v203_v54 = vld [vmem:[#allocation2 + $0x2f8] sm:$0xff] }
 0x131   :  { %3587 = vmatpush1.bf16.msra.mxu1 %v3586_v56  ;;  %3589 = vmatprep.subr.bf16.mxu0 %v3588_v57  ;;  %v3606_v56 = vpack.c.bf16 %v184_v47, %v176_v46  ;;  %v3798_v57 = vpack.c.bf16 %v186_v50, %v178_v48  ;;  %v3800_v63 = vpack.c.bf16 %v203_v54, %v195_v53  ;;  %v256_v47 = vld [vmem:[#allocation2 + $0x4a0] sm:$0xff]  ;;  %v281_v53 = vld [vmem:[#allocation2 + $0x568] sm:$0xff]  ;;  %v275_v54 = vld [vmem:[#allocation2 + $0x538] sm:$0xff] }
 0x132   :  { %3781 = vmatprep.subr.bf16.mxu1 %v3780_v62  ;;  %v194_v62 = vld [vmem:[#allocation2 + $0x2b0] sm:$0xff]  ;;  %v3624_v46 = vpack.c.bf16 %v265_v41, %v257_v40  ;;  %v264_v48 = vld [vmem:[#allocation2 + $0x4e0] sm:$0xff]  ;;  %v337_v41 = vld [vmem:[#allocation2 + $0x728] sm:$0xff] }
 0x133   :  { %1157 = vmatmul.mubr.f32.vlgmr.msra.gmra.mrb[0].mxu0 %v4931_v45  ;;  %v330_v40 = vld [vmem:[#allocation2 + $0x6f0] sm:$0xff] }
 0x134   :  { %1370 = vmatmul.mubr.f32.vlgmr.msra.gmra.mrb[0].mxu1 %v4931_v45  ;;  %3591 = vmatpush1.bf16.msra.mxu0 %v3590_v4  ;;  %v3598_v45 = vpack.c.bf16 %v152_v21, %v144_v20  ;;  %v219_v4 = vld [vmem:[#allocation2 + $0x378] sm:$0xff]  ;;  %v3616_v20 = vpack.c.bf16 %v233_v15, %v225_v14  ;;  %v224_v21 = vld [vmem:[#allocation2 + $0x3a0] sm:$0xff]  ;;  %v298_v14 = vld [vmem:[#allocation2 + $0x5f0] sm:$0xff] }
 0x135   :  { %3783 = vmatpush1.bf16.msra.mxu1 %v3782_v5  ;;  %3593 = vmatprep.subr.bf16.mxu0 %v3592_v6  ;;  %v3610_v5 = vpack.c.bf16 %v200_v60, %v192_v59  ;;  %v3802_v6 = vpack.c.bf16 %v202_v0, %v194_v62  ;;  %v3804_v12 = vpack.c.bf16 %v219_v4, %v211_v3  ;;  %v272_v60 = vld [vmem:[#allocation2 + $0x520] sm:$0xff]  ;;  %v297_v3 = vld [vmem:[#allocation2 + $0x5e8] sm:$0xff]  ;;  %v291_v4 = vld [vmem:[#allocation2 + $0x5b8] sm:$0xff] }
 0x136   :  { %3785 = vmatprep.subr.bf16.mxu1 %v3784_v10  ;;  %1440 = vmatprep.mubr.f32.mxu0 %v4911_v32  ;;  %v210_v10 = vld [vmem:[#allocation2 + $0x330] sm:$0xff]  ;;  %v3628_v59 = vpack.c.bf16 %v281_v53, %v273_v52  ;;  %v280_v62 = vld [vmem:[#allocation2 + $0x560] sm:$0xff]  ;;  %v305_v15 = vld [vmem:[#allocation2 + $0x628] sm:$0xff] }
 0x137   :  { %1653 = vmatprep.mubr.f32.mxu1 %v4911_v32  ;;  %v3794_v32 = vpack.c.bf16 %v170_v38, %v162_v36  ;;  %v248_v36 = vld [vmem:[#allocation2 + $0x460] sm:$0xff]  ;;  %v346_v52 = vld [vmem:[#allocation2 + $0x770] sm:$0xff]  ;;  %v353_v53 = vld [vmem:[#allocation2 + $0x7a8] sm:$0xff] }
 0x138   :  { %3595 = vmatpush1.bf16.msra.mxu0 %v3594_v17  ;;  %v235_v17 = vld [vmem:[#allocation2 + $0x3f8] sm:$0xff] }
 0x139   :  { %3787 = vmatpush1.bf16.msra.mxu1 %v3786_v18  ;;  %3597 = vmatprep.subr.bf16.mxu0 %v3596_v19  ;;  %v3614_v18 = vpack.c.bf16 %v216_v9, %v208_v8  ;;  %v3806_v19 = vpack.c.bf16 %v218_v13, %v210_v10  ;;  %v3808_v22 = vpack.c.bf16 %v235_v17, %v227_v16  ;;  %v288_v9 = vld [vmem:[#allocation2 + $0x5a0] sm:$0xff]  ;;  %v313_v16 = vld [vmem:[#allocation2 + $0x668] sm:$0xff]  ;;  %v307_v17 = vld [vmem:[#allocation2 + $0x638] sm:$0xff] }
 0x13a   :  { %3789 = vmatprep.subr.bf16.mxu1 %v3788_v24  ;;  %v226_v24 = vld [vmem:[#allocation2 + $0x3b0] sm:$0xff]  ;;  %v3632_v8 = vpack.c.bf16 %v297_v3, %v289_v2  ;;  %v296_v10 = vld [vmem:[#allocation2 + $0x5e0] sm:$0xff]  ;;  %v369_v3 = vld [vmem:[#allocation2 + $0x828] sm:$0xff] }
 0x13b   :  { %v362_v2 = vld [vmem:[#allocation2 + $0x7f0] sm:$0xff] }
 0x13c   :  { %3599 = vmatpush1.bf16.msra.mxu0 %v3598_v45  ;;  %v251_v45 = vld [vmem:[#allocation2 + $0x478] sm:$0xff] }
 0x13d   :  { %3791 = vmatpush1.bf16.msra.mxu1 %v3790_v31  ;;  %3601 = vmatprep.subr.bf16.mxu0 %v3600_v33  ;;  %v3618_v31 = vpack.c.bf16 %v232_v23, %v224_v21  ;;  %v3810_v33 = vpack.c.bf16 %v234_v27, %v226_v24  ;;  %v3812_v38 = vpack.c.bf16 %v251_v45, %v243_v30  ;;  %v304_v23 = vld [vmem:[#allocation2 + $0x620] sm:$0xff]  ;;  %v329_v30 = vld [vmem:[#allocation2 + $0x6e8] sm:$0xff]  ;;  %v323_v45 = vld [vmem:[#allocation2 + $0x6b8] sm:$0xff] }
 0x13e   :  { %3793 = vmatprep.subr.bf16.mxu1 %v3792_v37  ;;  %v242_v37 = vld [vmem:[#allocation2 + $0x430] sm:$0xff]  ;;  %v3636_v21 = vpack.c.bf16 %v313_v16, %v305_v15  ;;  %v312_v24 = vld [vmem:[#allocation2 + $0x660] sm:$0xff]  ;;  %v385_v16 = vld [vmem:[#allocation2 + $0x8a8] sm:$0xff] }
 0x13f   :  { %v378_v15 = vld [vmem:[#allocation2 + $0x870] sm:$0xff] }
 0x140   :  { %3603 = vmatpush1.bf16.msra.mxu0 %v3602_v43  ;;  %v267_v43 = vld [vmem:[#allocation2 + $0x4f8] sm:$0xff] }
 0x141   :  { %3795 = vmatpush1.bf16.msra.mxu1 %v3794_v32  ;;  %3605 = vmatprep.subr.bf16.mxu0 %v3604_v44  ;;  %v3622_v32 = vpack.c.bf16 %v248_v36, %v240_v35  ;;  %v3814_v44 = vpack.c.bf16 %v250_v39, %v242_v37  ;;  %v3816_v50 = vpack.c.bf16 %v267_v43, %v259_v42  ;;  %v320_v36 = vld [vmem:[#allocation2 + $0x6a0] sm:$0xff]  ;;  %v345_v42 = vld [vmem:[#allocation2 + $0x768] sm:$0xff]  ;;  %v339_v43 = vld [vmem:[#allocation2 + $0x738] sm:$0xff] }
 0x142   :  { %3797 = vmatprep.subr.bf16.mxu1 %v3796_v49  ;;  %v258_v49 = vld [vmem:[#allocation2 + $0x4b0] sm:$0xff]  ;;  %v3640_v35 = vpack.c.bf16 %v329_v30, %v321_v29  ;;  %v328_v37 = vld [vmem:[#allocation2 + $0x6e0] sm:$0xff]  ;;  %v401_v30 = vld [vmem:[#allocation2 + $0x928] sm:$0xff] }
 0x143   :  { %v394_v29 = vld [vmem:[#allocation2 + $0x8f0] sm:$0xff] }
 0x144   :  { %3607 = vmatpush1.bf16.msra.mxu0 %v3606_v56  ;;  %v283_v56 = vld [vmem:[#allocation2 + $0x578] sm:$0xff] }
 0x145   :  { %3799 = vmatpush1.bf16.msra.mxu1 %v3798_v57  ;;  %3609 = vmatprep.subr.bf16.mxu0 %v3608_v58  ;;  %v3626_v57 = vpack.c.bf16 %v264_v48, %v256_v47  ;;  %v3818_v58 = vpack.c.bf16 %v266_v51, %v258_v49  ;;  %v3820_v0 = vpack.c.bf16 %v283_v56, %v275_v54  ;;  %v336_v48 = vld [vmem:[#allocation2 + $0x720] sm:$0xff]  ;;  %v361_v54 = vld [vmem:[#allocation2 + $0x7e8] sm:$0xff]  ;;  %v355_v56 = vld [vmem:[#allocation2 + $0x7b8] sm:$0xff] }
 0x146   :  { %3801 = vmatprep.subr.bf16.mxu1 %v3800_v63  ;;  %v274_v63 = vld [vmem:[#allocation2 + $0x530] sm:$0xff]  ;;  %v3644_v47 = vpack.c.bf16 %v345_v42, %v337_v41  ;;  %v344_v49 = vld [vmem:[#allocation2 + $0x760] sm:$0xff]  ;;  %v417_v42 = vld [vmem:[#allocation2 + $0x9a8] sm:$0xff] }
 0x147   :  { %v410_v41 = vld [vmem:[#allocation2 + $0x970] sm:$0xff] }
 0x148   :  { %3611 = vmatpush1.bf16.msra.mxu0 %v3610_v5  ;;  %v299_v5 = vld [vmem:[#allocation2 + $0x5f8] sm:$0xff] }
 0x149   :  { %3803 = vmatpush1.bf16.msra.mxu1 %v3802_v6  ;;  %3613 = vmatprep.subr.bf16.mxu0 %v3612_v7  ;;  %v3630_v6 = vpack.c.bf16 %v280_v62, %v272_v60  ;;  %v3822_v7 = vpack.c.bf16 %v282_v1, %v274_v63  ;;  %v3824_v13 = vpack.c.bf16 %v299_v5, %v291_v4  ;;  %v352_v62 = vld [vmem:[#allocation2 + $0x7a0] sm:$0xff]  ;;  %v377_v4 = vld [vmem:[#allocation2 + $0x868] sm:$0xff]  ;;  %v371_v5 = vld [vmem:[#allocation2 + $0x838] sm:$0xff] }
 0x14a   :  { %3805 = vmatprep.subr.bf16.mxu1 %v3804_v12  ;;  %v290_v12 = vld [vmem:[#allocation2 + $0x5b0] sm:$0xff]  ;;  %v3648_v60 = vpack.c.bf16 %v361_v54, %v353_v53  ;;  %v360_v63 = vld [vmem:[#allocation2 + $0x7e0] sm:$0xff]  ;;  %v433_v53 = vld [vmem:[#allocation2 + $0xa28] sm:$0xff] }
 0x14b   :  { %v441_v54 = vld [vmem:[#allocation2 + $0xa68] sm:$0xff] }
 0x14c   :  { %3615 = vmatpush1.bf16.msra.mxu0 %v3614_v18  ;;  %v315_v18 = vld [vmem:[#allocation2 + $0x678] sm:$0xff] }
 0x14d   :  { %3807 = vmatpush1.bf16.msra.mxu1 %v3806_v19  ;;  %3617 = vmatprep.subr.bf16.mxu0 %v3616_v20  ;;  %v3634_v19 = vpack.c.bf16 %v296_v10, %v288_v9  ;;  %v3826_v20 = vpack.c.bf16 %v298_v14, %v290_v12  ;;  %v3828_v27 = vpack.c.bf16 %v315_v18, %v307_v17  ;;  %v368_v10 = vld [vmem:[#allocation2 + $0x820] sm:$0xff]  ;;  %v393_v17 = vld [vmem:[#allocation2 + $0x8e8] sm:$0xff]  ;;  %v387_v18 = vld [vmem:[#allocation2 + $0x8b8] sm:$0xff] }
 0x14e   :  { %3809 = vmatprep.subr.bf16.mxu1 %v3808_v22  ;;  %v306_v22 = vld [vmem:[#allocation2 + $0x630] sm:$0xff]  ;;  %v3652_v9 = vpack.c.bf16 %v377_v4, %v369_v3  ;;  %v376_v12 = vld [vmem:[#allocation2 + $0x860] sm:$0xff]  ;;  %v457_v3 = vld [vmem:[#allocation2 + $0xae8] sm:$0xff] }
 0x14f   :  { %v451_v4 = vld [vmem:[#allocation2 + $0xab8] sm:$0xff] }
 0x150   :  { %3619 = vmatpush1.bf16.msra.mxu0 %v3618_v31  ;;  %v331_v31 = vld [vmem:[#allocation2 + $0x6f8] sm:$0xff] }
 0x151   :  { %3811 = vmatpush1.bf16.msra.mxu1 %v3810_v33  ;;  %3621 = vmatprep.subr.bf16.mxu0 %v3620_v34  ;;  %v3638_v33 = vpack.c.bf16 %v312_v24, %v304_v23  ;;  %v3830_v34 = vpack.c.bf16 %v314_v28, %v306_v22  ;;  %v3832_v39 = vpack.c.bf16 %v331_v31, %v323_v45  ;;  %v384_v24 = vld [vmem:[#allocation2 + $0x8a0] sm:$0xff]  ;;  %v409_v45 = vld [vmem:[#allocation2 + $0x968] sm:$0xff]  ;;  %v403_v31 = vld [vmem:[#allocation2 + $0x938] sm:$0xff] }
 0x152   :  { %3813 = vmatprep.subr.bf16.mxu1 %v3812_v38  ;;  %v322_v38 = vld [vmem:[#allocation2 + $0x6b0] sm:$0xff]  ;;  %v3656_v23 = vpack.c.bf16 %v393_v17, %v385_v16  ;;  %v392_v22 = vld [vmem:[#allocation2 + $0x8e0] sm:$0xff]  ;;  %v473_v16 = vld [vmem:[#allocation2 + $0xb68] sm:$0xff] }
 0x153   :  { %v467_v17 = vld [vmem:[#allocation2 + $0xb38] sm:$0xff] }
 0x154   :  { %3623 = vmatpush1.bf16.msra.mxu0 %v3622_v32  ;;  %v347_v32 = vld [vmem:[#allocation2 + $0x778] sm:$0xff] }
 0x155   :  { %3815 = vmatpush1.bf16.msra.mxu1 %v3814_v44  ;;  %3625 = vmatprep.subr.bf16.mxu0 %v3624_v46  ;;  %v3642_v44 = vpack.c.bf16 %v328_v37, %v320_v36  ;;  %v3834_v46 = vpack.c.bf16 %v330_v40, %v322_v38  ;;  %v3836_v51 = vpack.c.bf16 %v347_v32, %v339_v43  ;;  %v400_v37 = vld [vmem:[#allocation2 + $0x920] sm:$0xff]  ;;  %v425_v43 = vld [vmem:[#allocation2 + $0x9e8] sm:$0xff]  ;;  %v419_v32 = vld [vmem:[#allocation2 + $0x9b8] sm:$0xff] }
 0x156   :  { %3817 = vmatprep.subr.bf16.mxu1 %v3816_v50  ;;  %v338_v50 = vld [vmem:[#allocation2 + $0x730] sm:$0xff]  ;;  %v3660_v36 = vpack.c.bf16 %v409_v45, %v401_v30  ;;  %v408_v38 = vld [vmem:[#allocation2 + $0x960] sm:$0xff]  ;;  %v489_v30 = vld [vmem:[#allocation2 + $0xbe8] sm:$0xff] }
 0x157   :  { %v483_v45 = vld [vmem:[#allocation2 + $0xbb8] sm:$0xff] }
 0x158   :  { %3627 = vmatpush1.bf16.msra.mxu0 %v3626_v57  ;;  %v363_v57 = vld [vmem:[#allocation2 + $0x7f8] sm:$0xff] }
 0x159   :  { %3819 = vmatpush1.bf16.msra.mxu1 %v3818_v58  ;;  %3629 = vmatprep.subr.bf16.mxu0 %v3628_v59  ;;  %v3646_v58 = vpack.c.bf16 %v344_v49, %v336_v48  ;;  %v3838_v59 = vpack.c.bf16 %v346_v52, %v338_v50  ;;  %v3840_v1 = vpack.c.bf16 %v363_v57, %v355_v56  ;;  %v416_v48 = vld [vmem:[#allocation2 + $0x9a0] sm:$0xff]  ;;  %v418_v50 = vld [vmem:[#allocation2 + $0x9b0] sm:$0xff]  ;;  %v435_v56 = vld [vmem:[#allocation2 + $0xa38] sm:$0xff] }
 0x15a   :  { %3821 = vmatprep.subr.bf16.mxu1 %v3820_v0  ;;  %v354_v0 = vld [vmem:[#allocation2 + $0x7b0] sm:$0xff]  ;;  %v424_v49 = vld [vmem:[#allocation2 + $0x9e0] sm:$0xff]  ;;  %v443_v57 = vld [vmem:[#allocation2 + $0xa78] sm:$0xff] }
 0x15b   :  { %v426_v52 = vld [vmem:[#allocation2 + $0x9f0] sm:$0xff] }
 0x15c   :  { %3631 = vmatpush1.bf16.msra.mxu0 %v3630_v6  ;;  %v379_v6 = vld [vmem:[#allocation2 + $0x878] sm:$0xff] }
 0x15d   :  { %3823 = vmatpush1.bf16.msra.mxu1 %v3822_v7  ;;  %3633 = vmatprep.subr.bf16.mxu0 %v3632_v8  ;;  %v3650_v7 = vpack.c.bf16 %v360_v63, %v352_v62  ;;  %v3842_v8 = vpack.c.bf16 %v362_v2, %v354_v0  ;;  %v3844_v14 = vpack.c.bf16 %v379_v6, %v371_v5  ;;  %v440_v62 = vld [vmem:[#allocation2 + $0xa60] sm:$0xff]  ;;  %v434_v63 = vld [vmem:[#allocation2 + $0xa30] sm:$0xff]  ;;  %v449_v2 = vld [vmem:[#allocation2 + $0xaa8] sm:$0xff] }
 0x15e   :  { %3825 = vmatprep.subr.bf16.mxu1 %v3824_v13  ;;  %v370_v13 = vld [vmem:[#allocation2 + $0x830] sm:$0xff]  ;;  %v3860_v0 = vpack.c.bf16 %v443_v57, %v435_v56  ;;  %v459_v5 = vld [vmem:[#allocation2 + $0xaf8] sm:$0xff] }
 0x15f   :  { %v523_v56 = vld [vmem:[#allocation2 + $0xcf8] sm:$0xff] }
 0x160   :  { %3635 = vmatpush1.bf16.msra.mxu0 %v3634_v19  ;;  %v395_v19 = vld [vmem:[#allocation2 + $0x8f8] sm:$0xff] }
 0x161   :  { %3827 = vmatpush1.bf16.msra.mxu1 %v3826_v20  ;;  %3637 = vmatprep.subr.bf16.mxu0 %v3636_v21  ;;  %v3654_v20 = vpack.c.bf16 %v376_v12, %v368_v10  ;;  %v3846_v21 = vpack.c.bf16 %v378_v15, %v370_v13  ;;  %v3848_v28 = vpack.c.bf16 %v395_v19, %v387_v18  ;;  %v456_v10 = vld [vmem:[#allocation2 + $0xae0] sm:$0xff]  ;;  %v450_v12 = vld [vmem:[#allocation2 + $0xab0] sm:$0xff]  ;;  %v465_v15 = vld [vmem:[#allocation2 + $0xb28] sm:$0xff] }
 0x162   :  { %3829 = vmatprep.subr.bf16.mxu1 %v3828_v27  ;;  %v386_v27 = vld [vmem:[#allocation2 + $0x8b0] sm:$0xff]  ;;  %v3864_v13 = vpack.c.bf16 %v459_v5, %v451_v4  ;;  %v475_v18 = vld [vmem:[#allocation2 + $0xb78] sm:$0xff] }
 0x163   :  { %v539_v4 = vld [vmem:[#allocation2 + $0xd78] sm:$0xff] }
 0x164   :  { %3639 = vmatpush1.bf16.msra.mxu0 %v3638_v33  ;;  %v411_v33 = vld [vmem:[#allocation2 + $0x978] sm:$0xff] }
 0x165   :  { %3831 = vmatpush1.bf16.msra.mxu1 %v3830_v34  ;;  %3641 = vmatprep.subr.bf16.mxu0 %v3640_v35  ;;  %v3658_v34 = vpack.c.bf16 %v392_v22, %v384_v24  ;;  %v3850_v35 = vpack.c.bf16 %v394_v29, %v386_v27  ;;  %v3852_v40 = vpack.c.bf16 %v411_v33, %v403_v31  ;;  %v472_v24 = vld [vmem:[#allocation2 + $0xb60] sm:$0xff]  ;;  %v466_v22 = vld [vmem:[#allocation2 + $0xb30] sm:$0xff]  ;;  %v481_v29 = vld [vmem:[#allocation2 + $0xba8] sm:$0xff] }
 0x166   :  { %3833 = vmatprep.subr.bf16.mxu1 %v3832_v39  ;;  %v402_v39 = vld [vmem:[#allocation2 + $0x930] sm:$0xff]  ;;  %v3868_v27 = vpack.c.bf16 %v475_v18, %v467_v17  ;;  %v491_v31 = vld [vmem:[#allocation2 + $0xbf8] sm:$0xff] }
 0x167   :  { %v555_v17 = vld [vmem:[#allocation2 + $0xdf8] sm:$0xff] }
 0x168   :  { %3643 = vmatpush1.bf16.msra.mxu0 %v3642_v44  ;;  %v427_v44 = vld [vmem:[#allocation2 + $0x9f8] sm:$0xff] }
 0x169   :  { %3835 = vmatpush1.bf16.msra.mxu1 %v3834_v46  ;;  %3645 = vmatprep.subr.bf16.mxu0 %v3644_v47  ;;  %v3854_v46 = vpack.c.bf16 %v410_v41, %v402_v39  ;;  %v3664_v47 = vpack.c.bf16 %v425_v43, %v417_v42  ;;  %v3872_v39 = vpack.c.bf16 %v491_v31, %v483_v45  ;;  %v497_v41 = vld [vmem:[#allocation2 + $0xc28] sm:$0xff]  ;;  %v499_v43 = vld [vmem:[#allocation2 + $0xc38] sm:$0xff] }
 0x16a   :  { %3837 = vmatprep.subr.bf16.mxu1 %v3836_v51  ;;  %v3856_v51 = vpack.c.bf16 %v427_v44, %v419_v32  ;;  %v505_v42 = vld [vmem:[#allocation2 + $0xc68] sm:$0xff]  ;;  %v507_v32 = vld [vmem:[#allocation2 + $0xc78] sm:$0xff] }
 0x16b   :  { %v571_v45 = vld [vmem:[#allocation2 + $0xe78] sm:$0xff] }
 0x16c   :  { %3647 = vmatpush1.bf16.msra.mxu0 %v3646_v58  ;;  %v3666_v58 = vpack.c.bf16 %v424_v49, %v416_v48  ;;  %v504_v48 = vld [vmem:[#allocation2 + $0xc60] sm:$0xff]  ;;  %v498_v49 = vld [vmem:[#allocation2 + $0xc30] sm:$0xff] }
 0x16d   :  { %3839 = vmatpush1.bf16.msra.mxu1 %v3838_v59  ;;  %3649 = vmatprep.subr.bf16.mxu0 %v3648_v60  ;;  %v3668_v59 = vpack.c.bf16 %v441_v54, %v433_v53  ;;  %v432_v60 = vld [vmem:[#allocation2 + $0xa20] sm:$0xff]  ;;  %v521_v53 = vld [vmem:[#allocation2 + $0xce8] sm:$0xff]  ;;  %v515_v54 = vld [vmem:[#allocation2 + $0xcb8] sm:$0xff] }
 0x16e   :  { %3841 = vmatprep.subr.bf16.mxu1 %v3840_v1  ;;  %v442_v1 = vld [vmem:[#allocation2 + $0xa70] sm:$0xff]  ;;  %v3670_v6 = vpack.c.bf16 %v440_v62, %v432_v60  ;;  %v520_v60 = vld [vmem:[#allocation2 + $0xce0] sm:$0xff] }
 0x16f   :  { %v514_v62 = vld [vmem:[#allocation2 + $0xcb0] sm:$0xff] }
 0x170   :  { %3651 = vmatpush1.bf16.msra.mxu0 %v3650_v7  ;;  %v3862_v7 = vpack.c.bf16 %v442_v1, %v434_v63  ;;  %v3880_v63 = vpack.c.bf16 %v523_v56, %v515_v54  ;;  %v529_v1 = vld [vmem:[#allocation2 + $0xd28] sm:$0xff]  ;;  %v603_v54 = vld [vmem:[#allocation2 + $0xf78] sm:$0xff] }
 0x171   :  { %3843 = vmatpush1.bf16.msra.mxu1 %v3842_v8  ;;  %3653 = vmatprep.subr.bf16.mxu0 %v3652_v9  ;;  %v3672_v8 = vpack.c.bf16 %v457_v3, %v449_v2  ;;  %v448_v9 = vld [vmem:[#allocation2 + $0xaa0] sm:$0xff]  ;;  %v537_v2 = vld [vmem:[#allocation2 + $0xd68] sm:$0xff]  ;;  %v531_v3 = vld [vmem:[#allocation2 + $0xd38] sm:$0xff] }
 0x172   :  { %3845 = vmatprep.subr.bf16.mxu1 %v3844_v14  ;;  %v458_v14 = vld [vmem:[#allocation2 + $0xaf0] sm:$0xff]  ;;  %v3674_v19 = vpack.c.bf16 %v456_v10, %v448_v9  ;;  %v536_v9 = vld [vmem:[#allocation2 + $0xd60] sm:$0xff] }
 0x173   :  { %1441 = vmatmul.mubr.f32.vlgmr.msra.gmra.mrb[2].mxu0 %v4907_v25  ;;  %v530_v10 = vld [vmem:[#allocation2 + $0xd30] sm:$0xff] }
 0x174   :  { %3655 = vmatpush1.bf16.msra.mxu0 %v3654_v20  ;;  %1654 = vmatmul.mubr.f32.vlgmr.msra.gmra.mrb[2].mxu1 %v4907_v25  ;;  %v3662_v25 = vpack.c.bf16 %v408_v38, %v400_v37  ;;  %v3866_v20 = vpack.c.bf16 %v458_v14, %v450_v12  ;;  %v488_v37 = vld [vmem:[#allocation2 + $0xbe0] sm:$0xff]  ;;  %v482_v38 = vld [vmem:[#allocation2 + $0xbb0] sm:$0xff]  ;;  %v3884_v12 = vpack.c.bf16 %v539_v4, %v531_v3  ;;  %v545_v14 = vld [vmem:[#allocation2 + $0xda8] sm:$0xff] }
 0x175   :  { %3847 = vmatpush1.bf16.msra.mxu1 %v3846_v21  ;;  %3657 = vmatprep.subr.bf16.mxu0 %v3656_v23  ;;  %v3676_v21 = vpack.c.bf16 %v473_v16, %v465_v15  ;;  %v464_v23 = vld [vmem:[#allocation2 + $0xb20] sm:$0xff]  ;;  %v553_v15 = vld [vmem:[#allocation2 + $0xde8] sm:$0xff]  ;;  %v547_v16 = vld [vmem:[#allocation2 + $0xdb8] sm:$0xff] }
 0x176   :  { %3849 = vmatprep.subr.bf16.mxu1 %v3848_v28  ;;  %1511 = vmatprep.mubr.f32.mxu0 %v4922_v11  ;;  %v474_v28 = vld [vmem:[#allocation2 + $0xb70] sm:$0xff]  ;;  %v3678_v33 = vpack.c.bf16 %v472_v24, %v464_v23  ;;  %v552_v23 = vld [vmem:[#allocation2 + $0xde0] sm:$0xff]  ;;  %v619_v3 = vld [vmem:[#allocation2 + $0xff8] sm:$0xff] }
 0x177   :  { %1724 = vmatprep.mubr.f32.mxu1 %v4922_v11  ;;  %v3858_v11 = vpack.c.bf16 %v426_v52, %v418_v50  ;;  %v3876_v50 = vpack.c.bf16 %v507_v32, %v499_v43  ;;  %v513_v52 = vld [vmem:[#allocation2 + $0xca8] sm:$0xff]  ;;  %v546_v24 = vld [vmem:[#allocation2 + $0xdb0] sm:$0xff]  ;;  %v587_v43 = vld [vmem:[#allocation2 + $0xef8] sm:$0xff] }
 0x178   :  { %3659 = vmatpush1.bf16.msra.mxu0 %v3658_v34  ;;  %v3870_v34 = vpack.c.bf16 %v474_v28, %v466_v22  ;;  %v3888_v22 = vpack.c.bf16 %v555_v17, %v547_v16  ;;  %v561_v28 = vld [vmem:[#allocation2 + $0xe28] sm:$0xff]  ;;  %v635_v16 = vld [vmem:[#allocation2 + $0x1078] sm:$0xff] }
 0x179   :  { %3851 = vmatpush1.bf16.msra.mxu1 %v3850_v35  ;;  %3661 = vmatprep.subr.bf16.mxu0 %v3660_v36  ;;  %v3680_v35 = vpack.c.bf16 %v489_v30, %v481_v29  ;;  %v480_v36 = vld [vmem:[#allocation2 + $0xba0] sm:$0xff]  ;;  %v569_v29 = vld [vmem:[#allocation2 + $0xe68] sm:$0xff]  ;;  %v563_v30 = vld [vmem:[#allocation2 + $0xe38] sm:$0xff] }
 0x17a   :  { %3853 = vmatprep.subr.bf16.mxu1 %v3852_v40  ;;  %v490_v40 = vld [vmem:[#allocation2 + $0xbf0] sm:$0xff]  ;;  %v3682_v44 = vpack.c.bf16 %v488_v37, %v480_v36  ;;  %v568_v36 = vld [vmem:[#allocation2 + $0xe60] sm:$0xff] }
 0x17b   :  { %v562_v37 = vld [vmem:[#allocation2 + $0xe30] sm:$0xff] }
 0x17c   :  { %3663 = vmatpush1.bf16.msra.mxu0 %v3662_v25  ;;  %v3874_v25 = vpack.c.bf16 %v490_v40, %v482_v38  ;;  %v3892_v38 = vpack.c.bf16 %v571_v45, %v563_v30  ;;  %v577_v40 = vld [vmem:[#allocation2 + $0xea8] sm:$0xff]  ;;  %v651_v30 = vld [vmem:[#allocation2 + $0x10f8] sm:$0xff] }
 0x17d   :  { %3855 = vmatpush1.bf16.msra.mxu1 %v3854_v46  ;;  %3665 = vmatprep.subr.bf16.mxu0 %v3664_v47  ;;  %v3684_v46 = vpack.c.bf16 %v505_v42, %v497_v41  ;;  %v496_v47 = vld [vmem:[#allocation2 + $0xc20] sm:$0xff]  ;;  %v585_v41 = vld [vmem:[#allocation2 + $0xee8] sm:$0xff]  ;;  %v579_v42 = vld [vmem:[#allocation2 + $0xeb8] sm:$0xff] }
 0x17e   :  { %3857 = vmatprep.subr.bf16.mxu1 %v3856_v51  ;;  %v506_v51 = vld [vmem:[#allocation2 + $0xc70] sm:$0xff]  ;;  %v3686_v57 = vpack.c.bf16 %v504_v48, %v496_v47  ;;  %v584_v47 = vld [vmem:[#allocation2 + $0xee0] sm:$0xff] }
 0x17f   :  { %v578_v48 = vld [vmem:[#allocation2 + $0xeb0] sm:$0xff] }
 0x180   :  { %3667 = vmatpush1.bf16.msra.mxu0 %v3666_v58  ;;  %v3878_v58 = vpack.c.bf16 %v506_v51, %v498_v49  ;;  %v3896_v49 = vpack.c.bf16 %v587_v43, %v579_v42  ;;  %v593_v51 = vld [vmem:[#allocation2 + $0xf28] sm:$0xff]  ;;  %v667_v42 = vld [vmem:[#allocation2 + $0x1178] sm:$0xff] }
 0x181   :  { %3859 = vmatpush1.bf16.msra.mxu1 %v3858_v11  ;;  %3669 = vmatprep.subr.bf16.mxu0 %v3668_v59  ;;  %v3688_v11 = vpack.c.bf16 %v521_v53, %v513_v52  ;;  %v512_v59 = vld [vmem:[#allocation2 + $0xca0] sm:$0xff]  ;;  %v601_v52 = vld [vmem:[#allocation2 + $0xf68] sm:$0xff]  ;;  %v595_v53 = vld [vmem:[#allocation2 + $0xf38] sm:$0xff] }
 0x182   :  { %3861 = vmatprep.subr.bf16.mxu1 %v3860_v0  ;;  %v522_v0 = vld [vmem:[#allocation2 + $0xcf0] sm:$0xff]  ;;  %v3690_v5 = vpack.c.bf16 %v520_v60, %v512_v59  ;;  %v600_v59 = vld [vmem:[#allocation2 + $0xf60] sm:$0xff] }
 0x183   :  { %v594_v60 = vld [vmem:[#allocation2 + $0xf30] sm:$0xff] }
 0x184   :  { %3671 = vmatpush1.bf16.msra.mxu0 %v3670_v6  ;;  %v3882_v6 = vpack.c.bf16 %v522_v0, %v514_v62  ;;  %v3900_v62 = vpack.c.bf16 %v603_v54, %v595_v53  ;;  %v609_v0 = vld [vmem:[#allocation2 + $0xfa8] sm:$0xff]  ;;  %v683_v53 = vld [vmem:[#allocation2 + $0x11f8] sm:$0xff] }
 0x185   :  { %3863 = vmatpush1.bf16.msra.mxu1 %v3862_v7  ;;  %3673 = vmatprep.subr.bf16.mxu0 %v3672_v8  ;;  %v3692_v7 = vpack.c.bf16 %v537_v2, %v529_v1  ;;  %v528_v8 = vld [vmem:[#allocation2 + $0xd20] sm:$0xff]  ;;  %v617_v1 = vld [vmem:[#allocation2 + $0xfe8] sm:$0xff]  ;;  %v611_v2 = vld [vmem:[#allocation2 + $0xfb8] sm:$0xff] }
 0x186   :  { %3865 = vmatprep.subr.bf16.mxu1 %v3864_v13  ;;  %v538_v13 = vld [vmem:[#allocation2 + $0xd70] sm:$0xff]  ;;  %v3694_v18 = vpack.c.bf16 %v536_v9, %v528_v8  ;;  %v616_v8 = vld [vmem:[#allocation2 + $0xfe0] sm:$0xff] }
 0x187   :  { %v610_v9 = vld [vmem:[#allocation2 + $0xfb0] sm:$0xff] }
 0x188   :  { %3675 = vmatpush1.bf16.msra.mxu0 %v3674_v19  ;;  %v3886_v19 = vpack.c.bf16 %v538_v13, %v530_v10  ;;  %v3904_v10 = vpack.c.bf16 %v619_v3, %v611_v2  ;;  %v625_v13 = vld [vmem:[#allocation2 + $0x1028] sm:$0xff] }
 0x189   :  { %3867 = vmatpush1.bf16.msra.mxu1 %v3866_v20  ;;  %3677 = vmatprep.subr.bf16.mxu0 %v3676_v21  ;;  %v3696_v20 = vpack.c.bf16 %v553_v15, %v545_v14  ;;  %v544_v21 = vld [vmem:[#allocation2 + $0xda0] sm:$0xff]  ;;  %v633_v14 = vld [vmem:[#allocation2 + $0x1068] sm:$0xff]  ;;  %v627_v15 = vld [vmem:[#allocation2 + $0x1038] sm:$0xff] }
 0x18a   :  { %3869 = vmatprep.subr.bf16.mxu1 %v3868_v27  ;;  %v554_v27 = vld [vmem:[#allocation2 + $0xdf0] sm:$0xff]  ;;  %v3698_v31 = vpack.c.bf16 %v552_v23, %v544_v21  ;;  %v632_v21 = vld [vmem:[#allocation2 + $0x1060] sm:$0xff] }
 0x18b   :  { %v626_v23 = vld [vmem:[#allocation2 + $0x1030] sm:$0xff] }
 0x18c   :  { %3679 = vmatpush1.bf16.msra.mxu0 %v3678_v33  ;;  %v3890_v33 = vpack.c.bf16 %v554_v27, %v546_v24  ;;  %v3908_v24 = vpack.c.bf16 %v635_v16, %v627_v15  ;;  %v641_v27 = vld [vmem:[#allocation2 + $0x10a8] sm:$0xff] }
 0x18d   :  { %3871 = vmatpush1.bf16.msra.mxu1 %v3870_v34  ;;  %3681 = vmatprep.subr.bf16.mxu0 %v3680_v35  ;;  %v3700_v34 = vpack.c.bf16 %v569_v29, %v561_v28  ;;  %v560_v35 = vld [vmem:[#allocation2 + $0xe20] sm:$0xff]  ;;  %v649_v28 = vld [vmem:[#allocation2 + $0x10e8] sm:$0xff]  ;;  %v643_v29 = vld [vmem:[#allocation2 + $0x10b8] sm:$0xff] }
 0x18e   :  { %3873 = vmatprep.subr.bf16.mxu1 %v3872_v39  ;;  %v570_v39 = vld [vmem:[#allocation2 + $0xe70] sm:$0xff]  ;;  %v3702_v32 = vpack.c.bf16 %v568_v36, %v560_v35  ;;  %v648_v35 = vld [vmem:[#allocation2 + $0x10e0] sm:$0xff] }
 0x18f   :  { %v642_v36 = vld [vmem:[#allocation2 + $0x10b0] sm:$0xff] }
 0x190   :  { %3683 = vmatpush1.bf16.msra.mxu0 %v3682_v44  ;;  %v3894_v44 = vpack.c.bf16 %v570_v39, %v562_v37  ;;  %v3912_v37 = vpack.c.bf16 %v651_v30, %v643_v29  ;;  %v657_v39 = vld [vmem:[#allocation2 + $0x1128] sm:$0xff] }
 0x191   :  { %3875 = vmatpush1.bf16.msra.mxu1 %v3874_v25  ;;  %3685 = vmatprep.subr.bf16.mxu0 %v3684_v46  ;;  %v3704_v25 = vpack.c.bf16 %v585_v41, %v577_v40  ;;  %v576_v46 = vld [vmem:[#allocation2 + $0xea0] sm:$0xff]  ;;  %v665_v40 = vld [vmem:[#allocation2 + $0x1168] sm:$0xff]  ;;  %v659_v41 = vld [vmem:[#allocation2 + $0x1138] sm:$0xff] }
 0x192   :  { %3877 = vmatprep.subr.bf16.mxu1 %v3876_v50  ;;  %v586_v50 = vld [vmem:[#allocation2 + $0xef0] sm:$0xff]  ;;  %v3706_v56 = vpack.c.bf16 %v584_v47, %v576_v46  ;;  %v664_v46 = vld [vmem:[#allocation2 + $0x1160] sm:$0xff] }
 0x193   :  { %v658_v47 = vld [vmem:[#allocation2 + $0x1130] sm:$0xff] }
 0x194   :  { %3687 = vmatpush1.bf16.msra.mxu0 %v3686_v57  ;;  %v3898_v57 = vpack.c.bf16 %v586_v50, %v578_v48  ;;  %v3916_v48 = vpack.c.bf16 %v667_v42, %v659_v41  ;;  %v673_v50 = vld [vmem:[#allocation2 + $0x11a8] sm:$0xff] }
 0x195   :  { %3879 = vmatpush1.bf16.msra.mxu1 %v3878_v58  ;;  %3689 = vmatprep.subr.bf16.mxu0 %v3688_v11  ;;  %v3708_v58 = vpack.c.bf16 %v601_v52, %v593_v51  ;;  %v592_v11 = vld [vmem:[#allocation2 + $0xf20] sm:$0xff]  ;;  %v681_v51 = vld [vmem:[#allocation2 + $0x11e8] sm:$0xff]  ;;  %v675_v52 = vld [vmem:[#allocation2 + $0x11b8] sm:$0xff] }
 0x196   :  { %3881 = vmatprep.subr.bf16.mxu1 %v3880_v63  ;;  %v602_v63 = vld [vmem:[#allocation2 + $0xf70] sm:$0xff]  ;;  %v3710_v4 = vpack.c.bf16 %v600_v59, %v592_v11  ;;  %v3920_v59 = vpack.c.bf16 %v683_v53, %v675_v52 }
 0x197   :  { %v674_v11 = vld [vmem:[#allocation2 + $0x11b0] sm:$0xff] }
 0x198   :  { %3691 = vmatpush1.bf16.msra.mxu0 %v3690_v5  ;;  %v3902_v5 = vpack.c.bf16 %v602_v63, %v594_v60  ;;  %v682_v60 = vld [vmem:[#allocation2 + $0x11f0] sm:$0xff]  ;;  %v697_v63 = vld [vmem:[#allocation2 + $0x1268] sm:$0xff] }
 0x199   :  { %3883 = vmatpush1.bf16.msra.mxu1 %v3882_v6  ;;  %3693 = vmatprep.subr.bf16.mxu0 %v3692_v7  ;;  %v3712_v6 = vpack.c.bf16 %v617_v1, %v609_v0  ;;  %v608_v7 = vld [vmem:[#allocation2 + $0xfa0] sm:$0xff]  ;;  %v691_v0 = vld [vmem:[#allocation2 + $0x1238] sm:$0xff] }
 0x19a   :  { %3885 = vmatprep.subr.bf16.mxu1 %v3884_v12  ;;  %v618_v12 = vld [vmem:[#allocation2 + $0xff0] sm:$0xff]  ;;  %v3714_v17 = vpack.c.bf16 %v616_v8, %v608_v7  ;;  %v699_v1 = vld [vmem:[#allocation2 + $0x1278] sm:$0xff] }
 0x19b   :  { %v3924_v7 = vpack.c.bf16 %v699_v1, %v691_v0  ;;  %v698_v8 = vld [vmem:[#allocation2 + $0x1270] sm:$0xff] }
 0x19c   :  { %3695 = vmatpush1.bf16.msra.mxu0 %v3694_v18  ;;  %v3906_v18 = vpack.c.bf16 %v618_v12, %v610_v9  ;;  %v705_v9 = vld [vmem:[#allocation2 + $0x12a8] sm:$0xff]  ;;  %v707_v12 = vld [vmem:[#allocation2 + $0x12b8] sm:$0xff] }
 0x19d   :  { %3887 = vmatpush1.bf16.msra.mxu1 %v3886_v19  ;;  %3697 = vmatprep.subr.bf16.mxu0 %v3696_v20  ;;  %v3716_v19 = vpack.c.bf16 %v633_v14, %v625_v13  ;;  %v624_v20 = vld [vmem:[#allocation2 + $0x1020] sm:$0xff]  ;;  %v715_v13 = vld [vmem:[#allocation2 + $0x12f8] sm:$0xff] }
 0x19e   :  { %3889 = vmatprep.subr.bf16.mxu1 %v3888_v22  ;;  %v634_v22 = vld [vmem:[#allocation2 + $0x1070] sm:$0xff]  ;;  %v3718_v45 = vpack.c.bf16 %v632_v21, %v624_v20  ;;  %v3928_v20 = vpack.c.bf16 %v715_v13, %v707_v12 }
 0x19f   :  { %v714_v21 = vld [vmem:[#allocation2 + $0x12f0] sm:$0xff] }
 0x1a0   :  { %3699 = vmatpush1.bf16.msra.mxu0 %v3698_v31  ;;  %v3910_v31 = vpack.c.bf16 %v634_v22, %v626_v23  ;;  %v721_v23 = vld [vmem:[#allocation2 + $0x1328] sm:$0xff]  ;;  %v723_v22 = vld [vmem:[#allocation2 + $0x1338] sm:$0xff] }
 0x1a1   :  { %3891 = vmatpush1.bf16.msra.mxu1 %v3890_v33  ;;  %3701 = vmatprep.subr.bf16.mxu0 %v3700_v34  ;;  %v3720_v33 = vpack.c.bf16 %v649_v28, %v641_v27  ;;  %v640_v34 = vld [vmem:[#allocation2 + $0x10a0] sm:$0xff]  ;;  %v731_v27 = vld [vmem:[#allocation2 + $0x1378] sm:$0xff] }
 0x1a2   :  { %3893 = vmatprep.subr.bf16.mxu1 %v3892_v38  ;;  %v650_v38 = vld [vmem:[#allocation2 + $0x10f0] sm:$0xff]  ;;  %v3722_v43 = vpack.c.bf16 %v648_v35, %v640_v34  ;;  %v3932_v34 = vpack.c.bf16 %v731_v27, %v723_v22 }
 0x1a3   :  { %v730_v35 = vld [vmem:[#allocation2 + $0x1370] sm:$0xff] }
 0x1a4   :  { %3703 = vmatpush1.bf16.msra.mxu0 %v3702_v32  ;;  %v3914_v32 = vpack.c.bf16 %v650_v38, %v642_v36  ;;  %v737_v36 = vld [vmem:[#allocation2 + $0x13a8] sm:$0xff]  ;;  %v739_v38 = vld [vmem:[#allocation2 + $0x13b8] sm:$0xff] }
 0x1a5   :  { %3895 = vmatpush1.bf16.msra.mxu1 %v3894_v44  ;;  %3705 = vmatprep.subr.bf16.mxu0 %v3704_v25  ;;  %v3724_v44 = vpack.c.bf16 %v665_v40, %v657_v39  ;;  %v656_v25 = vld [vmem:[#allocation2 + $0x1120] sm:$0xff]  ;;  %v747_v39 = vld [vmem:[#allocation2 + $0x13f8] sm:$0xff] }
 0x1a6   :  { %3897 = vmatprep.subr.bf16.mxu1 %v3896_v49  ;;  %v666_v49 = vld [vmem:[#allocation2 + $0x1170] sm:$0xff] }
 0x1a7   :  { %v3918_v54 = vpack.c.bf16 %v666_v49, %v658_v47  ;;  %v753_v47 = vld [vmem:[#allocation2 + $0x1428] sm:$0xff]  ;;  %v755_v49 = vld [vmem:[#allocation2 + $0x1438] sm:$0xff] }
 0x1a8   :  { %3707 = vmatpush1.bf16.msra.mxu0 %v3706_v56  ;;  %v3728_v56 = vpack.c.bf16 %v681_v51, %v673_v50  ;;  %v763_v50 = vld [vmem:[#allocation2 + $0x1478] sm:$0xff] }
 0x1a9   :  { %3899 = vmatpush1.bf16.msra.mxu1 %v3898_v57  ;;  %3709 = vmatprep.subr.bf16.mxu0 %v3708_v58  ;;  %v672_v57 = vld [vmem:[#allocation2 + $0x11a0] sm:$0xff] }
 0x1aa   :  { %3901 = vmatprep.subr.bf16.mxu1 %v3900_v62  ;;  %v680_v58 = vld [vmem:[#allocation2 + $0x11e0] sm:$0xff]  ;;  %v689_v62 = vld [vmem:[#allocation2 + $0x1228] sm:$0xff] }
 0x1ab   :  { %v3730_v2 = vpack.c.bf16 %v680_v58, %v672_v57  ;;  %v3732_v3 = vpack.c.bf16 %v697_v63, %v689_v62  ;;  %v3940_v57 = vpack.c.bf16 %v763_v50, %v755_v49  ;;  %v762_v58 = vld [vmem:[#allocation2 + $0x1470] sm:$0xff]  ;;  %v779_v62 = vld [vmem:[#allocation2 + $0x14f8] sm:$0xff] }
 0x1ac   :  { %3711 = vmatpush1.bf16.msra.mxu0 %v3710_v4  ;;  %v688_v4 = vld [vmem:[#allocation2 + $0x1220] sm:$0xff] }
 0x1ad   :  { %3903 = vmatpush1.bf16.msra.mxu1 %v3902_v5  ;;  %3713 = vmatprep.subr.bf16.mxu0 %v3712_v6  ;;  %v696_v5 = vld [vmem:[#allocation2 + $0x1260] sm:$0xff]  ;;  %v690_v6 = vld [vmem:[#allocation2 + $0x1230] sm:$0xff] }
 0x1ae   :  { %3905 = vmatprep.subr.bf16.mxu1 %v3904_v10  ;;  %v713_v10 = vld [vmem:[#allocation2 + $0x12e8] sm:$0xff]  ;;  %v3734_v14 = vpack.c.bf16 %v696_v5, %v688_v4  ;;  %v3926_v15 = vpack.c.bf16 %v698_v8, %v690_v6  ;;  %v778_v5 = vld [vmem:[#allocation2 + $0x14f0] sm:$0xff]  ;;  %v787_v8 = vld [vmem:[#allocation2 + $0x1538] sm:$0xff] }
 0x1af   :  { %v3736_v16 = vpack.c.bf16 %v713_v10, %v705_v9  ;;  %v785_v6 = vld [vmem:[#allocation2 + $0x1528] sm:$0xff]  ;;  %v795_v9 = vld [vmem:[#allocation2 + $0x1578] sm:$0xff] }
 0x1b0   :  { %3715 = vmatpush1.bf16.msra.mxu0 %v3714_v17  ;;  %v704_v17 = vld [vmem:[#allocation2 + $0x12a0] sm:$0xff] }
 0x1b1   :  { %3907 = vmatpush1.bf16.msra.mxu1 %v3906_v18  ;;  %3717 = vmatprep.subr.bf16.mxu0 %v3716_v19  ;;  %v712_v18 = vld [vmem:[#allocation2 + $0x12e0] sm:$0xff]  ;;  %v706_v19 = vld [vmem:[#allocation2 + $0x12b0] sm:$0xff] }
 0x1b2   :  { %3909 = vmatprep.subr.bf16.mxu1 %v3908_v24  ;;  %v729_v24 = vld [vmem:[#allocation2 + $0x1368] sm:$0xff]  ;;  %v3738_v28 = vpack.c.bf16 %v712_v18, %v704_v17  ;;  %v3930_v29 = vpack.c.bf16 %v714_v21, %v706_v19  ;;  %v3948_v17 = vpack.c.bf16 %v795_v9, %v787_v8  ;;  %v794_v18 = vld [vmem:[#allocation2 + $0x1570] sm:$0xff]  ;;  %v803_v21 = vld [vmem:[#allocation2 + $0x15b8] sm:$0xff] }
 0x1b3   :  { %1512 = vmatmul.mubr.f32.vlgmr.msra.gmra.mrb[2].mxu0 %v4918_v26  ;;  %v3740_v30 = vpack.c.bf16 %v729_v24, %v721_v23  ;;  %v801_v19 = vld [vmem:[#allocation2 + $0x15a8] sm:$0xff]  ;;  %v811_v23 = vld [vmem:[#allocation2 + $0x15f8] sm:$0xff] }
 0x1b4   :  { %3719 = vmatpush1.bf16.msra.mxu0 %v3718_v45  ;;  %1725 = vmatmul.mubr.f32.vlgmr.msra.gmra.mrb[2].mxu1 %v4918_v26  ;;  %v3726_v26 = vpack.c.bf16 %v664_v46, %v656_v25  ;;  %v720_v45 = vld [vmem:[#allocation2 + $0x1320] sm:$0xff]  ;;  %v3936_v25 = vpack.c.bf16 %v747_v39, %v739_v38  ;;  %v746_v46 = vld [vmem:[#allocation2 + $0x13f0] sm:$0xff] }
 0x1b5   :  { %3911 = vmatpush1.bf16.msra.mxu1 %v3910_v31  ;;  %3721 = vmatprep.subr.bf16.mxu0 %v3720_v33  ;;  %v728_v31 = vld [vmem:[#allocation2 + $0x1360] sm:$0xff]  ;;  %v722_v33 = vld [vmem:[#allocation2 + $0x1330] sm:$0xff] }
 0x1b6   :  { %3913 = vmatprep.subr.bf16.mxu1 %v3912_v37  ;;  %1582 = vmatprep.mubr.f32.mxu0 %v4935_v55  ;;  %v745_v37 = vld [vmem:[#allocation2 + $0x13e8] sm:$0xff]  ;;  %v3742_v40 = vpack.c.bf16 %v728_v31, %v720_v45  ;;  %v3934_v41 = vpack.c.bf16 %v730_v35, %v722_v33  ;;  %v3952_v45 = vpack.c.bf16 %v811_v23, %v803_v21  ;;  %v810_v31 = vld [vmem:[#allocation2 + $0x15f0] sm:$0xff]  ;;  %v819_v35 = vld [vmem:[#allocation2 + $0x1638] sm:$0xff] }
 0x1b7   :  { %1795 = vmatprep.mubr.f32.mxu1 %v4935_v55  ;;  %v3922_v55 = vpack.c.bf16 %v682_v60, %v674_v11  ;;  %v3744_v42 = vpack.c.bf16 %v745_v37, %v737_v36  ;;  %v769_v11 = vld [vmem:[#allocation2 + $0x14a8] sm:$0xff]  ;;  %v771_v60 = vld [vmem:[#allocation2 + $0x14b8] sm:$0xff] }
 0x1b8   :  { %3723 = vmatpush1.bf16.msra.mxu0 %v3722_v43  ;;  %v736_v43 = vld [vmem:[#allocation2 + $0x13a0] sm:$0xff]  ;;  %v3944_v4 = vpack.c.bf16 %v779_v62, %v771_v60  ;;  %v817_v33 = vld [vmem:[#allocation2 + $0x1628] sm:$0xff]  ;;  %v827_v36 = vld [vmem:[#allocation2 + $0x1678] sm:$0xff] }
 0x1b9   :  { %3915 = vmatpush1.bf16.msra.mxu1 %v3914_v32  ;;  %3725 = vmatprep.subr.bf16.mxu0 %v3724_v44  ;;  %v744_v32 = vld [vmem:[#allocation2 + $0x13e0] sm:$0xff]  ;;  %v738_v44 = vld [vmem:[#allocation2 + $0x13b0] sm:$0xff] }
 0x1ba   :  { %3917 = vmatprep.subr.bf16.mxu1 %v3916_v48  ;;  %v761_v48 = vld [vmem:[#allocation2 + $0x1468] sm:$0xff]  ;;  %v3746_v51 = vpack.c.bf16 %v744_v32, %v736_v43  ;;  %v3938_v52 = vpack.c.bf16 %v746_v46, %v738_v44  ;;  %v3956_v43 = vpack.c.bf16 %v827_v36, %v819_v35  ;;  %v826_v32 = vld [vmem:[#allocation2 + $0x1670] sm:$0xff]  ;;  %v835_v46 = vld [vmem:[#allocation2 + $0x16b8] sm:$0xff] }
 0x1bb   :  { %v3748_v53 = vpack.c.bf16 %v761_v48, %v753_v47  ;;  %v833_v44 = vld [vmem:[#allocation2 + $0x16a8] sm:$0xff]  ;;  %v843_v47 = vld [vmem:[#allocation2 + $0x16f8] sm:$0xff] }
 0x1bc   :  { %3727 = vmatpush1.bf16.msra.mxu0 %v3726_v26  ;;  %v752_v26 = vld [vmem:[#allocation2 + $0x1420] sm:$0xff] }
 0x1bd   :  { %3919 = vmatpush1.bf16.msra.mxu1 %v3918_v54  ;;  %3729 = vmatprep.subr.bf16.mxu0 %v3728_v56  ;;  %v760_v54 = vld [vmem:[#allocation2 + $0x1460] sm:$0xff]  ;;  %v754_v56 = vld [vmem:[#allocation2 + $0x1430] sm:$0xff] }
 0x1be   :  { %3921 = vmatprep.subr.bf16.mxu1 %v3920_v59  ;;  %v777_v59 = vld [vmem:[#allocation2 + $0x14e8] sm:$0xff]  ;;  %v3750_v63 = vpack.c.bf16 %v760_v54, %v752_v26  ;;  %v3942_v0 = vpack.c.bf16 %v762_v58, %v754_v56  ;;  %v3960_v26 = vpack.c.bf16 %v843_v47, %v835_v46  ;;  %v842_v54 = vld [vmem:[#allocation2 + $0x16f0] sm:$0xff]  ;;  %v851_v58 = vld [vmem:[#allocation2 + $0x1738] sm:$0xff] }
 0x1bf   :  { %v3752_v1 = vpack.c.bf16 %v777_v59, %v769_v11  ;;  %v849_v56 = vld [vmem:[#allocation2 + $0x1728] sm:$0xff]  ;;  %v859_v11 = vld [vmem:[#allocation2 + $0x1778] sm:$0xff] }
 0x1c0   :  { %3731 = vmatpush1.bf16.msra.mxu0 %v3730_v2  ;;  %v768_v2 = vld [vmem:[#allocation2 + $0x14a0] sm:$0xff] }
 0x1c1   :  { %3923 = vmatpush1.bf16.msra.mxu1 %v3922_v55  ;;  %3733 = vmatprep.subr.bf16.mxu0 %v3732_v3  ;;  %v776_v55 = vld [vmem:[#allocation2 + $0x14e0] sm:$0xff]  ;;  %v770_v3 = vld [vmem:[#allocation2 + $0x14b0] sm:$0xff] }
 0x1c2   :  { %3925 = vmatprep.subr.bf16.mxu1 %v3924_v7  ;;  %v793_v7 = vld [vmem:[#allocation2 + $0x1568] sm:$0xff]  ;;  %v3754_v10 = vpack.c.bf16 %v776_v55, %v768_v2  ;;  %v3946_v12 = vpack.c.bf16 %v778_v5, %v770_v3  ;;  %v3964_v2 = vpack.c.bf16 %v859_v11, %v851_v58  ;;  %v858_v55 = vld [vmem:[#allocation2 + $0x1770] sm:$0xff]  ;;  %v867_v5 = vld [vmem:[#allocation2 + $0x17b8] sm:$0xff] }
 0x1c3   :  { %v3756_v13 = vpack.c.bf16 %v793_v7, %v785_v6  ;;  %v865_v3 = vld [vmem:[#allocation2 + $0x17a8] sm:$0xff]  ;;  %v875_v6 = vld [vmem:[#allocation2 + $0x17f8] sm:$0xff] }
 0x1c4   :  { %3735 = vmatpush1.bf16.msra.mxu0 %v3734_v14  ;;  %v784_v14 = vld [vmem:[#allocation2 + $0x1520] sm:$0xff] }
 0x1c5   :  { %3927 = vmatpush1.bf16.msra.mxu1 %v3926_v15  ;;  %3737 = vmatprep.subr.bf16.mxu0 %v3736_v16  ;;  %v792_v15 = vld [vmem:[#allocation2 + $0x1560] sm:$0xff]  ;;  %v786_v16 = vld [vmem:[#allocation2 + $0x1530] sm:$0xff] }
 0x1c6   :  { %3929 = vmatprep.subr.bf16.mxu1 %v3928_v20  ;;  %v809_v20 = vld [vmem:[#allocation2 + $0x15e8] sm:$0xff]  ;;  %v3758_v24 = vpack.c.bf16 %v792_v15, %v784_v14  ;;  %v3950_v22 = vpack.c.bf16 %v794_v18, %v786_v16  ;;  %v3968_v14 = vpack.c.bf16 %v875_v6, %v867_v5  ;;  %v874_v15 = vld [vmem:[#allocation2 + $0x17f0] sm:$0xff]  ;;  %v1805_v18 = vld [vmem:[#allocation7 + $0x18] sm:$0xff] }
 0x1c7   :  { %v3760_v27 = vpack.c.bf16 %v809_v20, %v801_v19  ;;  %v1803_v16 = vld [vmem:[#allocation7 + $0x8] sm:$0xff]  ;;  %v1809_v19 = vld [vmem:[#allocation7 + $0x38] sm:$0xff] }
 0x1c8   :  { %3739 = vmatpush1.bf16.msra.mxu0 %v3738_v28  ;;  %v800_v28 = vld [vmem:[#allocation2 + $0x15a0] sm:$0xff] }
 0x1c9   :  { %3931 = vmatpush1.bf16.msra.mxu1 %v3930_v29  ;;  %3741 = vmatprep.subr.bf16.mxu0 %v3740_v30  ;;  %v808_v29 = vld [vmem:[#allocation2 + $0x15e0] sm:$0xff]  ;;  %v802_v30 = vld [vmem:[#allocation2 + $0x15b0] sm:$0xff] }
 0x1ca   :  { %3933 = vmatprep.subr.bf16.mxu1 %v3932_v34  ;;  %v825_v34 = vld [vmem:[#allocation2 + $0x1668] sm:$0xff]  ;;  %v3762_v37 = vpack.c.bf16 %v808_v29, %v800_v28  ;;  %v3954_v38 = vpack.c.bf16 %v810_v31, %v802_v30  ;;  %v4228_v28 = vpack.c.bf16 %v1809_v19, %v1805_v18  ;;  %v1808_v29 = vld [vmem:[#allocation7 + $0x30] sm:$0xff]  ;;  %v1811_v30 = vld [vmem:[#allocation7 + $0x48] sm:$0xff] }
 0x1cb   :  { %v3764_v39 = vpack.c.bf16 %v825_v34, %v817_v33  ;;  %v1813_v31 = vld [vmem:[#allocation7 + $0x58] sm:$0xff] }
 0x1cc   :  { %3743 = vmatpush1.bf16.msra.mxu0 %v3742_v40  ;;  %v816_v40 = vld [vmem:[#allocation2 + $0x1620] sm:$0xff] }
 0x1cd   :  { %3935 = vmatpush1.bf16.msra.mxu1 %v3934_v41  ;;  %3745 = vmatprep.subr.bf16.mxu0 %v3744_v42  ;;  %v824_v41 = vld [vmem:[#allocation2 + $0x1660] sm:$0xff]  ;;  %v818_v42 = vld [vmem:[#allocation2 + $0x1630] sm:$0xff] }
 0x1ce   :  { %3937 = vmatprep.subr.bf16.mxu1 %v3936_v25  ;;  %v841_v25 = vld [vmem:[#allocation2 + $0x16e8] sm:$0xff]  ;;  %v3766_v48 = vpack.c.bf16 %v824_v41, %v816_v40  ;;  %v3958_v49 = vpack.c.bf16 %v826_v32, %v818_v42  ;;  %v1817_v33 = vld [vmem:[#allocation7 + $0x78] sm:$0xff]  ;;  %v1816_v41 = vld [vmem:[#allocation7 + $0x70] sm:$0xff] }
 0x1cf   :  { %v3768_v50 = vpack.c.bf16 %v841_v25, %v833_v44  ;;  %v4232_v40 = vpack.c.bf16 %v1817_v33, %v1813_v31  ;;  %v1819_v42 = vld [vmem:[#allocation7 + $0x88] sm:$0xff]  ;;  %v4603_v32 = vld.sshfl [vmem:[%s5016_s0 + $0x8] sm:$0x33 pattern:$0x76325410]  ;;  %v1821_v44 = vld [vmem:[#allocation7 + $0x98] sm:$0xff] }
 0x1d0   :  { %3747 = vmatpush1.bf16.msra.mxu0 %v3746_v51  ;;  %v832_v51 = vld [vmem:[#allocation2 + $0x16a0] sm:$0xff]  ;;  %s4782_s0 = smov [#allocation13]  }
 0x1d1   :  { %3939 = vmatpush1.bf16.msra.mxu1 %v3938_v52  ;;  %3749 = vmatprep.subr.bf16.mxu0 %v3748_v53  ;;  %v840_v52 = vld [vmem:[#allocation2 + $0x16e0] sm:$0xff]  ;;  %v834_v53 = vld [vmem:[#allocation2 + $0x16b0] sm:$0xff]  ;;  %s3120_s8 = sshll.u32 %s4782_s0, 4  ;;  %s3121_s8 = int_to_ptr.vmem [resolvable:$true] %s3120_s8 }
 0x1d2   :  { %3941 = vmatprep.subr.bf16.mxu1 %v3940_v57  ;;  %v857_v57 = vld [vmem:[#allocation2 + $0x1768] sm:$0xff]  ;;  %v3770_v59 = vpack.c.bf16 %v840_v52, %v832_v51  ;;  %v3962_v60 = vpack.c.bf16 %v842_v54, %v834_v53  ;;  %v1825_v25 = vld [vmem:[#allocation7 + $0xb8] sm:$0xff]  ;;  %v1820_v51 = vld [vmem:[#allocation7 + $0x90] sm:$0xff]  ;;  %s4737_s9 = scalar_lea.vmem %s3121_s8, 32  ;;  %p4742_p7 = scmp.lt.s32.totalorder %s3121_s8, %s3121_s8 }
 0x1d3   :  { %v3772_v62 = vpack.c.bf16 %v857_v57, %v849_v56  ;;  %v4236_v52 = vpack.c.bf16 %v1825_v25, %v1821_v44  ;;  %v1824_v53 = vld [vmem:[#allocation7 + $0xb0] sm:$0xff]  ;;  %v1831_v54 = vld [vmem:[#allocation7 + $0xe8] sm:$0xff]  ;;  %v1829_v56 = vld [vmem:[#allocation7 + $0xd8] sm:$0xff]  ;;  %p4738_p6 = scmp.ne.s32.totalorder %s3121_s8, %s4737_s9  ;;  %p4743_p8 = scmp.lt.s32.totalorder %s4737_s9, %s4737_s9 }
 0x1d4   :  { %3751 = vmatpush1.bf16.msra.mxu0 %v3750_v63  ;;  %v848_v63 = vld [vmem:[#allocation2 + $0x1720] sm:$0xff]  ;;  %v4238_v11 = vpack.c.bf16 %v1824_v53, %v1820_v51 }
 0x1d5   :  { %3943 = vmatpush1.bf16.msra.mxu1 %v3942_v0  ;;  %3753 = vmatprep.subr.bf16.mxu0 %v3752_v1  ;;  %v856_v0 = vld [vmem:[#allocation2 + $0x1760] sm:$0xff]  ;;  %v850_v1 = vld [vmem:[#allocation2 + $0x1730] sm:$0xff]  ;;  %p4744_p9 = por %p4743_p8, %p4742_p7 }
 0x1d6   :  { %3945 = vmatprep.subr.bf16.mxu1 %v3944_v4  ;;  %v873_v4 = vld [vmem:[#allocation2 + $0x17e8] sm:$0xff]  ;;  %v3774_v7 = vpack.c.bf16 %v856_v0, %v848_v63  ;;  %v3966_v8 = vpack.c.bf16 %v858_v55, %v850_v1  ;;  %v1833_v57 = vld [vmem:[#allocation7 + $0xf8] sm:$0xff]  ;;  %v1828_v63 = vld [vmem:[#allocation7 + $0xd0] sm:$0xff] }
 0x1d7   :  { %v3776_v9 = vpack.c.bf16 %v873_v4, %v865_v3  ;;  %v4240_v0 = vpack.c.bf16 %v1833_v57, %v1829_v56  ;;  %v1832_v1 = vld [vmem:[#allocation7 + $0xf0] sm:$0xff]  ;;  %v1839_v55 = vld [vmem:[#allocation7 + $0x128] sm:$0xff]  ;;  %v1837_v3 = vld [vmem:[#allocation7 + $0x118] sm:$0xff]  ;;  %p4745_p10 = pnand %p4744_p9, %p4738_p6 }
 0x1d8   :  { %3755 = vmatpush1.bf16.msra.mxu0 %v3754_v10  ;;  %v864_v10 = vld [vmem:[#allocation2 + $0x17a0] sm:$0xff]  ;;  %v4242_v6 = vpack.c.bf16 %v1832_v1, %v1828_v63  ;;  %v1860_v56 = vld [vmem:[#allocation7 + $0x1d0] sm:$0xff] }
 0x1d9   :  { %3947 = vmatpush1.bf16.msra.mxu1 %v3946_v12  ;;  %3757 = vmatprep.subr.bf16.mxu0 %v3756_v13  ;;  %v872_v12 = vld [vmem:[#allocation2 + $0x17e0] sm:$0xff]  ;;  %v866_v13 = vld [vmem:[#allocation2 + $0x17b0] sm:$0xff] }
 0x1da   :  { %3949 = vmatprep.subr.bf16.mxu1 %v3948_v17  ;;  %v1807_v17 = vld [vmem:[#allocation7 + $0x28] sm:$0xff]  ;;  %v3778_v20 = vpack.c.bf16 %v872_v12, %v864_v10  ;;  %v3970_v21 = vpack.c.bf16 %v874_v15, %v866_v13  ;;  %v1841_v4 = vld [vmem:[#allocation7 + $0x138] sm:$0xff]  ;;  %v1836_v10 = vld [vmem:[#allocation7 + $0x110] sm:$0xff] }
 0x1db   :  { %v3972_v23 = vpack.c.bf16 %v1807_v17, %v1803_v16  ;;  %v4244_v12 = vpack.c.bf16 %v1841_v4, %v1837_v3  ;;  %v1840_v13 = vld [vmem:[#allocation7 + $0x130] sm:$0xff]  ;;  %v1847_v15 = vld [vmem:[#allocation7 + $0x168] sm:$0xff]  ;;  %v1845_v16 = vld [vmem:[#allocation7 + $0x158] sm:$0xff] }
 0x1dc   :  { %3759 = vmatpush1.bf16.msra.mxu0 %v3758_v24  ;;  %v1802_v24 = vld [vmem:[#allocation7] sm:$0xff]  ;;  %v1849_v17 = vld [vmem:[#allocation7 + $0x178] sm:$0xff]  ;;  %v1868_v3 = vld [vmem:[#allocation7 + $0x210] sm:$0xff] }
 0x1dd   :  { %3951 = vmatpush1.bf16.msra.mxu1 %v3950_v22  ;;  %3761 = vmatprep.subr.bf16.mxu0 %v3760_v27  ;;  %v1806_v22 = vld [vmem:[#allocation7 + $0x20] sm:$0xff]  ;;  %v1804_v27 = vld [vmem:[#allocation7 + $0x10] sm:$0xff]  ;;  %v4956_v19 = vld [vmem:[#allocation5] sm:$0xff] }
 0x1de   :  { %3953 = vmatprep.subr.bf16.mxu1 %v3952_v45  ;;  %v1815_v45 = vld [vmem:[#allocation7 + $0x68] sm:$0xff]  ;;  %v3974_v34 = vpack.c.bf16 %v1806_v22, %v1802_v24  ;;  %v4230_v35 = vpack.c.bf16 %v1808_v29, %v1804_v27  ;;  %v1842_v24 = vld [vmem:[#allocation7 + $0x140] sm:$0xff]  ;;  %v1844_v27 = vld [vmem:[#allocation7 + $0x150] sm:$0xff] }
 0x1df   :  { %v3976_v36 = vpack.c.bf16 %v1815_v45, %v1811_v30  ;;  %v1846_v22 = vld [vmem:[#allocation7 + $0x160] sm:$0xff]  ;;  %v1848_v29 = vld [vmem:[#allocation7 + $0x170] sm:$0xff]  ;;  %v1851_v30 = vld [vmem:[#allocation7 + $0x188] sm:$0xff] }
 0x1e0   :  { %3763 = vmatpush1.bf16.msra.mxu0 %v3762_v37  ;;  %v1810_v37 = vld [vmem:[#allocation7 + $0x40] sm:$0xff]  ;;  %v1855_v45 = vld [vmem:[#allocation7 + $0x1a8] sm:$0xff]  ;;  %v3994_v33 = vpack.c.bf16 %v1846_v22, %v1842_v24  ;;  %v1885_v24 = vld [vmem:[#allocation7 + $0x298] sm:$0xff] }
 0x1e1   :  { %3955 = vmatpush1.bf16.msra.mxu1 %v3954_v38  ;;  %3765 = vmatprep.subr.bf16.mxu0 %v3764_v39  ;;  %v1814_v38 = vld [vmem:[#allocation7 + $0x60] sm:$0xff]  ;;  %v1812_v39 = vld [vmem:[#allocation7 + $0x50] sm:$0xff]  ;;  %v1889_v22 = vld [vmem:[#allocation7 + $0x2b8] sm:$0xff] }
 0x1e2   :  { %3957 = vmatprep.subr.bf16.mxu1 %v3956_v43  ;;  %v1823_v43 = vld [vmem:[#allocation7 + $0xa8] sm:$0xff]  ;;  %v3978_v46 = vpack.c.bf16 %v1814_v38, %v1810_v37  ;;  %v4234_v47 = vpack.c.bf16 %v1816_v41, %v1812_v39  ;;  %v3996_v37 = vpack.c.bf16 %v1855_v45, %v1851_v30  ;;  %v1850_v38 = vld [vmem:[#allocation7 + $0x180] sm:$0xff] }
 0x1e3   :  { %v1854_v39 = vld [vmem:[#allocation7 + $0x1a0] sm:$0xff] }
 0x1e4   :  { %3767 = vmatpush1.bf16.msra.mxu0 %v3766_v48  ;;  %v3980_v48 = vpack.c.bf16 %v1823_v43, %v1819_v42  ;;  %v1856_v42 = vld [vmem:[#allocation7 + $0x1b0] sm:$0xff]  ;;  %v1859_v43 = vld [vmem:[#allocation7 + $0x1c8] sm:$0xff]  ;;  %v3998_v51 = vpack.c.bf16 %v1854_v39, %v1850_v38  ;;  %v1882_v30 = vld [vmem:[#allocation7 + $0x280] sm:$0xff] }
 0x1e5   :  { %3959 = vmatpush1.bf16.msra.mxu1 %v3958_v49  ;;  %3769 = vmatprep.subr.bf16.mxu0 %v3768_v50  ;;  %v1818_v49 = vld [vmem:[#allocation7 + $0x80] sm:$0xff]  ;;  %v1897_v38 = vld [vmem:[#allocation7 + $0x2f8] sm:$0xff] }
 0x1e6   :  { %3961 = vmatprep.subr.bf16.mxu1 %v3960_v26  ;;  %v1822_v50 = vld [vmem:[#allocation7 + $0xa0] sm:$0xff]  ;;  %v1827_v26 = vld [vmem:[#allocation7 + $0xc8] sm:$0xff] }
 0x1e7   :  { %v3982_v58 = vpack.c.bf16 %v1822_v50, %v1818_v49  ;;  %v1886_v45 = vld [vmem:[#allocation7 + $0x2a0] sm:$0xff] }
 0x1e8   :  { %3771 = vmatpush1.bf16.msra.mxu0 %v3770_v59  ;;  %v3984_v59 = vpack.c.bf16 %v1831_v54, %v1827_v26  ;;  %v1858_v26 = vld [vmem:[#allocation7 + $0x1c0] sm:$0xff]  ;;  %v4014_v39 = vpack.c.bf16 %v1886_v45, %v1882_v30  ;;  %v879_v30 = vsub.s32 0, %v4895_v61 }
 0x1e9   :  { %3963 = vmatpush1.bf16.msra.mxu1 %v3962_v60  ;;  %3773 = vmatprep.subr.bf16.mxu0 %v3772_v62  ;;  %v1826_v60 = vld [vmem:[#allocation7 + $0xc0] sm:$0xff] }
 0x1ea   :  { %3965 = vmatprep.subr.bf16.mxu1 %v3964_v2  ;;  %v1830_v62 = vld [vmem:[#allocation7 + $0xe0] sm:$0xff]  ;;  %v1835_v2 = vld [vmem:[#allocation7 + $0x108] sm:$0xff] }
 0x1eb   :  { %v3986_v5 = vpack.c.bf16 %v1830_v62, %v1826_v60  ;;  %v1862_v54 = vld [vmem:[#allocation7 + $0x1e0] sm:$0xff]  ;;  %v1869_v60 = vld [vmem:[#allocation7 + $0x218] sm:$0xff] }
 0x1ec   :  { %3775 = vmatpush1.bf16.msra.mxu0 %v3774_v7  ;;  %v3988_v7 = vpack.c.bf16 %v1839_v55, %v1835_v2  ;;  %v1873_v62 = vld [vmem:[#allocation7 + $0x238] sm:$0xff]  ;;  %v4002_v63 = vpack.c.bf16 %v1862_v54, %v1858_v26  ;;  %v1866_v2 = vld [vmem:[#allocation7 + $0x200] sm:$0xff] }
 0x1ed   :  { %3967 = vmatpush1.bf16.msra.mxu1 %v3966_v8  ;;  %3777 = vmatprep.subr.bf16.mxu0 %v3776_v9  ;;  %v1834_v8 = vld [vmem:[#allocation7 + $0x100] sm:$0xff]  ;;  %v4260_v4 = vpack.c.bf16 %v1873_v62, %v1869_v60  ;;  %v1907_v60 = vld [vmem:[#allocation7 + $0x348] sm:$0xff] }
 0x1ee   :  { %3969 = vmatprep.subr.bf16.mxu1 %v3968_v14  ;;  %v1838_v9 = vld [vmem:[#allocation7 + $0x120] sm:$0xff]  ;;  %v1843_v14 = vld [vmem:[#allocation7 + $0x148] sm:$0xff] }
 0x1ef   :  { %v3990_v18 = vpack.c.bf16 %v1838_v9, %v1834_v8  ;;  %v1870_v55 = vld [vmem:[#allocation7 + $0x220] sm:$0xff]  ;;  %v1877_v8 = vld [vmem:[#allocation7 + $0x258] sm:$0xff]  ;;  %v1911_v62 = vld [vmem:[#allocation7 + $0x368] sm:$0xff] }
 0x1f0   :  { %3779 = vmatpush1.bf16.msra.mxu0 %v3778_v20  ;;  %v883_v20 = vsub.s32 1, %v4895_v61  ;;  %v1881_v9 = vld [vmem:[#allocation7 + $0x278] sm:$0xff] }
 0x1f1   :  { %3971 = vmatpush1.bf16.msra.mxu1 %v3970_v21  ;;  %3973 = vmatprep.subr.bf16.mxu0 %v3972_v23  ;;  %v4246_v21 = vpack.c.bf16 %v1840_v13, %v1836_v10  ;;  %v3992_v23 = vpack.c.bf16 %v1847_v15, %v1843_v14  ;;  %v4006_v10 = vpack.c.bf16 %v1870_v55, %v1866_v2  ;;  %v1874_v14 = vld [vmem:[#allocation7 + $0x240] sm:$0xff] }
 0x1f2   :  { %4229 = vmatprep.subr.bf16.mxu1 %v4228_v28  ;;  %v4248_v28 = vpack.c.bf16 %v1849_v17, %v1845_v16  ;;  %v884_v31 = vrot.slane %v4956_v19, %v883_v20  ;;  %v1878_v15 = vld [vmem:[#allocation7 + $0x260] sm:$0xff]  ;;  %v1876_v16 = vld [vmem:[#allocation7 + $0x250] sm:$0xff]  ;;  %v4264_v17 = vpack.c.bf16 %v1881_v9, %v1877_v8  ;;  %v4024_v55 = vpack.c.bf16 %v1911_v62, %v1907_v60  ;;  %v1915_v8 = vld [vmem:[#allocation7 + $0x388] sm:$0xff] }
 0x1f3   :  { %1583 = vmatmul.mubr.f32.vlgmr.msra.gmra.mrb[2].mxu0 %v4603_v32  ;;  %v1919_v9 = vld [vmem:[#allocation7 + $0x3a8] sm:$0xff]  ;;  %v1938_v62 = vld [vmem:[#allocation7 + $0x440] sm:$0xff] }
 0x1f4   :  { %1796 = vmatmul.mubr.f32.vlgmr.msra.gmra.mrb[2].mxu1 %v4603_v32  ;;  %3975 = vmatpush1.bf16.msra.mxu0 %v3974_v34  ;;  %v1853_v34 = vld [vmem:[#allocation7 + $0x198] sm:$0xff]  ;;  %v1863_v32 = vld [vmem:[#allocation7 + $0x1e8] sm:$0xff] }
 0x1f5   :  { %4231 = vmatpush1.bf16.msra.mxu1 %v4230_v35  ;;  %3977 = vmatprep.subr.bf16.mxu0 %v3976_v36  ;;  %v1857_v35 = vld [vmem:[#allocation7 + $0x1b8] sm:$0xff]  ;;  %v4250_v36 = vpack.c.bf16 %v1848_v29, %v1844_v27  ;;  %v4000_v53 = vpack.c.bf16 %v1863_v32, %v1859_v43  ;;  %v4010_v27 = vpack.c.bf16 %v1878_v15, %v1874_v14  ;;  %v1890_v43 = vld [vmem:[#allocation7 + $0x2c0] sm:$0xff] }
 0x1f6   :  { %4233 = vmatprep.subr.bf16.mxu1 %v4232_v40  ;;  %v1852_v40 = vld [vmem:[#allocation7 + $0x190] sm:$0xff]  ;;  %v1894_v32 = vld [vmem:[#allocation7 + $0x2e0] sm:$0xff]  ;;  %v4028_v15 = vpack.c.bf16 %v1919_v9, %v1915_v8 }
 0x1f8   :  { %3979 = vmatpush1.bf16.msra.mxu0 %v3978_v46  ;;  %v4252_v46 = vpack.c.bf16 %v1857_v35, %v1853_v34  ;;  %v1888_v34 = vld [vmem:[#allocation7 + $0x2b0] sm:$0xff]  ;;  %v1891_v35 = vld [vmem:[#allocation7 + $0x2c8] sm:$0xff] }
 0x1f9   :  { %4235 = vmatpush1.bf16.msra.mxu1 %v4234_v47  ;;  %3981 = vmatprep.subr.bf16.mxu0 %v3980_v48  ;;  %v1861_v47 = vld [vmem:[#allocation7 + $0x1d8] sm:$0xff] }
 0x1fa   :  { %4237 = vmatprep.subr.bf16.mxu1 %v4236_v52  ;;  %v1865_v48 = vld [vmem:[#allocation7 + $0x1f8] sm:$0xff]  ;;  %v4254_v52 = vpack.c.bf16 %v1856_v42, %v1852_v40 }
 0x1fb   :  { %v4256_v57 = vpack.c.bf16 %v1865_v48, %v1861_v47  ;;  %v1896_v47 = vld [vmem:[#allocation7 + $0x2f0] sm:$0xff]  ;;  %v1899_v48 = vld [vmem:[#allocation7 + $0x308] sm:$0xff] }
 0x1fc   :  { %3983 = vmatpush1.bf16.msra.mxu0 %v3982_v58  ;;  %v1864_v58 = vld [vmem:[#allocation7 + $0x1f0] sm:$0xff] }
 0x1fd   :  { %4239 = vmatpush1.bf16.msra.mxu1 %v4238_v11  ;;  %3985 = vmatprep.subr.bf16.mxu0 %v3984_v59  ;;  %v1867_v11 = vld [vmem:[#allocation7 + $0x208] sm:$0xff] }
 0x1fe   :  { %4241 = vmatprep.subr.bf16.mxu1 %v4240_v0  ;;  %v1871_v59 = vld [vmem:[#allocation7 + $0x228] sm:$0xff]  ;;  %v4258_v0 = vpack.c.bf16 %v1864_v58, %v1860_v56  ;;  %v1898_v56 = vld [vmem:[#allocation7 + $0x300] sm:$0xff]  ;;  %v1900_v58 = vld [vmem:[#allocation7 + $0x310] sm:$0xff] }
 0x1ff   :  { %v4004_v1 = vpack.c.bf16 %v1871_v59, %v1867_v11  ;;  %v1904_v59 = vld [vmem:[#allocation7 + $0x330] sm:$0xff] }
 0x200   :  { %3987 = vmatpush1.bf16.msra.mxu0 %v3986_v5  ;;  %v1872_v5 = vld [vmem:[#allocation7 + $0x230] sm:$0xff]  ;;  %v4278_v2 = vpack.c.bf16 %v1904_v59, %v1900_v58  ;;  %v1941_v58 = vld [vmem:[#allocation7 + $0x458] sm:$0xff] }
 0x201   :  { %4243 = vmatpush1.bf16.msra.mxu1 %v4242_v6  ;;  %3989 = vmatprep.subr.bf16.mxu0 %v3988_v7  ;;  %v1875_v6 = vld [vmem:[#allocation7 + $0x248] sm:$0xff] }
 0x202   :  { %4245 = vmatprep.subr.bf16.mxu1 %v4244_v12  ;;  %v1879_v7 = vld [vmem:[#allocation7 + $0x268] sm:$0xff]  ;;  %v4262_v12 = vpack.c.bf16 %v1872_v5, %v1868_v3  ;;  %v1906_v3 = vld [vmem:[#allocation7 + $0x340] sm:$0xff]  ;;  %v1908_v5 = vld [vmem:[#allocation7 + $0x350] sm:$0xff] }
 0x203   :  { %v4008_v13 = vpack.c.bf16 %v1879_v7, %v1875_v6  ;;  %v1912_v7 = vld [vmem:[#allocation7 + $0x370] sm:$0xff] }
 0x204   :  { %3991 = vmatpush1.bf16.msra.mxu0 %v3990_v18  ;;  %v1880_v18 = vld [vmem:[#allocation7 + $0x270] sm:$0xff]  ;;  %v4282_v14 = vpack.c.bf16 %v1912_v7, %v1908_v5  ;;  %v1953_v7 = vld [vmem:[#allocation7 + $0x4b8] sm:$0xff] }
 0x205   :  { %4247 = vmatpush1.bf16.msra.mxu1 %v4246_v21  ;;  %3993 = vmatprep.subr.bf16.mxu0 %v3992_v23  ;;  %v1883_v21 = vld [vmem:[#allocation7 + $0x288] sm:$0xff] }
 0x206   :  { %v4962_v41 = vpop.f32.mrb[0].mxu0  ;;  %4249 = vmatprep.subr.bf16.mxu1 %v4248_v28  ;;  %v1887_v23 = vld [vmem:[#allocation7 + $0x2a8] sm:$0xff]  ;;  %v4266_v28 = vpack.c.bf16 %v1880_v18, %v1876_v16  ;;  %v1914_v16 = vld [vmem:[#allocation7 + $0x380] sm:$0xff]  ;;  %v1916_v18 = vld [vmem:[#allocation7 + $0x390] sm:$0xff] }
 0x207   :  { %v4964_v44 = vpop.f32.mrb[0].mxu1  ;;  %v1160_v25 = vpop.f32.mrb[1].mxu0  ;;  %v4012_v29 = vpack.c.bf16 %v1887_v23, %v1883_v21  ;;  %v1920_v23 = vld [vmem:[#allocation7 + $0x3b0] sm:$0xff] }
 0x208   :  { %v4549_v49 = vadd.f32 %v1160_v25, %v884_v31  ;;  %v4966_v50 = vpop.f32.mrb[1].mxu1  ;;  %3995 = vmatpush1.bf16.msra.mxu0 %v3994_v33  ;;  %v1884_v31 = vld [vmem:[#allocation7 + $0x290] sm:$0xff]  ;;  %v4268_v33 = vpack.c.bf16 %v1889_v22, %v1885_v24  ;;  %v1923_v24 = vld [vmem:[#allocation7 + $0x3c8] sm:$0xff]  ;;  %v4286_v45 = vpack.c.bf16 %v1920_v23, %v1916_v18  ;;  %v1961_v18 = vld [vmem:[#allocation7 + $0x4f8] sm:$0xff] }
 0x209   :  { %4251 = vmatpush1.bf16.msra.mxu1 %v4250_v36  ;;  %3997 = vmatprep.subr.bf16.mxu0 %v3996_v37  ;;  %v1895_v36 = vld [vmem:[#allocation7 + $0x2e8] sm:$0xff]  ;;  %v1893_v37 = vld [vmem:[#allocation7 + $0x2d8] sm:$0xff]  ;;  %v4270_v40 = vpack.c.bf16 %v1888_v34, %v1884_v31  ;;  %v1892_v25 = vld [vmem:[#allocation7 + $0x2d0] sm:$0xff] }
 0x20a   :  { %2399 = vmatprep.mubr.f32.mxu0 %v4549_v49  ;;  %2683 = vmatprep.mubr.f32.mxu1 %v4549_v49  ;;  %v4016_v42 = vpack.c.bf16 %v1895_v36, %v1891_v35  ;;  %v1903_v49 = vld [vmem:[#allocation7 + $0x328] sm:$0xff]  ;;  %v4274_v26 = vpack.c.bf16 %v1896_v47, %v1892_v25  ;;  %v1926_v34 = vld [vmem:[#allocation7 + $0x3e0] sm:$0xff]  ;;  %v1924_v35 = vld [vmem:[#allocation7 + $0x3d0] sm:$0xff]  ;;  %v880_v25 = vrot.slane %v4956_v19, %v879_v30 }
 0x20b   :  { %4253 = vmatprep.subr.bf16.mxu1 %v4252_v46  ;;  %v4272_v46 = vpack.c.bf16 %v1897_v38, %v1893_v37  ;;  %v4020_v54 = vpack.c.bf16 %v1903_v49, %v1899_v48  ;;  %v1927_v22 = vld [vmem:[#allocation7 + $0x3e8] sm:$0xff]  ;;  %v1928_v37 = vld [vmem:[#allocation7 + $0x3f0] sm:$0xff]  ;;  %v1930_v48 = vld [vmem:[#allocation7 + $0x400] sm:$0xff] }
 0x20c   :  { %3999 = vmatpush1.bf16.msra.mxu0 %v3998_v51  ;;  %v1901_v51 = vld [vmem:[#allocation7 + $0x318] sm:$0xff]  ;;  %v4032_v31 = vpack.c.bf16 %v1927_v22, %v1923_v24  ;;  %v1931_v38 = vld [vmem:[#allocation7 + $0x408] sm:$0xff]  ;;  %v1934_v49 = vld [vmem:[#allocation7 + $0x420] sm:$0xff]  ;;  %v4548_v59 = vadd.f32 %v4962_v41, %v880_v25 }
 0x20d   :  { %4255 = vmatpush1.bf16.msra.mxu1 %v4254_v52  ;;  %4001 = vmatprep.subr.bf16.mxu0 %v4000_v53  ;;  %v1905_v52 = vld [vmem:[#allocation7 + $0x338] sm:$0xff]  ;;  %v4018_v53 = vpack.c.bf16 %v1894_v32, %v1890_v43  ;;  %v1954_v22 = vld [vmem:[#allocation7 + $0x4c0] sm:$0xff]  ;;  %v1968_v25 = vld [vmem:[#allocation7 + $0x530] sm:$0xff] }
 0x20e   :  { %4257 = vmatprep.subr.bf16.mxu1 %v4256_v57  ;;  %v1902_v57 = vld [vmem:[#allocation7 + $0x320] sm:$0xff]  ;;  %v4276_v11 = vpack.c.bf16 %v1905_v52, %v1901_v51  ;;  %v1937_v43 = vld [vmem:[#allocation7 + $0x438] sm:$0xff]  ;;  %v1932_v52 = vld [vmem:[#allocation7 + $0x410] sm:$0xff] }
 0x210   :  { %4003 = vmatpush1.bf16.msra.mxu0 %v4002_v63  ;;  %v1909_v63 = vld [vmem:[#allocation7 + $0x358] sm:$0xff] }
 0x211   :  { %4259 = vmatpush1.bf16.msra.mxu1 %v4258_v0  ;;  %4005 = vmatprep.subr.bf16.mxu0 %v4004_v1  ;;  %v1913_v0 = vld [vmem:[#allocation7 + $0x378] sm:$0xff]  ;;  %v4022_v1 = vpack.c.bf16 %v1902_v57, %v1898_v56  ;;  %v1943_v56 = vld [vmem:[#allocation7 + $0x468] sm:$0xff]  ;;  %v4038_v57 = vpack.c.bf16 %v1934_v49, %v1930_v48 }
 0x212   :  { %4261 = vmatprep.subr.bf16.mxu1 %v4260_v4  ;;  %v1910_v4 = vld [vmem:[#allocation7 + $0x360] sm:$0xff]  ;;  %v4280_v6 = vpack.c.bf16 %v1913_v0, %v1909_v63  ;;  %v1940_v0 = vld [vmem:[#allocation7 + $0x450] sm:$0xff]  ;;  %v1973_v48 = vld [vmem:[#allocation7 + $0x558] sm:$0xff] }
 0x213   :  { %v1942_v63 = vld [vmem:[#allocation7 + $0x460] sm:$0xff]  ;;  %v1977_v49 = vld [vmem:[#allocation7 + $0x578] sm:$0xff] }
 0x214   :  { %4007 = vmatpush1.bf16.msra.mxu0 %v4006_v10  ;;  %v1917_v10 = vld [vmem:[#allocation7 + $0x398] sm:$0xff]  ;;  %v4042_v41 = vpack.c.bf16 %v1942_v63, %v1938_v62 }
 0x215   :  { %4263 = vmatpush1.bf16.msra.mxu1 %v4262_v12  ;;  %4009 = vmatprep.subr.bf16.mxu0 %v4008_v13  ;;  %v1921_v12 = vld [vmem:[#allocation7 + $0x3b8] sm:$0xff]  ;;  %v4026_v13 = vpack.c.bf16 %v1910_v4, %v1906_v3  ;;  %v1951_v3 = vld [vmem:[#allocation7 + $0x4a8] sm:$0xff] }
 0x216   :  { %4265 = vmatprep.subr.bf16.mxu1 %v4264_v17  ;;  %v1918_v17 = vld [vmem:[#allocation7 + $0x3a0] sm:$0xff]  ;;  %v4284_v21 = vpack.c.bf16 %v1921_v12, %v1917_v10  ;;  %v1985_v62 = vld [vmem:[#allocation7 + $0x5b8] sm:$0xff] }
 0x217   :  { %v1946_v10 = vld [vmem:[#allocation7 + $0x480] sm:$0xff] }
 0x218   :  { %4011 = vmatpush1.bf16.msra.mxu0 %v4010_v27  ;;  %v1925_v27 = vld [vmem:[#allocation7 + $0x3d8] sm:$0xff]  ;;  %v1950_v12 = vld [vmem:[#allocation7 + $0x4a0] sm:$0xff] }
 0x219   :  { %4267 = vmatpush1.bf16.msra.mxu1 %v4266_v28  ;;  %4013 = vmatprep.subr.bf16.mxu0 %v4012_v29  ;;  %v1929_v28 = vld [vmem:[#allocation7 + $0x3f8] sm:$0xff]  ;;  %v4030_v29 = vpack.c.bf16 %v1918_v17, %v1914_v16  ;;  %v1955_v16 = vld [vmem:[#allocation7 + $0x4c8] sm:$0xff] }
 0x21a   :  { %4269 = vmatprep.subr.bf16.mxu1 %v4268_v33  ;;  %v1922_v33 = vld [vmem:[#allocation7 + $0x3c0] sm:$0xff]  ;;  %v4288_v36 = vpack.c.bf16 %v1929_v28, %v1925_v27  ;;  %v1957_v17 = vld [vmem:[#allocation7 + $0x4d8] sm:$0xff]  ;;  %v1956_v28 = vld [vmem:[#allocation7 + $0x4d0] sm:$0xff] }
 0x21b   :  { %v4034_v32 = vpack.c.bf16 %v1926_v34, %v1922_v33  ;;  %v1958_v27 = vld [vmem:[#allocation7 + $0x4e0] sm:$0xff]  ;;  %v1967_v33 = vld [vmem:[#allocation7 + $0x528] sm:$0xff]  ;;  %v1965_v34 = vld [vmem:[#allocation7 + $0x518] sm:$0xff] }
 0x21c   :  { %4015 = vmatpush1.bf16.msra.mxu0 %v4014_v39  ;;  %v1935_v39 = vld [vmem:[#allocation7 + $0x428] sm:$0xff] }
 0x21d   :  { %4271 = vmatpush1.bf16.msra.mxu1 %v4270_v40  ;;  %4017 = vmatprep.subr.bf16.mxu0 %v4016_v42  ;;  %v891_v40 = vsub.s32 3, %v4895_v61  ;;  %v1933_v42 = vld [vmem:[#allocation7 + $0x418] sm:$0xff]  ;;  %v4036_v47 = vpack.c.bf16 %v1935_v39, %v1931_v38  ;;  %v1962_v39 = vld [vmem:[#allocation7 + $0x500] sm:$0xff] }
 0x21e   :  { %4273 = vmatprep.subr.bf16.mxu1 %v4272_v46  ;;  %v4290_v46 = vpack.c.bf16 %v1928_v37, %v1924_v35  ;;  %v4292_v51 = vpack.c.bf16 %v1937_v43, %v1933_v42  ;;  %v1969_v35 = vld [vmem:[#allocation7 + $0x538] sm:$0xff]  ;;  %v1966_v42 = vld [vmem:[#allocation7 + $0x520] sm:$0xff]  ;;  %v1964_v43 = vld [vmem:[#allocation7 + $0x510] sm:$0xff] }
 0x220   :  { %4019 = vmatpush1.bf16.msra.mxu0 %v4018_v53  ;;  %v1936_v53 = vld [vmem:[#allocation7 + $0x430] sm:$0xff] }
 0x221   :  { %4275 = vmatpush1.bf16.msra.mxu1 %v4274_v26  ;;  %4021 = vmatprep.subr.bf16.mxu0 %v4020_v54  ;;  %v892_v26 = vrot.slane %v4956_v19, %v891_v40  ;;  %v1939_v54 = vld [vmem:[#allocation7 + $0x448] sm:$0xff]  ;;  %v4294_v60 = vpack.c.bf16 %v1936_v53, %v1932_v52  ;;  %v4310_v52 = vpack.c.bf16 %v1968_v25, %v1964_v43  ;;  %v2002_v43 = vld [vmem:[#allocation7 + $0x640] sm:$0xff]  ;;  %v2004_v25 = vld [vmem:[#allocation7 + $0x650] sm:$0xff] }
 0x222   :  { %4277 = vmatprep.subr.bf16.mxu1 %v4276_v11  ;;  %v1945_v11 = vld [vmem:[#allocation7 + $0x478] sm:$0xff] }
 0x223   :  { %v4551_v4 = vadd.f32 %v4966_v50, %v892_v26  ;;  %v4296_v5 = vpack.c.bf16 %v1945_v11, %v1941_v58  ;;  %v1959_v50 = vld [vmem:[#allocation7 + $0x4e8] sm:$0xff]  ;;  %v1970_v26 = vld [vmem:[#allocation7 + $0x540] sm:$0xff]  ;;  %v1976_v58 = vld [vmem:[#allocation7 + $0x570] sm:$0xff] }
 0x224   :  { %4023 = vmatpush1.bf16.msra.mxu0 %v4022_v1  ;;  %v4040_v1 = vpack.c.bf16 %v1943_v56, %v1939_v54  ;;  %v4048_v24 = vpack.c.bf16 %v1959_v50, %v1955_v16  ;;  %v1974_v54 = vld [vmem:[#allocation7 + $0x560] sm:$0xff]  ;;  %v1972_v56 = vld [vmem:[#allocation7 + $0x550] sm:$0xff]  ;;  %v1979_v11 = vld [vmem:[#allocation7 + $0x588] sm:$0xff] }
 0x225   :  { %4279 = vmatpush1.bf16.msra.mxu1 %v4278_v2  ;;  %4025 = vmatprep.subr.bf16.mxu0 %v4024_v55  ;;  %v1944_v2 = vld [vmem:[#allocation7 + $0x470] sm:$0xff]  ;;  %v1947_v55 = vld [vmem:[#allocation7 + $0x488] sm:$0xff]  ;;  %v4058_v63 = vpack.c.bf16 %v1974_v54, %v1970_v26 }
 0x226   :  { %4281 = vmatprep.subr.bf16.mxu1 %v4280_v6  ;;  %v1949_v6 = vld [vmem:[#allocation7 + $0x498] sm:$0xff]  ;;  %v4298_v8 = vpack.c.bf16 %v1944_v2, %v1940_v0  ;;  %v4044_v9 = vpack.c.bf16 %v1951_v3, %v1947_v55  ;;  %v4314_v0 = vpack.c.bf16 %v1976_v58, %v1972_v56  ;;  %v1978_v2 = vld [vmem:[#allocation7 + $0x580] sm:$0xff]  ;;  %v1980_v3 = vld [vmem:[#allocation7 + $0x590] sm:$0xff] }
 0x227   :  { %v1982_v55 = vld [vmem:[#allocation7 + $0x5a0] sm:$0xff]  ;;  %v1992_v50 = vld [vmem:[#allocation7 + $0x5f0] sm:$0xff] }
 0x228   :  { %4027 = vmatpush1.bf16.msra.mxu0 %v4026_v13  ;;  %v1948_v13 = vld [vmem:[#allocation7 + $0x490] sm:$0xff]  ;;  %v2010_v56 = vld [vmem:[#allocation7 + $0x680] sm:$0xff] }
 0x229   :  { %4283 = vmatpush1.bf16.msra.mxu1 %v4282_v14  ;;  %4029 = vmatprep.subr.bf16.mxu0 %v4028_v15  ;;  %v4300_v14 = vpack.c.bf16 %v1953_v7, %v1949_v6  ;;  %v1952_v15 = vld [vmem:[#allocation7 + $0x4b0] sm:$0xff]  ;;  %v1987_v6 = vld [vmem:[#allocation7 + $0x5c8] sm:$0xff] }
 0x22a   :  { %4285 = vmatprep.subr.bf16.mxu1 %v4284_v21  ;;  %v4046_v21 = vpack.c.bf16 %v1950_v12, %v1946_v10  ;;  %v4302_v23 = vpack.c.bf16 %v1952_v15, %v1948_v13  ;;  %v1991_v7 = vld [vmem:[#allocation7 + $0x5e8] sm:$0xff]  ;;  %v1986_v13 = vld [vmem:[#allocation7 + $0x5c0] sm:$0xff]  ;;  %v1988_v15 = vld [vmem:[#allocation7 + $0x5d0] sm:$0xff] }
 0x22b   :  { %v4064_v12 = vpack.c.bf16 %v1991_v7, %v1987_v6  ;;  %v2012_v58 = vld [vmem:[#allocation7 + $0x690] sm:$0xff] }
 0x22c   :  { %4031 = vmatpush1.bf16.msra.mxu0 %v4030_v29  ;;  %v4304_v29 = vpack.c.bf16 %v1961_v18, %v1957_v17  ;;  %v1995_v17 = vld [vmem:[#allocation7 + $0x608] sm:$0xff]  ;;  %v2024_v7 = vld [vmem:[#allocation7 + $0x6f0] sm:$0xff] }
 0x22d   :  { %4287 = vmatpush1.bf16.msra.mxu1 %v4286_v45  ;;  %4033 = vmatprep.subr.bf16.mxu0 %v4032_v31  ;;  %v1960_v45 = vld [vmem:[#allocation7 + $0x4f0] sm:$0xff]  ;;  %v1963_v31 = vld [vmem:[#allocation7 + $0x508] sm:$0xff] }
 0x22e   :  { %4289 = vmatprep.subr.bf16.mxu1 %v4288_v36  ;;  %v4050_v36 = vpack.c.bf16 %v1958_v27, %v1954_v22  ;;  %v4306_v37 = vpack.c.bf16 %v1960_v45, %v1956_v28  ;;  %v4052_v38 = vpack.c.bf16 %v1967_v33, %v1963_v31  ;;  %v1999_v18 = vld [vmem:[#allocation7 + $0x628] sm:$0xff]  ;;  %v4322_v22 = vpack.c.bf16 %v1992_v50, %v1988_v15  ;;  %v1994_v28 = vld [vmem:[#allocation7 + $0x600] sm:$0xff]  ;;  %v1996_v45 = vld [vmem:[#allocation7 + $0x610] sm:$0xff] }
 0x22f   :  { %v4068_v27 = vpack.c.bf16 %v1999_v18, %v1995_v17  ;;  %v2000_v33 = vld [vmem:[#allocation7 + $0x630] sm:$0xff]  ;;  %v2026_v15 = vld [vmem:[#allocation7 + $0x700] sm:$0xff] }
 0x230   :  { %4035 = vmatpush1.bf16.msra.mxu0 %v4034_v32  ;;  %v4308_v32 = vpack.c.bf16 %v1969_v35, %v1965_v34  ;;  %v2003_v34 = vld [vmem:[#allocation7 + $0x648] sm:$0xff]  ;;  %v2028_v50 = vld [vmem:[#allocation7 + $0x710] sm:$0xff] }
 0x231   :  { %4291 = vmatpush1.bf16.msra.mxu1 %v4290_v46  ;;  %4037 = vmatprep.subr.bf16.mxu0 %v4036_v47  ;;  %v1971_v46 = vld [vmem:[#allocation7 + $0x548] sm:$0xff]  ;;  %v2032_v18 = vld [vmem:[#allocation7 + $0x730] sm:$0xff] }
 0x232   :  { %4293 = vmatprep.subr.bf16.mxu1 %v4292_v51  ;;  %v1975_v47 = vld [vmem:[#allocation7 + $0x568] sm:$0xff]  ;;  %v4054_v51 = vpack.c.bf16 %v1966_v42, %v1962_v39  ;;  %v4326_v39 = vpack.c.bf16 %v2000_v33, %v1996_v45  ;;  %v2034_v45 = vld [vmem:[#allocation7 + $0x740] sm:$0xff]  ;;  %v2036_v33 = vld [vmem:[#allocation7 + $0x750] sm:$0xff] }
 0x233   :  { %2400 = vmatmul.mubr.f32.vlgmr.msra.gmra.mrb[4].mxu0 %v4548_v59  ;;  %v4056_v53 = vpack.c.bf16 %v1975_v47, %v1971_v46  ;;  %v2007_v35 = vld [vmem:[#allocation7 + $0x668] sm:$0xff]  ;;  %v2008_v47 = vld [vmem:[#allocation7 + $0x670] sm:$0xff] }
 0x234   :  { %2684 = vmatmul.mubr.f32.vlgmr.msra.gmra.mrb[4].mxu1 %v4548_v59  ;;  %4039 = vmatpush1.bf16.msra.mxu0 %v4038_v57  ;;  %v4312_v57 = vpack.c.bf16 %v1977_v49, %v1973_v48  ;;  %v1983_v59 = vld [vmem:[#allocation7 + $0x5a8] sm:$0xff]  ;;  %v4072_v42 = vpack.c.bf16 %v2007_v35, %v2003_v34  ;;  %v4330_v26 = vpack.c.bf16 %v2008_v47, %v2004_v25  ;;  %v2040_v35 = vld [vmem:[#allocation7 + $0x770] sm:$0xff]  ;;  %v2042_v25 = vld [vmem:[#allocation7 + $0x780] sm:$0xff] }
 0x235   :  { %2470 = vmatprep.mubr.f32.mxu0 %v4551_v4  ;;  %4295 = vmatpush1.bf16.msra.mxu1 %v4294_v60  ;;  %v1981_v60 = vld [vmem:[#allocation7 + $0x598] sm:$0xff]  ;;  %v2011_v48 = vld [vmem:[#allocation7 + $0x688] sm:$0xff]  ;;  %v2044_v47 = vld [vmem:[#allocation7 + $0x790] sm:$0xff] }
 0x236   :  { %2754 = vmatprep.mubr.f32.mxu1 %v4551_v4  ;;  %4041 = vmatprep.subr.bf16.mxu0 %v4040_v1  ;;  %v4060_v1 = vpack.c.bf16 %v1983_v59, %v1979_v11  ;;  %v4316_v4 = vpack.c.bf16 %v1985_v62, %v1981_v60  ;;  %v2015_v49 = vld [vmem:[#allocation7 + $0x6a8] sm:$0xff]  ;;  %v2016_v59 = vld [vmem:[#allocation7 + $0x6b0] sm:$0xff] }
 0x237   :  { %4297 = vmatprep.subr.bf16.mxu1 %v4296_v5  ;;  %v1984_v5 = vld [vmem:[#allocation7 + $0x5b0] sm:$0xff]  ;;  %v4076_v54 = vpack.c.bf16 %v2015_v49, %v2011_v48  ;;  %v2019_v60 = vld [vmem:[#allocation7 + $0x6c8] sm:$0xff] }
 0x238   :  { %4043 = vmatpush1.bf16.msra.mxu0 %v4042_v41  ;;  %v1989_v41 = vld [vmem:[#allocation7 + $0x5d8] sm:$0xff]  ;;  %v4318_v10 = vpack.c.bf16 %v1984_v5, %v1980_v3  ;;  %v2023_v62 = vld [vmem:[#allocation7 + $0x6e8] sm:$0xff]  ;;  %v2018_v3 = vld [vmem:[#allocation7 + $0x6c0] sm:$0xff] }
 0x239   :  { %4299 = vmatpush1.bf16.msra.mxu1 %v4298_v8  ;;  %4045 = vmatprep.subr.bf16.mxu0 %v4044_v9  ;;  %v1993_v8 = vld [vmem:[#allocation7 + $0x5f8] sm:$0xff]  ;;  %v4062_v9 = vpack.c.bf16 %v1982_v55, %v1978_v2  ;;  %v4334_v2 = vpack.c.bf16 %v2016_v59, %v2012_v58  ;;  %v4080_v55 = vpack.c.bf16 %v2023_v62, %v2019_v60  ;;  %v2020_v5 = vld [vmem:[#allocation7 + $0x6d0] sm:$0xff]  ;;  %v2054_v59 = vld [vmem:[#allocation7 + $0x7e0] sm:$0xff] }
 0x23a   :  { %4301 = vmatprep.subr.bf16.mxu1 %v4300_v14  ;;  %v1990_v14 = vld [vmem:[#allocation7 + $0x5e0] sm:$0xff]  ;;  %v4320_v16 = vpack.c.bf16 %v1993_v8, %v1989_v41  ;;  %v2027_v41 = vld [vmem:[#allocation7 + $0x708] sm:$0xff]  ;;  %v2048_v49 = vld [vmem:[#allocation7 + $0x7b0] sm:$0xff] }
 0x23b   :  { %v2031_v8 = vld [vmem:[#allocation7 + $0x728] sm:$0xff]  ;;  %v2052_v60 = vld [vmem:[#allocation7 + $0x7d0] sm:$0xff] }
 0x23c   :  { %4047 = vmatpush1.bf16.msra.mxu0 %v4046_v21  ;;  %v1997_v21 = vld [vmem:[#allocation7 + $0x618] sm:$0xff] }
 0x23d   :  { %4303 = vmatpush1.bf16.msra.mxu1 %v4302_v23  ;;  %4049 = vmatprep.subr.bf16.mxu0 %v4048_v24  ;;  %v2001_v23 = vld [vmem:[#allocation7 + $0x638] sm:$0xff]  ;;  %v4066_v24 = vpack.c.bf16 %v1990_v14, %v1986_v13  ;;  %v4338_v13 = vpack.c.bf16 %v2024_v7, %v2020_v5  ;;  %v4084_v14 = vpack.c.bf16 %v2031_v8, %v2027_v41  ;;  %v2058_v7 = vld [vmem:[#allocation7 + $0x800] sm:$0xff]  ;;  %v2060_v8 = vld [vmem:[#allocation7 + $0x810] sm:$0xff] }
 0x23e   :  { %4305 = vmatprep.subr.bf16.mxu1 %v4304_v29  ;;  %v1998_v29 = vld [vmem:[#allocation7 + $0x620] sm:$0xff]  ;;  %v4324_v31 = vpack.c.bf16 %v2001_v23, %v1997_v21  ;;  %v2035_v21 = vld [vmem:[#allocation7 + $0x748] sm:$0xff] }
 0x23f   :  { %v2039_v23 = vld [vmem:[#allocation7 + $0x768] sm:$0xff]  ;;  %v2062_v41 = vld [vmem:[#allocation7 + $0x820] sm:$0xff] }
 0x240   :  { %4051 = vmatpush1.bf16.msra.mxu0 %v4050_v36  ;;  %v2005_v36 = vld [vmem:[#allocation7 + $0x658] sm:$0xff] }
 0x241   :  { %4307 = vmatpush1.bf16.msra.mxu1 %v4306_v37  ;;  %4053 = vmatprep.subr.bf16.mxu0 %v4052_v38  ;;  %v2009_v37 = vld [vmem:[#allocation7 + $0x678] sm:$0xff]  ;;  %v4070_v38 = vpack.c.bf16 %v1998_v29, %v1994_v28  ;;  %v4342_v28 = vpack.c.bf16 %v2032_v18, %v2028_v50  ;;  %v4088_v29 = vpack.c.bf16 %v2039_v23, %v2035_v21  ;;  %v2066_v18 = vld [vmem:[#allocation7 + $0x840] sm:$0xff]  ;;  %v2068_v23 = vld [vmem:[#allocation7 + $0x850] sm:$0xff] }
 0x242   :  { %4309 = vmatprep.subr.bf16.mxu1 %v4308_v32  ;;  %v2006_v32 = vld [vmem:[#allocation7 + $0x660] sm:$0xff]  ;;  %v4328_v46 = vpack.c.bf16 %v2009_v37, %v2005_v36  ;;  %v2043_v36 = vld [vmem:[#allocation7 + $0x788] sm:$0xff] }
 0x243   :  { %v2047_v37 = vld [vmem:[#allocation7 + $0x7a8] sm:$0xff]  ;;  %v2070_v21 = vld [vmem:[#allocation7 + $0x860] sm:$0xff] }
 0x244   :  { %4055 = vmatpush1.bf16.msra.mxu0 %v4054_v51  ;;  %v2013_v51 = vld [vmem:[#allocation7 + $0x698] sm:$0xff] }
 0x245   :  { %4311 = vmatpush1.bf16.msra.mxu1 %v4310_v52  ;;  %4057 = vmatprep.subr.bf16.mxu0 %v4056_v53  ;;  %v2017_v52 = vld [vmem:[#allocation7 + $0x6b8] sm:$0xff]  ;;  %v4074_v53 = vpack.c.bf16 %v2006_v32, %v2002_v43  ;;  %v4346_v43 = vpack.c.bf16 %v2040_v35, %v2036_v33  ;;  %v4092_v32 = vpack.c.bf16 %v2047_v37, %v2043_v36  ;;  %v2078_v35 = vld [vmem:[#allocation7 + $0x8a0] sm:$0xff]  ;;  %v2076_v36 = vld [vmem:[#allocation7 + $0x890] sm:$0xff] }
 0x246   :  { %4313 = vmatprep.subr.bf16.mxu1 %v4312_v57  ;;  %v2014_v57 = vld [vmem:[#allocation7 + $0x6a0] sm:$0xff]  ;;  %v4332_v11 = vpack.c.bf16 %v2017_v52, %v2013_v51  ;;  %v2051_v51 = vld [vmem:[#allocation7 + $0x7c8] sm:$0xff] }
 0x247   :  { %v2055_v52 = vld [vmem:[#allocation7 + $0x7e8] sm:$0xff] }
 0x248   :  { %4059 = vmatpush1.bf16.msra.mxu0 %v4058_v63  ;;  %v2021_v63 = vld [vmem:[#allocation7 + $0x6d8] sm:$0xff]  ;;  %v4096_v58 = vpack.c.bf16 %v2055_v52, %v2051_v51  ;;  %v2084_v51 = vld [vmem:[#allocation7 + $0x8d0] sm:$0xff] }
 0x249   :  { %4315 = vmatpush1.bf16.msra.mxu1 %v4314_v0  ;;  %4061 = vmatprep.subr.bf16.mxu0 %v4060_v1  ;;  %v2025_v0 = vld [vmem:[#allocation7 + $0x6f8] sm:$0xff]  ;;  %v4078_v1 = vpack.c.bf16 %v2014_v57, %v2010_v56  ;;  %v887_v56 = vsub.s32 2, %v4895_v61  ;;  %v4350_v57 = vpack.c.bf16 %v2048_v49, %v2044_v47  ;;  %v2086_v49 = vld [vmem:[#allocation7 + $0x8e0] sm:$0xff] }
 0x24a   :  { %4317 = vmatprep.subr.bf16.mxu1 %v4316_v4  ;;  %v2022_v4 = vld [vmem:[#allocation7 + $0x6e0] sm:$0xff]  ;;  %v4336_v6 = vpack.c.bf16 %v2025_v0, %v2021_v63  ;;  %v2056_v63 = vld [vmem:[#allocation7 + $0x7f0] sm:$0xff]  ;;  %v2059_v0 = vld [vmem:[#allocation7 + $0x808] sm:$0xff] }
 0x24b   :  { %v4354_v5 = vpack.c.bf16 %v2056_v63, %v2052_v60  ;;  %v2094_v63 = vld [vmem:[#allocation7 + $0x920] sm:$0xff] }
 0x24c   :  { %4063 = vmatpush1.bf16.msra.mxu0 %v4062_v9  ;;  %v2029_v9 = vld [vmem:[#allocation7 + $0x718] sm:$0xff] }
 0x24d   :  { %4319 = vmatpush1.bf16.msra.mxu1 %v4318_v10  ;;  %4065 = vmatprep.subr.bf16.mxu0 %v4064_v12  ;;  %v2033_v10 = vld [vmem:[#allocation7 + $0x738] sm:$0xff]  ;;  %v4082_v12 = vpack.c.bf16 %v2022_v4, %v2018_v3  ;;  %v888_v4 = vrot.slane %v4956_v19, %v887_v56 }
 0x24e   :  { %4321 = vmatprep.subr.bf16.mxu1 %v4320_v16  ;;  %v2030_v16 = vld [vmem:[#allocation7 + $0x720] sm:$0xff]  ;;  %v4340_v17 = vpack.c.bf16 %v2033_v10, %v2029_v9  ;;  %v2064_v10 = vld [vmem:[#allocation7 + $0x830] sm:$0xff] }
 0x24f   :  { %v4550_v50 = vadd.f32 %v4964_v44, %v888_v4  ;;  %v4358_v19 = vpack.c.bf16 %v2064_v10, %v2060_v8  ;;  %v2101_v4 = vld [vmem:[#allocation7 + $0x958] sm:$0xff]  ;;  %v2098_v8 = vld [vmem:[#allocation7 + $0x940] sm:$0xff]  ;;  %v2100_v10 = vld [vmem:[#allocation7 + $0x950] sm:$0xff] }
 0x250   :  { %4067 = vmatpush1.bf16.msra.mxu0 %v4066_v24  ;;  %v2037_v24 = vld [vmem:[#allocation7 + $0x758] sm:$0xff] }
 0x251   :  { %4323 = vmatpush1.bf16.msra.mxu1 %v4322_v22  ;;  %4069 = vmatprep.subr.bf16.mxu0 %v4068_v27  ;;  %v2041_v22 = vld [vmem:[#allocation7 + $0x778] sm:$0xff]  ;;  %v4086_v27 = vpack.c.bf16 %v2030_v16, %v2026_v15  ;;  %v4102_v16 = vpack.c.bf16 %v2062_v41, %v2058_v7 }
 0x252   :  { %4325 = vmatprep.subr.bf16.mxu1 %v4324_v31  ;;  %v2038_v31 = vld [vmem:[#allocation7 + $0x760] sm:$0xff]  ;;  %v4344_v34 = vpack.c.bf16 %v2041_v22, %v2037_v24  ;;  %v2073_v15 = vld [vmem:[#allocation7 + $0x878] sm:$0xff]  ;;  %v2072_v22 = vld [vmem:[#allocation7 + $0x870] sm:$0xff] }
 0x253   :  { %v4362_v44 = vpack.c.bf16 %v2072_v22, %v2068_v23  ;;  %v2110_v23 = vld [vmem:[#allocation7 + $0x9a0] sm:$0xff] }
 0x254   :  { %4071 = vmatpush1.bf16.msra.mxu0 %v4070_v38  ;;  %v2045_v38 = vld [vmem:[#allocation7 + $0x798] sm:$0xff] }
 0x255   :  { %4327 = vmatpush1.bf16.msra.mxu1 %v4326_v39  ;;  %4073 = vmatprep.subr.bf16.mxu0 %v4072_v42  ;;  %v2049_v39 = vld [vmem:[#allocation7 + $0x7b8] sm:$0xff]  ;;  %v4090_v42 = vpack.c.bf16 %v2038_v31, %v2034_v45  ;;  %v4106_v31 = vpack.c.bf16 %v2070_v21, %v2066_v18  ;;  %v2106_v21 = vld [vmem:[#allocation7 + $0x980] sm:$0xff] }
 0x256   :  { %4329 = vmatprep.subr.bf16.mxu1 %v4328_v46  ;;  %v2046_v46 = vld [vmem:[#allocation7 + $0x7a0] sm:$0xff]  ;;  %v4348_v48 = vpack.c.bf16 %v2049_v39, %v2045_v38  ;;  %v2081_v45 = vld [vmem:[#allocation7 + $0x8b8] sm:$0xff]  ;;  %v2080_v38 = vld [vmem:[#allocation7 + $0x8b0] sm:$0xff] }
 0x257   :  { %v2083_v39 = vld [vmem:[#allocation7 + $0x8c8] sm:$0xff] }
 0x258   :  { %4075 = vmatpush1.bf16.msra.mxu0 %v4074_v53  ;;  %v2053_v53 = vld [vmem:[#allocation7 + $0x7d8] sm:$0xff] }
 0x259   :  { %4331 = vmatpush1.bf16.msra.mxu1 %v4330_v26  ;;  %4077 = vmatprep.subr.bf16.mxu0 %v4076_v54  ;;  %v2057_v26 = vld [vmem:[#allocation7 + $0x7f8] sm:$0xff]  ;;  %v4094_v54 = vpack.c.bf16 %v2046_v46, %v2042_v25  ;;  %v4366_v46 = vpack.c.bf16 %v2080_v38, %v2076_v36  ;;  %v2118_v36 = vld [vmem:[#allocation7 + $0x9e0] sm:$0xff] }
 0x25a   :  { %4333 = vmatprep.subr.bf16.mxu1 %v4332_v11  ;;  %v2050_v11 = vld [vmem:[#allocation7 + $0x7c0] sm:$0xff]  ;;  %v4352_v62 = vpack.c.bf16 %v2057_v26, %v2053_v53  ;;  %v2088_v53 = vld [vmem:[#allocation7 + $0x8f0] sm:$0xff]  ;;  %v2091_v26 = vld [vmem:[#allocation7 + $0x908] sm:$0xff] }
 0x25b   :  { %v4098_v3 = vpack.c.bf16 %v2054_v59, %v2050_v11  ;;  %v4370_v59 = vpack.c.bf16 %v2088_v53, %v2084_v51  ;;  %v2126_v51 = vld [vmem:[#allocation7 + $0xa20] sm:$0xff] }
 0x25c   :  { %4079 = vmatpush1.bf16.msra.mxu0 %v4078_v1  ;;  %v2063_v1 = vld [vmem:[#allocation7 + $0x828] sm:$0xff] }
 0x25d   :  { %4335 = vmatpush1.bf16.msra.mxu1 %v4334_v2  ;;  %4081 = vmatprep.subr.bf16.mxu0 %v4080_v55  ;;  %v2061_v2 = vld [vmem:[#allocation7 + $0x818] sm:$0xff] }
 0x25e   :  { %4337 = vmatprep.subr.bf16.mxu1 %v4336_v6  ;;  %v2065_v55 = vld [vmem:[#allocation7 + $0x838] sm:$0xff]  ;;  %v4100_v6 = vpack.c.bf16 %v2063_v1, %v2059_v0  ;;  %v2092_v0 = vld [vmem:[#allocation7 + $0x910] sm:$0xff] }
 0x25f   :  { %v4356_v9 = vpack.c.bf16 %v2065_v55, %v2061_v2  ;;  %v2096_v2 = vld [vmem:[#allocation7 + $0x930] sm:$0xff]  ;;  %v2099_v55 = vld [vmem:[#allocation7 + $0x948] sm:$0xff] }
 0x260   :  { %4083 = vmatpush1.bf16.msra.mxu0 %v4082_v12  ;;  %v2067_v12 = vld [vmem:[#allocation7 + $0x848] sm:$0xff]  ;;  %v4374_v7 = vpack.c.bf16 %v2096_v2, %v2092_v0  ;;  %v2134_v0 = vld [vmem:[#allocation7 + $0xa60] sm:$0xff] }
 0x261   :  { %4339 = vmatpush1.bf16.msra.mxu1 %v4338_v13  ;;  %4085 = vmatprep.subr.bf16.mxu0 %v4084_v14  ;;  %v2071_v13 = vld [vmem:[#allocation7 + $0x868] sm:$0xff]  ;;  %v2069_v14 = vld [vmem:[#allocation7 + $0x858] sm:$0xff] }
 0x262   :  { %4341 = vmatprep.subr.bf16.mxu1 %v4340_v17  ;;  %v4104_v17 = vpack.c.bf16 %v2071_v13, %v2067_v12  ;;  %v4360_v24 = vpack.c.bf16 %v2073_v15, %v2069_v14  ;;  %v2104_v13 = vld [vmem:[#allocation7 + $0x970] sm:$0xff]  ;;  %v2107_v14 = vld [vmem:[#allocation7 + $0x988] sm:$0xff] }
 0x263   :  { %v2111_v15 = vld [vmem:[#allocation7 + $0x9a8] sm:$0xff] }
 0x264   :  { %4087 = vmatpush1.bf16.msra.mxu0 %v4086_v27  ;;  %v2075_v27 = vld [vmem:[#allocation7 + $0x888] sm:$0xff]  ;;  %v4124_v18 = vpack.c.bf16 %v2111_v15, %v2107_v14  ;;  %v2144_v14 = vld [vmem:[#allocation7 + $0xab0] sm:$0xff] }
 0x265   :  { %4343 = vmatpush1.bf16.msra.mxu1 %v4342_v28  ;;  %4089 = vmatprep.subr.bf16.mxu0 %v4088_v29  ;;  %v2079_v28 = vld [vmem:[#allocation7 + $0x8a8] sm:$0xff]  ;;  %v2077_v29 = vld [vmem:[#allocation7 + $0x898] sm:$0xff] }
 0x266   :  { %4345 = vmatprep.subr.bf16.mxu1 %v4344_v34  ;;  %v4108_v33 = vpack.c.bf16 %v2079_v28, %v2075_v27  ;;  %v2074_v34 = vld [vmem:[#allocation7 + $0x880] sm:$0xff]  ;;  %v4364_v37 = vpack.c.bf16 %v2081_v45, %v2077_v29  ;;  %v2112_v27 = vld [vmem:[#allocation7 + $0x9b0] sm:$0xff]  ;;  %v2115_v28 = vld [vmem:[#allocation7 + $0x9c8] sm:$0xff] }
 0x267   :  { %v4110_v25 = vpack.c.bf16 %v2078_v35, %v2074_v34  ;;  %v2119_v29 = vld [vmem:[#allocation7 + $0x9e8] sm:$0xff]  ;;  %v2117_v45 = vld [vmem:[#allocation7 + $0x9d8] sm:$0xff]  ;;  %v2114_v35 = vld [vmem:[#allocation7 + $0x9c0] sm:$0xff] }
 0x268   :  { %4091 = vmatpush1.bf16.msra.mxu0 %v4090_v42  ;;  %v2087_v42 = vld [vmem:[#allocation7 + $0x8e8] sm:$0xff]  ;;  %v4128_v34 = vpack.c.bf16 %v2119_v29, %v2115_v28  ;;  %v2152_v28 = vld [vmem:[#allocation7 + $0xaf0] sm:$0xff] }
 0x269   :  { %4347 = vmatpush1.bf16.msra.mxu1 %v4346_v43  ;;  %4093 = vmatprep.subr.bf16.mxu0 %v4092_v32  ;;  %v2085_v43 = vld [vmem:[#allocation7 + $0x8d8] sm:$0xff]  ;;  %v4112_v47 = vpack.c.bf16 %v2087_v42, %v2083_v39  ;;  %v2120_v39 = vld [vmem:[#allocation7 + $0x9f0] sm:$0xff]  ;;  %v2123_v42 = vld [vmem:[#allocation7 + $0xa08] sm:$0xff] }
 0x26a   :  { %4349 = vmatprep.subr.bf16.mxu1 %v4348_v48  ;;  %v2089_v32 = vld [vmem:[#allocation7 + $0x8f8] sm:$0xff]  ;;  %v2082_v48 = vld [vmem:[#allocation7 + $0x8c0] sm:$0xff]  ;;  %v2147_v15 = vld [vmem:[#allocation7 + $0xac8] sm:$0xff] }
 0x26b   :  { %v4368_v52 = vpack.c.bf16 %v2089_v32, %v2085_v43  ;;  %v4114_v11 = vpack.c.bf16 %v2086_v49, %v2082_v48  ;;  %v2127_v43 = vld [vmem:[#allocation7 + $0xa28] sm:$0xff]  ;;  %v2125_v32 = vld [vmem:[#allocation7 + $0xa18] sm:$0xff]  ;;  %v2122_v49 = vld [vmem:[#allocation7 + $0xa00] sm:$0xff] }
 0x26c   :  { %4095 = vmatpush1.bf16.msra.mxu0 %v4094_v54  ;;  %v2095_v54 = vld [vmem:[#allocation7 + $0x928] sm:$0xff]  ;;  %v4132_v48 = vpack.c.bf16 %v2127_v43, %v2123_v42  ;;  %v2160_v42 = vld [vmem:[#allocation7 + $0xb30] sm:$0xff] }
 0x26d   :  { %4351 = vmatpush1.bf16.msra.mxu1 %v4350_v57  ;;  %4097 = vmatprep.subr.bf16.mxu0 %v4096_v58  ;;  %v2093_v57 = vld [vmem:[#allocation7 + $0x918] sm:$0xff]  ;;  %v4116_v60 = vpack.c.bf16 %v2095_v54, %v2091_v26  ;;  %v2128_v26 = vld [vmem:[#allocation7 + $0xa30] sm:$0xff]  ;;  %v2131_v54 = vld [vmem:[#allocation7 + $0xa48] sm:$0xff] }
 0x26e   :  { %4353 = vmatprep.subr.bf16.mxu1 %v4352_v62  ;;  %v2097_v58 = vld [vmem:[#allocation7 + $0x938] sm:$0xff]  ;;  %v2090_v62 = vld [vmem:[#allocation7 + $0x900] sm:$0xff]  ;;  %v2155_v29 = vld [vmem:[#allocation7 + $0xb08] sm:$0xff] }
 0x26f   :  { %v4372_v1 = vpack.c.bf16 %v2097_v58, %v2093_v57  ;;  %v2135_v57 = vld [vmem:[#allocation7 + $0xa68] sm:$0xff]  ;;  %v2133_v58 = vld [vmem:[#allocation7 + $0xa58] sm:$0xff] }
 0x270   :  { %4099 = vmatpush1.bf16.msra.mxu0 %v4098_v3  ;;  %v2103_v3 = vld [vmem:[#allocation7 + $0x968] sm:$0xff] }
 0x271   :  { %4355 = vmatpush1.bf16.msra.mxu1 %v4354_v5  ;;  %4101 = vmatprep.subr.bf16.mxu0 %v4100_v6  ;;  %v2105_v5 = vld [vmem:[#allocation7 + $0x978] sm:$0xff]  ;;  %v4118_v6 = vpack.c.bf16 %v2094_v63, %v2090_v62  ;;  %v4120_v41 = vpack.c.bf16 %v2103_v3, %v2099_v55  ;;  %v4136_v62 = vpack.c.bf16 %v2135_v57, %v2131_v54  ;;  %v2130_v63 = vld [vmem:[#allocation7 + $0xa40] sm:$0xff]  ;;  %v2136_v55 = vld [vmem:[#allocation7 + $0xa70] sm:$0xff] }
 0x272   :  { %4357 = vmatprep.subr.bf16.mxu1 %v4356_v9  ;;  %v2102_v9 = vld [vmem:[#allocation7 + $0x960] sm:$0xff]  ;;  %v4376_v12 = vpack.c.bf16 %v2105_v5, %v2101_v4  ;;  %v2139_v3 = vld [vmem:[#allocation7 + $0xa88] sm:$0xff]  ;;  %v2141_v5 = vld [vmem:[#allocation7 + $0xa98] sm:$0xff] }
 0x273   :  { %2471 = vmatmul.mubr.f32.vlgmr.msra.gmra.mrb[4].mxu0 %v4550_v50  ;;  %v2143_v4 = vld [vmem:[#allocation7 + $0xaa8] sm:$0xff]  ;;  %v2168_v54 = vld [vmem:[#allocation7 + $0xb70] sm:$0xff] }
 0x274   :  { %2755 = vmatmul.mubr.f32.vlgmr.msra.gmra.mrb[4].mxu1 %v4550_v50  ;;  %4103 = vmatpush1.bf16.msra.mxu0 %v4102_v16  ;;  %v2109_v16 = vld [vmem:[#allocation7 + $0x998] sm:$0xff]  ;;  %v2163_v43 = vld [vmem:[#allocation7 + $0xb48] sm:$0xff] }
 0x275   :  { %4359 = vmatpush1.bf16.msra.mxu1 %v4358_v19  ;;  %4105 = vmatprep.subr.bf16.mxu0 %v4104_v17  ;;  %v2113_v50 = vld [vmem:[#allocation7 + $0x9b8] sm:$0xff]  ;;  %v4122_v19 = vpack.c.bf16 %v2102_v9, %v2098_v8  ;;  %v4378_v17 = vpack.c.bf16 %v2104_v13, %v2100_v10  ;;  %v4140_v8 = vpack.c.bf16 %v2143_v4, %v2139_v3  ;;  %v2138_v9 = vld [vmem:[#allocation7 + $0xa80] sm:$0xff]  ;;  %v2171_v57 = vld [vmem:[#allocation7 + $0xb88] sm:$0xff] }
 0x276   :  { %4361 = vmatprep.subr.bf16.mxu1 %v4360_v24  ;;  %v2108_v24 = vld [vmem:[#allocation7 + $0x990] sm:$0xff]  ;;  %v4380_v22 = vpack.c.bf16 %v2113_v50, %v2109_v16  ;;  %v2142_v10 = vld [vmem:[#allocation7 + $0xaa0] sm:$0xff]  ;;  %v2151_v16 = vld [vmem:[#allocation7 + $0xae8] sm:$0xff] }
 0x277   :  { %v2149_v50 = vld [vmem:[#allocation7 + $0xad8] sm:$0xff]  ;;  %v2176_v3 = vld [vmem:[#allocation7 + $0xbb0] sm:$0xff]  ;;  %v2179_v4 = vld [vmem:[#allocation7 + $0xbc8] sm:$0xff] }
 0x278   :  { %4107 = vmatpush1.bf16.msra.mxu0 %v4106_v31  ;;  %v2121_v31 = vld [vmem:[#allocation7 + $0x9f8] sm:$0xff] }
 0x279   :  { %4363 = vmatpush1.bf16.msra.mxu1 %v4362_v44  ;;  %4109 = vmatprep.subr.bf16.mxu0 %v4108_v33  ;;  %v4126_v44 = vpack.c.bf16 %v2110_v23, %v2106_v21  ;;  %v4382_v33 = vpack.c.bf16 %v2112_v27, %v2108_v24  ;;  %v4384_v38 = vpack.c.bf16 %v2121_v31, %v2117_v45  ;;  %v2146_v23 = vld [vmem:[#allocation7 + $0xac0] sm:$0xff]  ;;  %v2159_v45 = vld [vmem:[#allocation7 + $0xb28] sm:$0xff]  ;;  %v2157_v31 = vld [vmem:[#allocation7 + $0xb18] sm:$0xff] }
 0x27a   :  { %4365 = vmatprep.subr.bf16.mxu1 %v4364_v37  ;;  %v2116_v37 = vld [vmem:[#allocation7 + $0x9d0] sm:$0xff]  ;;  %v4144_v21 = vpack.c.bf16 %v2151_v16, %v2147_v15  ;;  %v2150_v24 = vld [vmem:[#allocation7 + $0xae0] sm:$0xff]  ;;  %v2187_v16 = vld [vmem:[#allocation7 + $0xc08] sm:$0xff] }
 0x27b   :  { %v2184_v15 = vld [vmem:[#allocation7 + $0xbf0] sm:$0xff] }
 0x27c   :  { %4111 = vmatpush1.bf16.msra.mxu0 %v4110_v25  ;;  %v2129_v25 = vld [vmem:[#allocation7 + $0xa38] sm:$0xff] }
 0x27d   :  { %4367 = vmatpush1.bf16.msra.mxu1 %v4366_v46  ;;  %4113 = vmatprep.subr.bf16.mxu0 %v4112_v47  ;;  %v4130_v46 = vpack.c.bf16 %v2118_v36, %v2114_v35  ;;  %v4386_v47 = vpack.c.bf16 %v2120_v39, %v2116_v37  ;;  %v4388_v53 = vpack.c.bf16 %v2129_v25, %v2125_v32  ;;  %v2154_v36 = vld [vmem:[#allocation7 + $0xb00] sm:$0xff]  ;;  %v2167_v32 = vld [vmem:[#allocation7 + $0xb68] sm:$0xff]  ;;  %v2165_v25 = vld [vmem:[#allocation7 + $0xb58] sm:$0xff] }
 0x27e   :  { %4369 = vmatprep.subr.bf16.mxu1 %v4368_v52  ;;  %v2124_v52 = vld [vmem:[#allocation7 + $0xa10] sm:$0xff]  ;;  %v4148_v35 = vpack.c.bf16 %v2159_v45, %v2155_v29  ;;  %v2158_v37 = vld [vmem:[#allocation7 + $0xb20] sm:$0xff]  ;;  %v4986_v29 = vld [vmem:[#allocation5] sm:$0xff] }
 0x280   :  { %4115 = vmatpush1.bf16.msra.mxu0 %v4114_v11  ;;  %v2137_v11 = vld [vmem:[#allocation7 + $0xa78] sm:$0xff] }
 0x281   :  { %4371 = vmatpush1.bf16.msra.mxu1 %v4370_v59  ;;  %4117 = vmatprep.subr.bf16.mxu0 %v4116_v60  ;;  %v4134_v59 = vpack.c.bf16 %v2126_v51, %v2122_v49  ;;  %v4390_v60 = vpack.c.bf16 %v2128_v26, %v2124_v52  ;;  %v4392_v2 = vpack.c.bf16 %v2137_v11, %v2133_v58  ;;  %v2162_v51 = vld [vmem:[#allocation7 + $0xb40] sm:$0xff]  ;;  %v2175_v58 = vld [vmem:[#allocation7 + $0xba8] sm:$0xff]  ;;  %v2173_v11 = vld [vmem:[#allocation7 + $0xb98] sm:$0xff] }
 0x282   :  { %4373 = vmatprep.subr.bf16.mxu1 %v4372_v1  ;;  %v2132_v1 = vld [vmem:[#allocation7 + $0xa50] sm:$0xff]  ;;  %v4152_v49 = vpack.c.bf16 %v2167_v32, %v2163_v43  ;;  %v2166_v52 = vld [vmem:[#allocation7 + $0xb60] sm:$0xff]  ;;  %v2199_v43 = vld [vmem:[#allocation7 + $0xc68] sm:$0xff] }
 0x283   :  { %v2197_v32 = vld [vmem:[#allocation7 + $0xc58] sm:$0xff] }
 0x284   :  { %4119 = vmatpush1.bf16.msra.mxu0 %v4118_v6  ;;  %v2145_v6 = vld [vmem:[#allocation7 + $0xab8] sm:$0xff] }
 0x285   :  { %4375 = vmatpush1.bf16.msra.mxu1 %v4374_v7  ;;  %4121 = vmatprep.subr.bf16.mxu0 %v4120_v41  ;;  %v4138_v7 = vpack.c.bf16 %v2134_v0, %v2130_v63  ;;  %v4394_v41 = vpack.c.bf16 %v2136_v55, %v2132_v1  ;;  %v4396_v13 = vpack.c.bf16 %v2145_v6, %v2141_v5  ;;  %v2170_v0 = vld [vmem:[#allocation7 + $0xb80] sm:$0xff]  ;;  %v2183_v5 = vld [vmem:[#allocation7 + $0xbe8] sm:$0xff]  ;;  %v2181_v6 = vld [vmem:[#allocation7 + $0xbd8] sm:$0xff] }
 0x286   :  { %4377 = vmatprep.subr.bf16.mxu1 %v4376_v12  ;;  %v2140_v12 = vld [vmem:[#allocation7 + $0xa90] sm:$0xff]  ;;  %v4156_v63 = vpack.c.bf16 %v2175_v58, %v2171_v57  ;;  %v2174_v1 = vld [vmem:[#allocation7 + $0xba0] sm:$0xff]  ;;  %v2203_v57 = vld [vmem:[#allocation7 + $0xc88] sm:$0xff] }
 0x288   :  { %4123 = vmatpush1.bf16.msra.mxu0 %v4122_v19  ;;  %v2153_v19 = vld [vmem:[#allocation7 + $0xaf8] sm:$0xff] }
 0x289   :  { %4379 = vmatpush1.bf16.msra.mxu1 %v4378_v17  ;;  %4125 = vmatprep.subr.bf16.mxu0 %v4124_v18  ;;  %v4142_v17 = vpack.c.bf16 %v2142_v10, %v2138_v9  ;;  %v4398_v18 = vpack.c.bf16 %v2144_v14, %v2140_v12  ;;  %v4400_v27 = vpack.c.bf16 %v2153_v19, %v2149_v50  ;;  %v2178_v10 = vld [vmem:[#allocation7 + $0xbc0] sm:$0xff]  ;;  %v2191_v50 = vld [vmem:[#allocation7 + $0xc28] sm:$0xff]  ;;  %v2189_v19 = vld [vmem:[#allocation7 + $0xc18] sm:$0xff] }
 0x28a   :  { %4381 = vmatprep.subr.bf16.mxu1 %v4380_v22  ;;  %v2148_v22 = vld [vmem:[#allocation7 + $0xad0] sm:$0xff]  ;;  %v4160_v9 = vpack.c.bf16 %v2183_v5, %v2179_v4  ;;  %v2182_v12 = vld [vmem:[#allocation7 + $0xbe0] sm:$0xff] }
 0x28b   :  { %v2204_v5 = vld [vmem:[#allocation7 + $0xc90] sm:$0xff] }
 0x28c   :  { %4127 = vmatpush1.bf16.msra.mxu0 %v4126_v44  ;;  %v2161_v44 = vld [vmem:[#allocation7 + $0xb38] sm:$0xff] }
 0x28d   :  { %4383 = vmatpush1.bf16.msra.mxu1 %v4382_v33  ;;  %4129 = vmatprep.subr.bf16.mxu0 %v4128_v34  ;;  %v4146_v33 = vpack.c.bf16 %v2150_v24, %v2146_v23  ;;  %v4402_v34 = vpack.c.bf16 %v2152_v28, %v2148_v22  ;;  %v4404_v39 = vpack.c.bf16 %v2161_v44, %v2157_v31  ;;  %v899_v22 = vsub.s32 5, %v4895_v61  ;;  %v2186_v31 = vld [vmem:[#allocation7 + $0xc00] sm:$0xff] }
 0x28e   :  { %4385 = vmatprep.subr.bf16.mxu1 %v4384_v38  ;;  %v2156_v38 = vld [vmem:[#allocation7 + $0xb10] sm:$0xff]  ;;  %v4164_v23 = vpack.c.bf16 %v2191_v50, %v2187_v16  ;;  %v907_v28 = vsub.s32 7, %v4895_v61 }
 0x28f   :  { %v900_v45 = vrot.slane %v4986_v29, %v899_v22  ;;  %v2212_v50 = vld [vmem:[#allocation7 + $0xcd0] sm:$0xff] }
 0x290   :  { %4131 = vmatpush1.bf16.msra.mxu0 %v4130_v46  ;;  %v2169_v46 = vld [vmem:[#allocation7 + $0xb78] sm:$0xff] }
 0x291   :  { %4387 = vmatpush1.bf16.msra.mxu1 %v4386_v47  ;;  %4133 = vmatprep.subr.bf16.mxu0 %v4132_v48  ;;  %v4150_v47 = vpack.c.bf16 %v2158_v37, %v2154_v36  ;;  %v4406_v48 = vpack.c.bf16 %v2160_v42, %v2156_v38  ;;  %v4408_v26 = vpack.c.bf16 %v2169_v46, %v2165_v25  ;;  %v2195_v37 = vld [vmem:[#allocation7 + $0xc48] sm:$0xff]  ;;  %v2201_v25 = vld [vmem:[#allocation7 + $0xc78] sm:$0xff] }
 0x292   :  { %4389 = vmatprep.subr.bf16.mxu1 %v4388_v53  ;;  %v2164_v53 = vld [vmem:[#allocation7 + $0xb50] sm:$0xff]  ;;  %v908_v42 = vrot.slane %v4986_v29, %v907_v28  ;;  %v4168_v58 = vpack.c.bf16 %v2199_v43, %v2195_v37  ;;  %v2222_v28 = vld [vmem:[#allocation7 + $0xd20] sm:$0xff]  ;;  %v2233_v37 = vld [vmem:[#allocation7 + $0xd78] sm:$0xff] }
 0x293   :  { %v2226_v43 = vld [vmem:[#allocation7 + $0xd40] sm:$0xff] }
 0x294   :  { %4135 = vmatpush1.bf16.msra.mxu0 %v4134_v59  ;;  %v2177_v59 = vld [vmem:[#allocation7 + $0xbb8] sm:$0xff] }
 0x295   :  { %4391 = vmatpush1.bf16.msra.mxu1 %v4390_v60  ;;  %4137 = vmatprep.subr.bf16.mxu0 %v4136_v62  ;;  %v4154_v60 = vpack.c.bf16 %v2166_v52, %v2162_v51  ;;  %v4410_v62 = vpack.c.bf16 %v2168_v54, %v2164_v53  ;;  %v4412_v55 = vpack.c.bf16 %v2177_v59, %v2173_v11  ;;  %v2194_v51 = vld [vmem:[#allocation7 + $0xc40] sm:$0xff]  ;;  %v2200_v54 = vld [vmem:[#allocation7 + $0xc70] sm:$0xff]  ;;  %v2207_v59 = vld [vmem:[#allocation7 + $0xca8] sm:$0xff] }
 0x296   :  { %4393 = vmatprep.subr.bf16.mxu1 %v4392_v2  ;;  %v2172_v2 = vld [vmem:[#allocation7 + $0xb90] sm:$0xff]  ;;  %v2198_v52 = vld [vmem:[#allocation7 + $0xc60] sm:$0xff]  ;;  %v4424_v11 = vpack.c.bf16 %v2201_v25, %v2197_v32 }
 0x297   :  { %v2230_v32 = vld [vmem:[#allocation7 + $0xd60] sm:$0xff] }
 0x298   :  { %4139 = vmatpush1.bf16.msra.mxu0 %v4138_v7  ;;  %v2185_v7 = vld [vmem:[#allocation7 + $0xbf8] sm:$0xff] }
 0x299   :  { %4395 = vmatpush1.bf16.msra.mxu1 %v4394_v41  ;;  %4141 = vmatprep.subr.bf16.mxu0 %v4140_v8  ;;  %v4158_v41 = vpack.c.bf16 %v2174_v1, %v2170_v0  ;;  %v4414_v8 = vpack.c.bf16 %v2176_v3, %v2172_v2  ;;  %v4416_v14 = vpack.c.bf16 %v2185_v7, %v2181_v6  ;;  %v2202_v2 = vld [vmem:[#allocation7 + $0xc80] sm:$0xff]  ;;  %v2208_v6 = vld [vmem:[#allocation7 + $0xcb0] sm:$0xff]  ;;  %v2211_v7 = vld [vmem:[#allocation7 + $0xcc8] sm:$0xff] }
 0x29a   :  { %4397 = vmatprep.subr.bf16.mxu1 %v4396_v13  ;;  %v2180_v13 = vld [vmem:[#allocation7 + $0xbd0] sm:$0xff]  ;;  %v4170_v0 = vpack.c.bf16 %v2198_v52, %v2194_v51  ;;  %v4172_v3 = vpack.c.bf16 %v2207_v59, %v2203_v57  ;;  %v2239_v51 = vld [vmem:[#allocation7 + $0xda8] sm:$0xff]  ;;  %v2237_v52 = vld [vmem:[#allocation7 + $0xd98] sm:$0xff] }
 0x29b   :  { %v2234_v57 = vld [vmem:[#allocation7 + $0xd80] sm:$0xff] }
 0x29c   :  { %4143 = vmatpush1.bf16.msra.mxu0 %v4142_v17  ;;  %v2193_v17 = vld [vmem:[#allocation7 + $0xc38] sm:$0xff] }
 0x29d   :  { %4399 = vmatpush1.bf16.msra.mxu1 %v4398_v18  ;;  %4145 = vmatprep.subr.bf16.mxu0 %v4144_v21  ;;  %v4162_v18 = vpack.c.bf16 %v2182_v12, %v2178_v10  ;;  %v4418_v21 = vpack.c.bf16 %v2184_v15, %v2180_v13  ;;  %v4420_v24 = vpack.c.bf16 %v2193_v17, %v2189_v19  ;;  %v2210_v13 = vld [vmem:[#allocation7 + $0xcc0] sm:$0xff]  ;;  %v2216_v19 = vld [vmem:[#allocation7 + $0xcf0] sm:$0xff]  ;;  %v2219_v17 = vld [vmem:[#allocation7 + $0xd08] sm:$0xff] }
 0x29e   :  { %4401 = vmatprep.subr.bf16.mxu1 %v4400_v27  ;;  %v895_v27 = vsub.s32 4, %v4895_v61  ;;  %v4430_v12 = vpack.c.bf16 %v2208_v6, %v2204_v5  ;;  %v4434_v22 = vpack.c.bf16 %v2216_v19, %v2212_v50  ;;  %v2246_v5 = vld [vmem:[#allocation7 + $0xde0] sm:$0xff] }
 0x29f   :  { %v2254_v50 = vld [vmem:[#allocation7 + $0xe20] sm:$0xff] }
 0x2a0   :  { %4147 = vmatpush1.bf16.msra.mxu0 %v4146_v33  ;;  %v896_v44 = vrot.slane %v4986_v29, %v895_v27  ;;  %v2190_v33 = vld [vmem:[#allocation7 + $0xc20] sm:$0xff] }
 0x2a1   :  { %4403 = vmatpush1.bf16.msra.mxu1 %v4402_v34  ;;  %4149 = vmatprep.subr.bf16.mxu0 %v4148_v35  ;;  %v2188_v34 = vld [vmem:[#allocation7 + $0xc10] sm:$0xff]  ;;  %v2218_v27 = vld [vmem:[#allocation7 + $0xd00] sm:$0xff] }
 0x2a2   :  { %4405 = vmatprep.subr.bf16.mxu1 %v4404_v39  ;;  %v2192_v35 = vld [vmem:[#allocation7 + $0xc30] sm:$0xff] }
 0x2a4   :  { %4151 = vmatpush1.bf16.msra.mxu0 %v4150_v47 }
 0x2a5   :  { %4407 = vmatpush1.bf16.msra.mxu1 %v4406_v48  ;;  %4153 = vmatprep.subr.bf16.mxu0 %v4152_v49  ;;  %v4166_v48 = vpack.c.bf16 %v2190_v33, %v2186_v31  ;;  %v4422_v49 = vpack.c.bf16 %v2192_v35, %v2188_v34  ;;  %v2224_v33 = vld [vmem:[#allocation7 + $0xd30] sm:$0xff]  ;;  %v2227_v34 = vld [vmem:[#allocation7 + $0xd48] sm:$0xff] }
 0x2a6   :  { %4409 = vmatprep.subr.bf16.mxu1 %v4408_v26  ;;  %v2196_v26 = vld [vmem:[#allocation7 + $0xc50] sm:$0xff]  ;;  %v2231_v35 = vld [vmem:[#allocation7 + $0xd68] sm:$0xff] }
 0x2a7   :  { %v4426_v1 = vpack.c.bf16 %v2200_v54, %v2196_v26  ;;  %v4184_v25 = vpack.c.bf16 %v2231_v35, %v2227_v34  ;;  %v4186_v26 = vpack.c.bf16 %v2230_v32, %v2226_v43  ;;  %v2260_v35 = vld [vmem:[#allocation7 + $0xe50] sm:$0xff]  ;;  %v2273_v43 = vld [vmem:[#allocation7 + $0xeb8] sm:$0xff] }
 0x2a8   :  { %4155 = vmatpush1.bf16.msra.mxu0 %v4154_v60  ;;  %v2205_v60 = vld [vmem:[#allocation7 + $0xc98] sm:$0xff] }
 0x2a9   :  { %4411 = vmatpush1.bf16.msra.mxu1 %v4410_v62  ;;  %4157 = vmatprep.subr.bf16.mxu0 %v4156_v63  ;;  %v2209_v62 = vld [vmem:[#allocation7 + $0xcb8] sm:$0xff] }
 0x2aa   :  { %4413 = vmatprep.subr.bf16.mxu1 %v4412_v55  ;;  %v2206_v55 = vld [vmem:[#allocation7 + $0xca0] sm:$0xff]  ;;  %v4428_v4 = vpack.c.bf16 %v2209_v62, %v2205_v60  ;;  %v2236_v60 = vld [vmem:[#allocation7 + $0xd90] sm:$0xff] }
 0x2ab   :  { %v4174_v10 = vpack.c.bf16 %v2206_v55, %v2202_v2  ;;  %v2240_v62 = vld [vmem:[#allocation7 + $0xdb0] sm:$0xff]  ;;  %v2249_v2 = vld [vmem:[#allocation7 + $0xdf8] sm:$0xff] }
 0x2ac   :  { %4159 = vmatpush1.bf16.msra.mxu0 %v4158_v41  ;;  %v2215_v41 = vld [vmem:[#allocation7 + $0xce8] sm:$0xff] }
 0x2ad   :  { %4415 = vmatpush1.bf16.msra.mxu1 %v4414_v8  ;;  %4161 = vmatprep.subr.bf16.mxu0 %v4160_v9  ;;  %v2213_v8 = vld [vmem:[#allocation7 + $0xcd8] sm:$0xff]  ;;  %v4176_v15 = vpack.c.bf16 %v2215_v41, %v2211_v7  ;;  %v2244_v41 = vld [vmem:[#allocation7 + $0xdd0] sm:$0xff] }
 0x2ae   :  { %4417 = vmatprep.subr.bf16.mxu1 %v4416_v14  ;;  %v2217_v9 = vld [vmem:[#allocation7 + $0xcf8] sm:$0xff]  ;;  %v2214_v14 = vld [vmem:[#allocation7 + $0xce0] sm:$0xff] }
 0x2af   :  { %v4432_v16 = vpack.c.bf16 %v2217_v9, %v2213_v8  ;;  %v2248_v8 = vld [vmem:[#allocation7 + $0xdf0] sm:$0xff]  ;;  %v2251_v9 = vld [vmem:[#allocation7 + $0xe08] sm:$0xff] }
 0x2b0   :  { %4163 = vmatpush1.bf16.msra.mxu0 %v4162_v18  ;;  %v2223_v18 = vld [vmem:[#allocation7 + $0xd28] sm:$0xff] }
 0x2b1   :  { %4419 = vmatpush1.bf16.msra.mxu1 %v4418_v21  ;;  %4165 = vmatprep.subr.bf16.mxu0 %v4164_v23  ;;  %v2221_v21 = vld [vmem:[#allocation7 + $0xd18] sm:$0xff] }
 0x2b2   :  { %4421 = vmatprep.subr.bf16.mxu1 %v4420_v24  ;;  %v2225_v23 = vld [vmem:[#allocation7 + $0xd38] sm:$0xff]  ;;  %v4178_v24 = vpack.c.bf16 %v2214_v14, %v2210_v13 }
 0x2b3   :  { %v4436_v31 = vpack.c.bf16 %v2225_v23, %v2221_v21  ;;  %v2257_v13 = vld [vmem:[#allocation7 + $0xe38] sm:$0xff]  ;;  %v2256_v21 = vld [vmem:[#allocation7 + $0xe30] sm:$0xff]  ;;  %v2259_v23 = vld [vmem:[#allocation7 + $0xe48] sm:$0xff] }
 0x2c6   :  { %v1584_v36 = vpop.f32.mrb[2].mxu0 }
 0x2c7   :  { %v4990_v38 = vpop.f32.mrb[2].mxu1  ;;  %v1586_v39 = vpop.f32.mrb[3].mxu0  ;;  %v4552_v53 = vadd.f32 %v1584_v36, %v896_v44  ;;  %v2220_v44 = vld [vmem:[#allocation7 + $0xd10] sm:$0xff]  ;;  %v2229_v36 = vld [vmem:[#allocation7 + $0xd58] sm:$0xff] }
 0x2c8   :  { %v4553_v46 = vadd.f32 %v1586_v39, %v900_v45  ;;  %v1799_v47 = vpop.f32.mrb[3].mxu1  ;;  %v4180_v45 = vpack.c.bf16 %v2223_v18, %v2219_v17  ;;  %v4182_v39 = vpack.c.bf16 %v2222_v28, %v2218_v27  ;;  %v2252_v18 = vld [vmem:[#allocation7 + $0xe10] sm:$0xff]  ;;  %v2265_v27 = vld [vmem:[#allocation7 + $0xe78] sm:$0xff] }
 0x2c9   :  { %v4555_v63 = vadd.f32 %v1799_v47, %v908_v42  ;;  %v4438_v42 = vpack.c.bf16 %v2224_v33, %v2220_v44  ;;  %v2228_v47 = vld [vmem:[#allocation7 + $0xd50] sm:$0xff]  ;;  %v2262_v44 = vld [vmem:[#allocation7 + $0xe60] sm:$0xff] }
 0x2ca   :  { %2541 = vmatprep.mubr.f32.mxu0 %v4553_v46  ;;  %2825 = vmatprep.mubr.f32.mxu1 %v4553_v46  ;;  %v4440_v46 = vpack.c.bf16 %v2233_v37, %v2229_v36  ;;  %v2264_v36 = vld [vmem:[#allocation7 + $0xe70] sm:$0xff]  ;;  %v2267_v37 = vld [vmem:[#allocation7 + $0xe88] sm:$0xff] }
 0x2cb   :  { %2542 = vmatmul.mubr.f32.vlgmr.msra.gmra.mrb[4].mxu0 %v4552_v53  ;;  %2826 = vmatmul.mubr.f32.vlgmr.msra.gmra.mrb[4].mxu1 %v4552_v53  ;;  %v2241_v53 = vld [vmem:[#allocation7 + $0xdb8] sm:$0xff] }
 0x2cc   :  { %4167 = vmatpush1.bf16.msra.mxu0 %v4166_v48  ;;  %4423 = vmatpush1.bf16.msra.mxu1 %v4422_v49  ;;  %v2232_v48 = vld [vmem:[#allocation7 + $0xd70] sm:$0xff]  ;;  %v2235_v49 = vld [vmem:[#allocation7 + $0xd88] sm:$0xff]  ;;  %v4444_v59 = vpack.c.bf16 %v2241_v53, %v2237_v52 }
 0x2cd   :  { %2612 = vmatprep.mubr.f32.mxu0 %v4555_v63  ;;  %2896 = vmatprep.mubr.f32.mxu1 %v4555_v63  ;;  %v4442_v54 = vpack.c.bf16 %v2232_v48, %v2228_v47  ;;  %v2243_v63 = vld [vmem:[#allocation7 + $0xdc8] sm:$0xff]  ;;  %v2270_v47 = vld [vmem:[#allocation7 + $0xea0] sm:$0xff]  ;;  %v2272_v52 = vld [vmem:[#allocation7 + $0xeb0] sm:$0xff] }
 0x2ce   :  { %4169 = vmatprep.subr.bf16.mxu0 %v4168_v58  ;;  %4425 = vmatprep.subr.bf16.mxu1 %v4424_v11  ;;  %v2238_v58 = vld [vmem:[#allocation7 + $0xda0] sm:$0xff]  ;;  %v4188_v11 = vpack.c.bf16 %v2239_v51, %v2235_v49  ;;  %v2268_v51 = vld [vmem:[#allocation7 + $0xe90] sm:$0xff]  ;;  %v2275_v53 = vld [vmem:[#allocation7 + $0xec8] sm:$0xff] }
 0x2cf   :  { %v4190_v55 = vpack.c.bf16 %v2238_v58, %v2234_v57  ;;  %v2281_v57 = vld [vmem:[#allocation7 + $0xef8] sm:$0xff] }
 0x2d0   :  { %4171 = vmatpush1.bf16.msra.mxu0 %v4170_v0  ;;  %4427 = vmatpush1.bf16.msra.mxu1 %v4426_v1  ;;  %v2247_v0 = vld [vmem:[#allocation7 + $0xde8] sm:$0xff]  ;;  %v2245_v1 = vld [vmem:[#allocation7 + $0xdd8] sm:$0xff] }
 0x2d1   :  { %4173 = vmatprep.subr.bf16.mxu0 %v4172_v3  ;;  %4429 = vmatprep.subr.bf16.mxu1 %v4428_v4  ;;  %v4446_v3 = vpack.c.bf16 %v2240_v62, %v2236_v60  ;;  %v2242_v4 = vld [vmem:[#allocation7 + $0xdc0] sm:$0xff]  ;;  %v4192_v6 = vpack.c.bf16 %v2247_v0, %v2243_v63  ;;  %v4448_v7 = vpack.c.bf16 %v2249_v2, %v2245_v1  ;;  %v2276_v0 = vld [vmem:[#allocation7 + $0xed0] sm:$0xff]  ;;  %v2283_v2 = vld [vmem:[#allocation7 + $0xf08] sm:$0xff] }
 0x2d2   :  { %v4194_v14 = vpack.c.bf16 %v2246_v5, %v2242_v4  ;;  %v2278_v60 = vld [vmem:[#allocation7 + $0xee0] sm:$0xff]  ;;  %v2280_v1 = vld [vmem:[#allocation7 + $0xef0] sm:$0xff]  ;;  %v2289_v4 = vld [vmem:[#allocation7 + $0xf38] sm:$0xff] }
 0x2d4   :  { %4175 = vmatpush1.bf16.msra.mxu0 %v4174_v10  ;;  %4431 = vmatpush1.bf16.msra.mxu1 %v4430_v12  ;;  %v2255_v10 = vld [vmem:[#allocation7 + $0xe28] sm:$0xff]  ;;  %v2253_v12 = vld [vmem:[#allocation7 + $0xe18] sm:$0xff] }
 0x2d5   :  { %4177 = vmatprep.subr.bf16.mxu0 %v4176_v15  ;;  %4433 = vmatprep.subr.bf16.mxu1 %v4432_v16  ;;  %v4450_v15 = vpack.c.bf16 %v2248_v8, %v2244_v41  ;;  %v2250_v16 = vld [vmem:[#allocation7 + $0xe00] sm:$0xff]  ;;  %v4196_v19 = vpack.c.bf16 %v2255_v10, %v2251_v9  ;;  %v4452_v17 = vpack.c.bf16 %v2257_v13, %v2253_v12  ;;  %v2284_v10 = vld [vmem:[#allocation7 + $0xf10] sm:$0xff]  ;;  %v2291_v13 = vld [vmem:[#allocation7 + $0xf48] sm:$0xff] }
 0x2d6   :  { %v4198_v28 = vpack.c.bf16 %v2254_v50, %v2250_v16  ;;  %v2286_v41 = vld [vmem:[#allocation7 + $0xf20] sm:$0xff]  ;;  %v2288_v12 = vld [vmem:[#allocation7 + $0xf30] sm:$0xff]  ;;  %v2297_v16 = vld [vmem:[#allocation7 + $0xf78] sm:$0xff] }
 0x2d8   :  { %4179 = vmatpush1.bf16.msra.mxu0 %v4178_v24  ;;  %4435 = vmatpush1.bf16.msra.mxu1 %v4434_v22  ;;  %v2263_v24 = vld [vmem:[#allocation7 + $0xe68] sm:$0xff]  ;;  %v2261_v22 = vld [vmem:[#allocation7 + $0xe58] sm:$0xff] }
 0x2d9   :  { %4181 = vmatprep.subr.bf16.mxu0 %v4180_v45  ;;  %4437 = vmatprep.subr.bf16.mxu1 %v4436_v31  ;;  %v4454_v45 = vpack.c.bf16 %v2256_v21, %v2252_v18  ;;  %v2258_v31 = vld [vmem:[#allocation7 + $0xe40] sm:$0xff]  ;;  %v4200_v33 = vpack.c.bf16 %v2263_v24, %v2259_v23  ;;  %v4456_v34 = vpack.c.bf16 %v2265_v27, %v2261_v22  ;;  %v2292_v24 = vld [vmem:[#allocation7 + $0xf50] sm:$0xff]  ;;  %v2299_v27 = vld [vmem:[#allocation7 + $0xf88] sm:$0xff] }
 0x2da   :  { %v4202_v32 = vpack.c.bf16 %v2262_v44, %v2258_v31  ;;  %v2294_v18 = vld [vmem:[#allocation7 + $0xf60] sm:$0xff]  ;;  %v2296_v22 = vld [vmem:[#allocation7 + $0xf70] sm:$0xff]  ;;  %v2305_v31 = vld [vmem:[#allocation7 + $0xfb8] sm:$0xff] }
 0x2dc   :  { %4183 = vmatpush1.bf16.msra.mxu0 %v4182_v39  ;;  %4439 = vmatpush1.bf16.msra.mxu1 %v4438_v42  ;;  %v2271_v39 = vld [vmem:[#allocation7 + $0xea8] sm:$0xff]  ;;  %v2269_v42 = vld [vmem:[#allocation7 + $0xe98] sm:$0xff] }
 0x2dd   :  { %4185 = vmatprep.subr.bf16.mxu0 %v4184_v25  ;;  %4441 = vmatprep.subr.bf16.mxu1 %v4440_v46  ;;  %v4458_v25 = vpack.c.bf16 %v2264_v36, %v2260_v35  ;;  %v2266_v46 = vld [vmem:[#allocation7 + $0xe80] sm:$0xff]  ;;  %v4204_v48 = vpack.c.bf16 %v2271_v39, %v2267_v37  ;;  %v4460_v49 = vpack.c.bf16 %v2273_v43, %v2269_v42  ;;  %v2300_v39 = vld [vmem:[#allocation7 + $0xf90] sm:$0xff]  ;;  %v2307_v43 = vld [vmem:[#allocation7 + $0xfc8] sm:$0xff] }
 0x2de   :  { %v4206_v58 = vpack.c.bf16 %v2270_v47, %v2266_v46  ;;  %v2302_v35 = vld [vmem:[#allocation7 + $0xfa0] sm:$0xff]  ;;  %v2304_v42 = vld [vmem:[#allocation7 + $0xfb0] sm:$0xff]  ;;  %v2313_v46 = vld [vmem:[#allocation7 + $0xff8] sm:$0xff] }
 0x2e0   :  { %4187 = vmatpush1.bf16.msra.mxu0 %v4186_v26  ;;  %4443 = vmatpush1.bf16.msra.mxu1 %v4442_v54  ;;  %v2279_v26 = vld [vmem:[#allocation7 + $0xee8] sm:$0xff]  ;;  %v2277_v54 = vld [vmem:[#allocation7 + $0xed8] sm:$0xff] }
 0x2e1   :  { %4189 = vmatprep.subr.bf16.mxu0 %v4188_v11  ;;  %4445 = vmatprep.subr.bf16.mxu1 %v4444_v59  ;;  %v4462_v11 = vpack.c.bf16 %v2272_v52, %v2268_v51  ;;  %v2274_v59 = vld [vmem:[#allocation7 + $0xec0] sm:$0xff]  ;;  %v4208_v62 = vpack.c.bf16 %v2279_v26, %v2275_v53  ;;  %v4464_v63 = vpack.c.bf16 %v2281_v57, %v2277_v54  ;;  %v903_v52 = vsub.s32 6, %v4895_v61  ;;  %v2308_v54 = vld [vmem:[#allocation7 + $0xfd0] sm:$0xff] }
 0x2e2   :  { %v4210_v5 = vpack.c.bf16 %v2278_v60, %v2274_v59  ;;  %v2310_v51 = vld [vmem:[#allocation7 + $0xfe0] sm:$0xff]  ;;  %v2312_v57 = vld [vmem:[#allocation7 + $0xff0] sm:$0xff] }
 0x2e3   :  { %v2951_v59 = vld [vmem:[#allocation10 + $0x180] sm:$0xff]  ;;  %v2952_v60 = vld [vmem:[#allocation10 + $0x188] sm:$0xff] }
 0x2e4   :  { %4191 = vmatpush1.bf16.msra.mxu0 %v4190_v55  ;;  %4447 = vmatpush1.bf16.msra.mxu1 %v4446_v3  ;;  %v2287_v55 = vld [vmem:[#allocation7 + $0xf28] sm:$0xff]  ;;  %v2285_v3 = vld [vmem:[#allocation7 + $0xf18] sm:$0xff] }
 0x2e5   :  { %4193 = vmatprep.subr.bf16.mxu0 %v4192_v6  ;;  %4449 = vmatprep.subr.bf16.mxu1 %v4448_v7  ;;  %v4466_v6 = vpack.c.bf16 %v2280_v1, %v2276_v0  ;;  %v2282_v7 = vld [vmem:[#allocation7 + $0xf00] sm:$0xff]  ;;  %v4212_v8 = vpack.c.bf16 %v2287_v55, %v2283_v2  ;;  %v4468_v9 = vpack.c.bf16 %v2289_v4, %v2285_v3  ;;  %v2904_v1 = vld [vmem:[#allocation10 + $0x8] sm:$0xff] }
 0x2e6   :  { %v4214_v50 = vpack.c.bf16 %v2286_v41, %v2282_v7  ;;  %v2903_v0 = vld [vmem:[#allocation10] sm:$0xff]  ;;  %v904_v2 = vrot.slane %v4986_v29, %v903_v52  ;;  %v4516_v3 = vpack.c.bf16 %v2952_v60, %v2951_v59  ;;  %v2922_v7 = vld [vmem:[#allocation10 + $0x98] sm:$0xff]  ;;  %v2953_v41 = vld [vmem:[#allocation10 + $0x190] sm:$0xff] }
 0x2e7   :  { %v2935_v4 = vld [vmem:[#allocation10 + $0x100] sm:$0xff]  ;;  %v2944_v59 = vld [vmem:[#allocation10 + $0x148] sm:$0xff]  ;;  %v2929_v60 = vld [vmem:[#allocation10 + $0xd0] sm:$0xff] }
 0x2e8   :  { %4195 = vmatpush1.bf16.msra.mxu0 %v4194_v14  ;;  %4451 = vmatpush1.bf16.msra.mxu1 %v4450_v15  ;;  %v2295_v14 = vld [vmem:[#allocation7 + $0xf68] sm:$0xff]  ;;  %v2293_v15 = vld [vmem:[#allocation7 + $0xf58] sm:$0xff] }
 0x2e9   :  { %4197 = vmatprep.subr.bf16.mxu0 %v4196_v19  ;;  %4453 = vmatprep.subr.bf16.mxu1 %v4452_v17  ;;  %v4470_v19 = vpack.c.bf16 %v2288_v12, %v2284_v10  ;;  %v2290_v17 = vld [vmem:[#allocation7 + $0xf40] sm:$0xff]  ;;  %v4216_v21 = vpack.c.bf16 %v2295_v14, %v2291_v13  ;;  %v4472_v23 = vpack.c.bf16 %v2297_v16, %v2293_v15  ;;  %v2905_v12 = vld [vmem:[#allocation10 + $0x10] sm:$0xff] }
 0x2ea   :  { %v4218_v44 = vpack.c.bf16 %v2294_v18, %v2290_v17  ;;  %v2906_v13 = vld [vmem:[#allocation10 + $0x18] sm:$0xff]  ;;  %v4554_v14 = vadd.f32 %v4990_v38, %v904_v2  ;;  %v2937_v16 = vld [vmem:[#allocation10 + $0x110] sm:$0xff]  ;;  %v2924_v17 = vld [vmem:[#allocation10 + $0xa8] sm:$0xff] }
 0x2eb   :  { %v2955_v18 = vld [vmem:[#allocation10 + $0x1a0] sm:$0xff] }
 0x2ec   :  { %4199 = vmatpush1.bf16.msra.mxu0 %v4198_v28  ;;  %4455 = vmatpush1.bf16.msra.mxu1 %v4454_v45  ;;  %v2303_v28 = vld [vmem:[#allocation7 + $0xfa8] sm:$0xff]  ;;  %v2301_v45 = vld [vmem:[#allocation7 + $0xf98] sm:$0xff] }
 0x2ed   :  { %4201 = vmatprep.subr.bf16.mxu0 %v4200_v33  ;;  %4457 = vmatprep.subr.bf16.mxu1 %v4456_v34  ;;  %v4474_v33 = vpack.c.bf16 %v2296_v22, %v2292_v24  ;;  %v2298_v34 = vld [vmem:[#allocation7 + $0xf80] sm:$0xff]  ;;  %v4220_v36 = vpack.c.bf16 %v2303_v28, %v2299_v27  ;;  %v4476_v37 = vpack.c.bf16 %v2305_v31, %v2301_v45  ;;  %v2908_v27 = vld [vmem:[#allocation10 + $0x28] sm:$0xff] }
 0x2ee   :  { %v4222_v47 = vpack.c.bf16 %v2302_v35, %v2298_v34  ;;  %v2907_v22 = vld [vmem:[#allocation10 + $0x20] sm:$0xff]  ;;  %v2940_v31 = vld [vmem:[#allocation10 + $0x128] sm:$0xff]  ;;  %v2957_v34 = vld [vmem:[#allocation10 + $0x1b0] sm:$0xff] }
 0x2ef   :  { %v2939_v45 = vld [vmem:[#allocation10 + $0x120] sm:$0xff]  ;;  %v2958_v35 = vld [vmem:[#allocation10 + $0x1b8] sm:$0xff] }
 0x2f0   :  { %4203 = vmatpush1.bf16.msra.mxu0 %v4202_v32  ;;  %4459 = vmatpush1.bf16.msra.mxu1 %v4458_v25  ;;  %v2311_v32 = vld [vmem:[#allocation7 + $0xfe8] sm:$0xff]  ;;  %v2309_v25 = vld [vmem:[#allocation7 + $0xfd8] sm:$0xff] }
 0x2f1   :  { %4205 = vmatprep.subr.bf16.mxu0 %v4204_v48  ;;  %4461 = vmatprep.subr.bf16.mxu1 %v4460_v49  ;;  %v4478_v48 = vpack.c.bf16 %v2304_v42, %v2300_v39  ;;  %v2306_v49 = vld [vmem:[#allocation7 + $0xfc0] sm:$0xff]  ;;  %v4224_v53 = vpack.c.bf16 %v2311_v32, %v2307_v43  ;;  %v4480_v26 = vpack.c.bf16 %v2313_v46, %v2309_v25  ;;  %v2909_v39 = vld [vmem:[#allocation10 + $0x30] sm:$0xff] }
 0x2f2   :  { %v2910_v42 = vld [vmem:[#allocation10 + $0x38] sm:$0xff]  ;;  %v4528_v32 = vpack.c.bf16 %v2958_v35, %v2957_v34  ;;  %v2941_v25 = vld [vmem:[#allocation10 + $0x130] sm:$0xff] }
 0x2f3   :  { %v2942_v46 = vld [vmem:[#allocation10 + $0x138] sm:$0xff]  ;;  %v4498_v52 = vpack.c.bf16 %v2910_v42, %v2909_v39 }
 0x2f4   :  { %4207 = vmatpush1.bf16.msra.mxu0 %v4206_v58  ;;  %4463 = vmatpush1.bf16.msra.mxu1 %v4462_v11  ;;  %v2919_v58 = vld [vmem:[#allocation10 + $0x80] sm:$0xff]  ;;  %v2920_v11 = vld [vmem:[#allocation10 + $0x88] sm:$0xff]  ;;  %v104_v35 = vld [vmem:[#allocation8] sm:$0xf] }
 0x2f5   :  { %4209 = vmatprep.subr.bf16.mxu0 %v4208_v62  ;;  %4465 = vmatprep.subr.bf16.mxu1 %v4464_v63  ;;  %v4226_v62 = vpack.c.bf16 %v2310_v51, %v2306_v49  ;;  %v4482_v63 = vpack.c.bf16 %v2312_v57, %v2308_v54  ;;  %v4484_v55 = vpack.c.bf16 %v2920_v11, %v2919_v58  ;;  %v2959_v49 = vld [vmem:[#allocation10 + $0x1c0] sm:$0xff]  ;;  %v2960_v51 = vld [vmem:[#allocation10 + $0x1c8] sm:$0xff] }
 0x2f6   :  { %v2912_v54 = vld [vmem:[#allocation10 + $0x48] sm:$0xff]  ;;  %v4532_v58 = vpack.c.bf16 %v2960_v51, %v2959_v49  ;;  %v2943_v11 = vld [vmem:[#allocation10 + $0x140] sm:$0xff]  ;;  %v2318_v39 = vrot.slane %v104_v35, %v879_v30  ;;  %v2326_v42 = vrot.slane %v104_v35, %v887_v56 }
 0x2f7   :  { %v4534_v2 = vpack.c.bf16 %v2944_v59, %v2943_v11 }
 0x2f8   :  { %4211 = vmatpush1.bf16.msra.mxu0 %v4210_v5  ;;  %4467 = vmatpush1.bf16.msra.mxu1 %v4466_v6  ;;  %v2936_v5 = vld [vmem:[#allocation10 + $0x108] sm:$0xff]  ;;  %v2921_v6 = vld [vmem:[#allocation10 + $0x90] sm:$0xff] }
 0x2f9   :  { %4213 = vmatprep.subr.bf16.mxu0 %v4212_v8  ;;  %4469 = vmatprep.subr.bf16.mxu1 %v4468_v9  ;;  %v2954_v8 = vld [vmem:[#allocation10 + $0x198] sm:$0xff]  ;;  %v4486_v9 = vpack.c.bf16 %v2904_v1, %v2903_v0  ;;  %v4518_v10 = vpack.c.bf16 %v2936_v5, %v2935_v4  ;;  %v4488_v29 = vpack.c.bf16 %v2922_v7, %v2921_v6  ;;  %v2945_v6 = vld [vmem:[#allocation10 + $0x150] sm:$0xff] }
 0x2fa   :  { %v4520_v15 = vpack.c.bf16 %v2954_v8, %v2953_v41  ;;  %v2962_v0 = vld [vmem:[#allocation10 + $0x1d8] sm:$0xff]  ;;  %v2931_v41 = vld [vmem:[#allocation10 + $0xe0] sm:$0xff]  ;;  %v2932_v8 = vld [vmem:[#allocation10 + $0xe8] sm:$0xff] }
 0x2fb   :  { %v2946_v7 = vld [vmem:[#allocation10 + $0x158] sm:$0xff] }
 0x2fc   :  { %4215 = vmatpush1.bf16.msra.mxu0 %v4214_v50  ;;  %4471 = vmatpush1.bf16.msra.mxu1 %v4470_v19  ;;  %v2938_v50 = vld [vmem:[#allocation10 + $0x118] sm:$0xff]  ;;  %v2923_v19 = vld [vmem:[#allocation10 + $0xa0] sm:$0xff] }
 0x2fd   :  { %4217 = vmatprep.subr.bf16.mxu0 %v4216_v21  ;;  %4473 = vmatprep.subr.bf16.mxu1 %v4472_v23  ;;  %v2956_v21 = vld [vmem:[#allocation10 + $0x1a8] sm:$0xff]  ;;  %v4490_v23 = vpack.c.bf16 %v2906_v13, %v2905_v12  ;;  %v4522_v24 = vpack.c.bf16 %v2938_v50, %v2937_v16  ;;  %v4492_v38 = vpack.c.bf16 %v2924_v17, %v2923_v19  ;;  %v2947_v50 = vld [vmem:[#allocation10 + $0x160] sm:$0xff] }
 0x2fe   :  { %v4524_v28 = vpack.c.bf16 %v2956_v21, %v2955_v18  ;;  %v4538_v13 = vpack.c.bf16 %v2946_v7, %v2945_v6  ;;  %v2916_v16 = vld [vmem:[#allocation10 + $0x68] sm:$0xff]  ;;  %v2933_v21 = vld [vmem:[#allocation10 + $0xf0] sm:$0xff] }
 0x2ff   :  { %v2948_v19 = vld [vmem:[#allocation10 + $0x168] sm:$0xff] }
 0x300   :  { %4219 = vmatpush1.bf16.msra.mxu0 %v4218_v44  ;;  %4475 = vmatpush1.bf16.msra.mxu1 %v4474_v33  ;;  %v2925_v44 = vld [vmem:[#allocation10 + $0xb0] sm:$0xff]  ;;  %v2926_v33 = vld [vmem:[#allocation10 + $0xb8] sm:$0xff]  ;;  %v4542_v18 = vpack.c.bf16 %v2948_v19, %v2947_v50 }
 0x301   :  { %4221 = vmatprep.subr.bf16.mxu0 %v4220_v36  ;;  %4477 = vmatprep.subr.bf16.mxu1 %v4476_v37  ;;  %v4494_v36 = vpack.c.bf16 %v2908_v27, %v2907_v22  ;;  %v4526_v37 = vpack.c.bf16 %v2940_v31, %v2939_v45  ;;  %v4496_v43 = vpack.c.bf16 %v2926_v33, %v2925_v44  ;;  %v2966_v27 = vld [vmem:[#allocation10 + $0x1f8] sm:$0xff]  ;;  %v2949_v44 = vld [vmem:[#allocation10 + $0x170] sm:$0xff] }
 0x302   :  { %v2950_v33 = vld [vmem:[#allocation10 + $0x178] sm:$0xff] }
 0x303   :  { %v4546_v34 = vpack.c.bf16 %v2950_v33, %v2949_v44 }
 0x304   :  { %4223 = vmatpush1.bf16.msra.mxu0 %v4222_v47  ;;  %4479 = vmatpush1.bf16.msra.mxu1 %v4478_v48  ;;  %v2927_v47 = vld [vmem:[#allocation10 + $0xc0] sm:$0xff]  ;;  %v2928_v48 = vld [vmem:[#allocation10 + $0xc8] sm:$0xff] }
 0x305   :  { %4225 = vmatprep.subr.bf16.mxu0 %v4224_v53  ;;  %4481 = vmatprep.subr.bf16.mxu1 %v4480_v26  ;;  %v4530_v53 = vpack.c.bf16 %v2942_v46, %v2941_v25  ;;  %v2911_v26 = vld [vmem:[#allocation10 + $0x40] sm:$0xff]  ;;  %v4500_v57 = vpack.c.bf16 %v2928_v48, %v2927_v47 }
 0x306   :  { %v4502_v1 = vpack.c.bf16 %v2912_v54, %v2911_v26 }
 0x308   :  { %4227 = vmatpush1.bf16.msra.mxu0 %v4226_v62  ;;  %4483 = vmatpush1.bf16.msra.mxu1 %v4482_v63  ;;  %v2930_v62 = vld [vmem:[#allocation10 + $0xd8] sm:$0xff]  ;;  %v2961_v63 = vld [vmem:[#allocation10 + $0x1d0] sm:$0xff] }
 0x309   :  { %4485 = vmatprep.subr.bf16.mxu0 %v4484_v55  ;;  %4517 = vmatprep.subr.bf16.mxu1 %v4516_v3  ;;  %v2913_v55 = vld [vmem:[#allocation10 + $0x50] sm:$0xff]  ;;  %v2914_v3 = vld [vmem:[#allocation10 + $0x58] sm:$0xff]  ;;  %v4504_v4 = vpack.c.bf16 %v2930_v62, %v2929_v60  ;;  %v4536_v5 = vpack.c.bf16 %v2962_v0, %v2961_v63 }
 0x30a   :  { %v4506_v12 = vpack.c.bf16 %v2914_v3, %v2913_v55 }
 0x30b   :  { %2613 = vmatmul.mubr.f32.vlgmr.msra.gmra.mrb[4].mxu0 %v4554_v14  ;;  %2897 = vmatmul.mubr.f32.vlgmr.msra.gmra.mrb[4].mxu1 %v4554_v14  ;;  %v2915_v14 = vld [vmem:[#allocation10 + $0x60] sm:$0xff] }
 0x30c   :  { %4487 = vmatpush3.bf16.msra.mxu0 %v4486_v9  ;;  %4519 = vmatpush3.bf16.msra.mxu1 %v4518_v10  ;;  %v2963_v9 = vld [vmem:[#allocation10 + $0x1e0] sm:$0xff]  ;;  %v2964_v10 = vld [vmem:[#allocation10 + $0x1e8] sm:$0xff]  ;;  %v4510_v17 = vpack.c.bf16 %v2916_v16, %v2915_v14 }
 0x30d   :  { %4489 = vmatprep.subr.bf16.mxu0 %v4488_v29  ;;  %4521 = vmatprep.subr.bf16.mxu1 %v4520_v15  ;;  %v4508_v29 = vpack.c.bf16 %v2932_v8, %v2931_v41  ;;  %v4540_v15 = vpack.c.bf16 %v2964_v10, %v2963_v9 }
 0x310   :  { %4491 = vmatpush3.bf16.msra.mxu0 %v4490_v23  ;;  %4523 = vmatpush3.bf16.msra.mxu1 %v4522_v24  ;;  %v2934_v23 = vld [vmem:[#allocation10 + $0xf8] sm:$0xff]  ;;  %v2965_v24 = vld [vmem:[#allocation10 + $0x1f0] sm:$0xff] }
 0x311   :  { %4493 = vmatprep.subr.bf16.mxu0 %v4492_v38  ;;  %4525 = vmatprep.subr.bf16.mxu1 %v4524_v28  ;;  %v4512_v22 = vpack.c.bf16 %v2934_v23, %v2933_v21  ;;  %v2917_v38 = vld [vmem:[#allocation10 + $0x70] sm:$0xff]  ;;  %v2918_v28 = vld [vmem:[#allocation10 + $0x78] sm:$0xff]  ;;  %v4544_v45 = vpack.c.bf16 %v2966_v27, %v2965_v24 }
 0x312   :  { %v4514_v31 = vpack.c.bf16 %v2918_v28, %v2917_v38 }
 0x314   :  { %4495 = vmatpush3.bf16.msra.mxu0 %v4494_v36  ;;  %4527 = vmatpush3.bf16.msra.mxu1 %v4526_v37  ;;  %v2322_v36 = vrot.slane %v104_v35, %v883_v20  ;;  %v2330_v37 = vrot.slane %v104_v35, %v891_v40 }
 0x315   :  { %4497 = vmatprep.subr.bf16.mxu0 %v4496_v43  ;;  %4529 = vmatprep.subr.bf16.mxu1 %v4528_v32 }
 0x318   :  { %4499 = vmatpush3.bf16.msra.mxu0 %v4498_v52  ;;  %4531 = vmatpush3.bf16.msra.mxu1 %v4530_v53  ;;  %v3133_v52 = vld [vmem:[#allocation11] ss:$0 sm:$0xff] }
 0x319   :  { %4501 = vmatprep.subr.bf16.mxu0 %v4500_v57  ;;  %4533 = vmatprep.subr.bf16.mxu1 %v4532_v58 }
 0x31c   :  { %4503 = vmatpush3.bf16.msra.mxu0 %v4502_v1  ;;  %4535 = vmatpush3.bf16.msra.mxu1 %v4534_v2 }
 0x31d   :  { %4505 = vmatprep.subr.bf16.mxu0 %v4504_v4  ;;  %4537 = vmatprep.subr.bf16.mxu1 %v4536_v5 }
 0x320   :  { %4507 = vmatpush3.bf16.msra.mxu0 %v4506_v12  ;;  %4539 = vmatpush3.bf16.msra.mxu1 %v4538_v13 }
 0x321   :  { %4509 = vmatprep.subr.bf16.mxu0 %v4508_v29  ;;  %4541 = vmatprep.subr.bf16.mxu1 %v4540_v15 }
 0x324   :  { %4511 = vmatpush3.bf16.msra.mxu0 %v4510_v17  ;;  %4543 = vmatpush3.bf16.msra.mxu1 %v4542_v18 }
 0x325   :  { %4513 = vmatprep.subr.bf16.mxu0 %v4512_v22  ;;  %4545 = vmatprep.subr.bf16.mxu1 %v4544_v45 }
 0x328   :  { %4515 = vmatpush3.bf16.msra.mxu0 %v4514_v31  ;;  %4547 = vmatpush3.bf16.msra.mxu1 %v4546_v34 }
 0x3de   :  { %v2614_v43 = vpop.f32.mrb[4].mxu0  ;;  %v2898_v32 = vpop.f32.mrb[4].mxu1 }
 0x3df   :  { %v2616_v25 = vpop.f32.mrb[5].mxu0  ;;  %v2900_v46 = vpop.f32.mrb[5].mxu1  ;;  %v4556_v49 = vadd.f32 %v2614_v43, %v2318_v39  ;;  %v4558_v51 = vadd.f32 %v2898_v32, %v2326_v42 }
 0x3e0   :  { %v4557_v47 = vadd.f32 %v2616_v25, %v2322_v36  ;;  %v4559_v48 = vadd.f32 %v2900_v46, %v2330_v37 }
 0x3e2   :  { %3037 = vmatprep.mubr.f32.mxu0 %v4557_v47  ;;  %3107 = vmatprep.mubr.f32.mxu1 %v4559_v48 }
 0x3e3   :  { %3038 = vmatmul.mubr.f32.vlgmr.msra.gmra.mrb[6].mxu0 %v4556_v49  ;;  %3108 = vmatmul.mubr.f32.vlgmr.msra.gmra.mrb[6].mxu1 %v4558_v51 }
 0x4b6   :  { %v3166_v20 = vpop.f32.mrb[6].mxu0  ;;  %v3201_v40 = vpop.f32.mrb[6].mxu1 }
 0x4b7   :  { %v3167_v53 = vpop.f32.mrb[7].mxu0  ;;  %v3202_v30 = vpop.f32.mrb[7].mxu1 }
 0x4b8   :  { %v3168_v26 = vadd.f32 %v3167_v53, %v3166_v20  ;;  %v3203_v61 = vadd.f32 %v3202_v30, %v3201_v40 }
 0x4ba   :  { %v3040_v56 = vadd.f32 %v3168_v26, %v3133_v52 }
 0x4bc   :  { %v3110_v54 = vadd.f32 %v3203_v61, %v3040_v56 }
 0x4be   :  { %3113 = vst [vmem:[#allocation13] sm:$0x3] %v3110_v54 }
 0x4bf   :  { %4748 = shalt.err (!%p4745_p10)
}
 0x4c0   :  { %s4749_s4 = scalar_lea.hbm %s5023_s7, 32 }
 0x4c1   :  { %p4750_p11 = scmp.ne.s32.totalorder %s5023_s7, %s4749_s4  ;;  %p4753_p12 = scmp.lt.u32.totalorder %s4749_s4, %s5023_s7 }
 0x4c3   :  { %p4755_p13 = pnand %p4753_p12, %p4750_p11 }
 0x4c5   :  { %4758 = shalt.err (!%p4755_p13)
}
 0x4c6   :  { %3123 = dma.vmem_to_hbm [thread:$0]  %s3121_s8, 32, %s5023_s7, [#allocation4]  }
 0x4c7   :  { %4767 = dma.done.wait [#allocation4], 32  }
 0x4c8   :  { %4768 = vsyncadd [#allocation4], 4294967264 }
 0x4c9   :  { %3127 = vsyncpa [#allocation3], 1 }
 0x4ca   :  { %3128 = vsyncpa [#allocation6], 1 }
 0x4cb   :  { %3129 = vsyncpa [#allocation9], 1 }
 0x4cc   :  { %3130 = vsyncpa [#allocation12], 1 }
 0x4cd   :  { %3131 = vsyncpa [#allocation4], 1 }

</bundles_post_ra>
